<compile_context>
chip_gen: v6e
topology: v6e:2x2x1
jax: 0.10.0
libtpu: 0.0.40
codegen_flags: <defaults>
</compile_context>

<pallas_src>
import functools

import jax
import jax.numpy as jnp
from jax.experimental import pallas as pl
from jax.experimental.pallas import tpu as pltpu

DILATION = (1, 2, 4, 8)
LN_EPS = 1e-5          # PyTorch nn.LayerNorm default
GUARD = 16             # zero guard rows (multiple of the bf16 sublane tile)


def _round_up(x, m):
    return (x + m - 1) // m * m


def ngram_wavenet_kernel(x_ref, w0_ref, w1_ref, cb_ref, g_ref, beta_ref,
                         fcw_ref, fcb_ref, o_ref, m_ref, buf_ref, *,
                         lf, l_out, l_final, c_valid, compute_dtype):
    """One grid step = one (BT*LF, C_pad) batch-tile slab x one vocab tile."""
    v = pl.program_id(1)

    @pl.when(v == 0)
    def _features():
        rows, C = x_ref.shape
        bt = rows // lf

        # Zero the guard band once; rows past each frame's valid length are
        # forced to zero below, so dilated reads that cross frame boundaries
        # read exact zeros (== PyTorch's left zero padding).
        buf_ref[0:GUARD, :] = jnp.zeros((GUARD, C), compute_dtype)

        # Per-row time position within its frame + per-layer validity masks,
        # built in-kernel (replaces the old (nL, rows, C) f32 input).
        t_pos = jax.lax.broadcasted_iota(jnp.int32, (rows, 1), 0) % lf
        row_masks = [(t_pos < lo).astype(jnp.float32) for lo in l_out]
        # Masked time-mean weights: 1/L_final on valid rows, 0 elsewhere.
        tmask = (t_pos < l_final).astype(jnp.float32) * (1.0 / l_final)

        h = x_ref[...]                                       # (rows, C)
        for i, d in enumerate(DILATION):
            hc = h.astype(compute_dtype)
            # Aligned store (offset GUARD), statically offset read -> x[t-d].
            buf_ref[GUARD:GUARD + rows, :] = hc
            h_shift = buf_ref[GUARD - d:GUARD - d + rows, :]
            # Conv1d(k=2, dilation=d) as two accumulated MXU dots.
            y = (jnp.dot(h_shift, w0_ref[i],
                         preferred_element_type=jnp.float32)
                 + jnp.dot(hc, w1_ref[i],
                           preferred_element_type=jnp.float32))
            # Rows past this layer's valid length are zeroed so the next
            # layer's dilated read never leaks across frames.
            # TODO(synk): training-mode dropout (PRNG masking) not implemented.
            h = jnp.maximum(y + cb_ref[i], 0.0) * row_masks[i]  # f32

        # LayerNorm statistics over the real C channels only (padded channels
        # of h are exactly 0; gamma/beta are zero-padded so padded channels of
        # ln stay exactly 0 for the downstream matmuls).
        inv_c = 1.0 / c_valid
        mu = jnp.sum(h, axis=-1, keepdims=True) * inv_c
        d0 = h - mu
        if c_valid == C:
            dm = d0
        else:
            lane = jax.lax.broadcasted_iota(jnp.int32, (1, C), 1)
            dm = d0 * (lane < c_valid).astype(jnp.float32)
        var = jnp.sum(dm * dm, axis=-1, keepdims=True) * inv_c
        ln = d0 * jax.lax.rsqrt(var + LN_EPS) * g_ref[...] + beta_ref[...]

        # Masked mean over time.  NOTE: invalid frame rows equal `beta` after
        # LayerNorm, so the tmask zeroing here is required for correctness.
        lnm = ln * tmask
        m_ref[...] = jnp.sum(lnm.reshape(bt, lf, C), axis=1)

    # Final Linear on the cached per-batch-tile features, one lane-dense
    # vocab tile per grid step.
    o_ref[...] = (jnp.dot(m_ref[...].astype(compute_dtype), fcw_ref[...],
                          preferred_element_type=jnp.float32) + fcb_ref[...])


def init_params(key, vocab_size, n_embed):
    keys = jax.random.split(key, 11)
    bc = 1.0 / (2.0 * n_embed) ** 0.5   # conv fan_in = n_embed * kernel_size
    bf = 1.0 / n_embed ** 0.5           # linear fan_in = n_embed
    conv_w = [jax.random.uniform(keys[i], (n_embed, n_embed, 2), jnp.float32,
                                 -bc, bc) for i in range(4)]
    conv_b = [jax.random.uniform(keys[4 + i], (n_embed,), jnp.float32,
                                 -bc, bc) for i in range(4)]
    return {
        "emb": jax.random.normal(keys[8], (vocab_size, n_embed), jnp.float32),
        "conv_w": conv_w,                 # each (C_out, C_in, 2) like PyTorch
        "conv_b": conv_b,                 # each (C_out,)
        "ln_g": jnp.ones((n_embed,), jnp.float32),
        "ln_b": jnp.zeros((n_embed,), jnp.float32),
        "fc_w": jax.random.uniform(keys[9], (vocab_size, n_embed),
                                   jnp.float32, -bf, bf),
        "fc_b": jax.random.uniform(keys[10], (vocab_size,),
                                   jnp.float32, -bf, bf),
    }


def ngram_wavenet_pallas(tokens, p, *, compute_dtype=jnp.float32,
                         batch_tile=128, v_tile_max=2048,
                         vmem_limit_bytes=64 * 1024 * 1024):
    B, T = tokens.shape
    V, C = p["emb"].shape
    nL = len(DILATION)
    cdt = compute_dtype
    itemsize = jnp.dtype(cdt).itemsize

    # Valid lengths after each conv layer and the fixed per-sample frame.
    l_out, L = [], T
    for d in DILATION:
        L += d
        l_out.append(L)
    L_final = l_out[-1]
    LF = _round_up(L_final, 8)

    # Static safety checks for the zero-padding / guard-band scheme.
    assert GUARD >= max(DILATION), "guard band must cover the largest dilation"
    assert GUARD % 16 == 0 and LF % 8 == 0
    l_in = T
    for i, d in enumerate(DILATION):
        assert LF - d >= l_in, "frame too short: dilated tap would leak"
        l_in = l_out[i]

    # Lane-dense channel padding (C=32 toy config would otherwise run the
    # whole kernel at 25% lane density).
    C_pad = _round_up(max(C, 128), 128)

    # Vocab tile: large and lane-dense so grid-step overhead amortizes.
    VT = min(_round_up(v_tile_max, 128), _round_up(V, 128))
    VP = _round_up(V, VT)
    nv = VP // VT

    # Batch tile: fill the MXU M dimension, capped by a crude VMEM budget for
    # the feature-phase temporaries and by round_up(B, 8).
    bytes_per_b = LF * C_pad * (4 * 4 + 3 * itemsize)
    bt_cap = max(8, ((vmem_limit_bytes // 2) // bytes_per_b) // 8 * 8)
    BT = max(8, min(_round_up(batch_tile, 8), _round_up(B, 8), bt_cap))
    B_pad = _round_up(B, BT)
    rows = BT * LF
    nb = B_pad // BT

    # ---- glue that stays in plain JAX (parameter prep + gather) ------------
    # Embedding lookup is a data-dependent gather; keep it outside the kernel.
    x_emb = p["emb"][tokens].astype(cdt)                          # (B, T, C)
    x_pad = jnp.zeros((B_pad, LF, C_pad), cdt).at[:B, :T, :C].set(x_emb)
    x_flat = x_pad.reshape(B_pad * LF, C_pad)

    # Conv taps, pre-transposed channels-last and zero-padded to C_pad.
    w0 = jnp.zeros((nL, C_pad, C_pad), cdt)
    w1 = jnp.zeros((nL, C_pad, C_pad), cdt)
    cb = jnp.zeros((nL, 1, C_pad), jnp.float32)
    for i in range(nL):
        w0 = w0.at[i, :C, :C].set(p["conv_w"][i][:, :, 0].T.astype(cdt))
        w1 = w1.at[i, :C, :C].set(p["conv_w"][i][:, :, 1].T.astype(cdt))
        cb = cb.at[i, 0, :C].set(p["conv_b"][i])

    # LayerNorm affine params; padded channels stay 0 so padded ln is 0.
    g = jnp.zeros((1, C_pad), jnp.float32).at[0, :C].set(p["ln_g"])
    beta = jnp.zeros((1, C_pad), jnp.float32).at[0, :C].set(p["ln_b"])

    # Final linear, zero-padded to lane-dense multiples of 128.
    fcw = jnp.zeros((C_pad, VP), cdt).at[:C, :V].set(p["fc_w"].T.astype(cdt))
    fcb = jnp.zeros((1, VP), jnp.float32).at[0, :V].set(p["fc_b"])

    kernel = functools.partial(
        ngram_wavenet_kernel, lf=LF, l_out=tuple(l_out), l_final=L_final,
        c_valid=C, compute_dtype=cdt)

    out = pl.pallas_call(
        kernel,
        out_shape=jax.ShapeDtypeStruct((B_pad, VP), jnp.float32),
        grid_spec=pltpu.PrefetchScalarGridSpec(
            num_scalar_prefetch=0,
            grid=(nb, nv),
            in_specs=[
                pl.BlockSpec((rows, C_pad), lambda b, v: (b, 0)),          # x
                pl.BlockSpec((nL, C_pad, C_pad), lambda b, v: (0, 0, 0)),  # w0
                pl.BlockSpec((nL, C_pad, C_pad), lambda b, v: (0, 0, 0)),  # w1
                pl.BlockSpec((nL, 1, C_pad), lambda b, v: (0, 0, 0)),      # bias
                pl.BlockSpec((1, C_pad), lambda b, v: (0, 0)),             # ln g
                pl.BlockSpec((1, C_pad), lambda b, v: (0, 0)),             # ln b
                pl.BlockSpec((C_pad, VT), lambda b, v: (0, v)),            # fc w
                pl.BlockSpec((1, VT), lambda b, v: (0, v)),                # fc b
            ],
            out_specs=pl.BlockSpec((BT, VT), lambda b, v: (b, v)),
            scratch_shapes=[
                pltpu.VMEM((BT, C_pad), jnp.float32),     # cached mean features
                pltpu.VMEM((GUARD + rows, C_pad), cdt),   # aligned shift buffer
            ],
        ),
        compiler_params=pltpu.CompilerParams(
            dimension_semantics=("parallel", "arbitrary"),
            vmem_limit_bytes=vmem_limit_bytes),
    )(x_flat, w0, w1, cb, g, beta, fcw, fcb)

    return out[:B, :V]


def reference_forward(tokens, p):
    """Pure-JAX reference mirroring the PyTorch module (eval mode)."""
    h = p["emb"][tokens].astype(jnp.float32)                # (B, T, C)
    for i, d in enumerate(DILATION):
        L = h.shape[1]
        hp = jnp.pad(h, ((0, 0), (d, d), (0, 0)))
        w = p["conv_w"][i]                                  # (Cout, Cin, 2)
        y = (jnp.einsum("btc,oc->bto", hp[:, :L + d], w[:, :, 0])
             + jnp.einsum("btc,oc->bto", hp[:, d:L + 2 * d], w[:, :, 1])
             + p["conv_b"][i])
        h = jax.nn.relu(y)
    mu = h.mean(-1, keepdims=True)
    var = ((h - mu) ** 2).mean(-1, keepdims=True)
    ln = (h - mu) / jnp.sqrt(var + LN_EPS) * p["ln_g"] + p["ln_b"]
    m = ln.mean(axis=1)
    return m @ p["fc_w"].T + p["fc_b"]


if __name__ == "__main__":
    vocab_size, n_embed, block_size, batch = 16, 32, 8, 2
    key = jax.random.PRNGKey(0)
    k_param, k_tok = jax.random.split(key)
    params = init_params(k_param, vocab_size, n_embed)
    tokens = jax.random.randint(k_tok, (batch, block_size), 0, vocab_size,
                                dtype=jnp.int32)

    ref = jax.block_until_ready(reference_forward(tokens, params))

    # f32 path
    out = jax.block_until_ready(ngram_wavenet_pallas(tokens, params))
    assert out.shape == (batch, vocab_size), out.shape
    assert jnp.allclose(out, ref, atol=2e-3, rtol=2e-3), (out, ref)

    # bf16 weights/activations (f32 accumulation + f32 LayerNorm), v6e/v7x path
    out_bf16 = jax.block_until_ready(
        ngram_wavenet_pallas(tokens, params, compute_dtype=jnp.bfloat16))
    assert out_bf16.shape == (batch, vocab_size), out_bf16.shape
    assert jnp.allclose(out_bf16, ref, atol=5e-2, rtol=5e-2), (out_bf16, ref)

    print("KERNEL_OK")
</pallas_src>

<mosaic_0001>
module attributes {stable_mosaic.version = 11 : i64} {
  func.func @ngram_wavenet_kernel(%arg0: i32, %arg1: i32, %arg2: memref<192x128xf32, #tpu.memory_space<vmem>>, %arg3: memref<4x128x128xf32, #tpu.memory_space<vmem>>, %arg4: memref<4x128x128xf32, #tpu.memory_space<vmem>>, %arg5: memref<4x1x128xf32, #tpu.memory_space<vmem>>, %arg6: memref<1x128xf32, #tpu.memory_space<vmem>>, %arg7: memref<1x128xf32, #tpu.memory_space<vmem>>, %arg8: memref<128x128xf32, #tpu.memory_space<vmem>>, %arg9: memref<1x128xf32, #tpu.memory_space<vmem>>, %arg10: memref<8x128xf32, #tpu.memory_space<vmem>>, %arg11: memref<8x128xf32, #tpu.memory_space<vmem>>, %arg12: memref<208x128xf32, #tpu.memory_space<vmem>>) attributes {dimension_semantics = [#tpu.dimension_semantics<parallel>, #tpu.dimension_semantics<arbitrary>], iteration_bounds = array<i64: 1, 1>, scalar_prefetch = 0 : i64, scratch_operands = 2 : i64, tpu.core_type = #tpu.core_type<tc>, window_params = [{transform_indices = @transform_0, window_bounds = array<i64: 192, 128>}, {pipeline_mode = #tpu.pipeline_mode<synchronous>, transform_indices = @transform_1, window_bounds = array<i64: 4, 128, 128>}, {pipeline_mode = #tpu.pipeline_mode<synchronous>, transform_indices = @transform_2, window_bounds = array<i64: 4, 128, 128>}, {pipeline_mode = #tpu.pipeline_mode<synchronous>, transform_indices = @transform_3, window_bounds = array<i64: 4, 1, 128>}, {pipeline_mode = #tpu.pipeline_mode<synchronous>, transform_indices = @transform_4, window_bounds = array<i64: 1, 128>}, {pipeline_mode = #tpu.pipeline_mode<synchronous>, transform_indices = @transform_5, window_bounds = array<i64: 1, 128>}, {transform_indices = @transform_6, window_bounds = array<i64: 128, 128>}, {transform_indices = @transform_7, window_bounds = array<i64: 1, 128>}, {transform_indices = @transform_8, window_bounds = array<i64: 8, 128>}]} {
    %c0_i32 = arith.constant 0 : i32
    %0 = arith.cmpi eq, %arg1, %c0_i32 : i32
    %1 = arith.extui %0 : i1 to i32
    %c0_i32_0 = arith.constant 0 : i32
    %2 = arith.cmpi ne, %1, %c0_i32_0 : i32
    scf.if %2 {
      %cst_8 = arith.constant 0.000000e+00 : f32
      %10 = vector.broadcast %cst_8 : f32 to vector<16x128xf32>
      %c0_9 = arith.constant 0 : index
      %c0_10 = arith.constant 0 : index
      %11 = vector.load %arg12[%c0_9, %c0_10] : memref<208x128xf32, #tpu.memory_space<vmem>>, vector<16x128xf32>
      tpu.vector_store %arg12[%c0_9, %c0_10], %10 {strides = array<i32>} : memref<208x128xf32, #tpu.memory_space<vmem>>, vector<16x128xf32>,
      %12 = tpu.iota {dimensions = array<i32: 0>} : vector<192x1xi32>
      %c24_i32 = arith.constant 24 : i32
      %c0_i32_11 = arith.constant 0 : i32
      %13 = arith.cmpi eq, %c24_i32, %c0_i32_11 : i32
      %c1_i32 = arith.constant 1 : i32
      %14 = arith.select %13, %c1_i32, %c24_i32 : i32
      %15 = vector.broadcast %14 : i32 to vector<192x1xi32>
      %16 = arith.remsi %12, %15 : vector<192x1xi32>
      %c0_i32_12 = arith.constant 0 : i32
      %17 = vector.broadcast %c0_i32_12 : i32 to vector<192x1xi32>
      %18 = arith.cmpi ne, %16, %17 : vector<192x1xi32>
      %c0_i32_13 = arith.constant 0 : i32
      %19 = vector.broadcast %c0_i32_13 : i32 to vector<192x1xi32>
      %20 = arith.cmpi slt, %16, %19 : vector<192x1xi32>
      %c0_i32_14 = arith.constant 0 : i32
      %21 = arith.cmpi slt, %14, %c0_i32_14 : i32
      %22 = vector.broadcast %21 : i1 to vector<192x1xi1>
      %23 = vector.broadcast %22 : vector<192x1xi1> to vector<192x1xi1>
      %24 = arith.xori %20, %23 : vector<192x1xi1>
      %25 = arith.andi %24, %18 : vector<192x1xi1>
      %26 = vector.broadcast %14 : i32 to vector<192x1xi32>
      %27 = arith.addi %16, %26 : vector<192x1xi32>
      %28 = arith.select %25, %27, %16 : vector<192x1xi1>, vector<192x1xi32>
      %c9_i32 = arith.constant 9 : i32
      %29 = vector.broadcast %c9_i32 : i32 to vector<192x1xi32>
      %30 = arith.cmpi slt, %28, %29 : vector<192x1xi32>
      %31 = arith.extui %30 : vector<192x1xi1> to vector<192x1xi32>
      %32 = arith.sitofp %31 : vector<192x1xi32> to vector<192x1xf32>
      %c11_i32 = arith.constant 11 : i32
      %33 = vector.broadcast %c11_i32 : i32 to vector<192x1xi32>
      %34 = arith.cmpi slt, %28, %33 : vector<192x1xi32>
      %35 = arith.extui %34 : vector<192x1xi1> to vector<192x1xi32>
      %36 = arith.sitofp %35 : vector<192x1xi32> to vector<192x1xf32>
      %c15_i32 = arith.constant 15 : i32
      %37 = vector.broadcast %c15_i32 : i32 to vector<192x1xi32>
      %38 = arith.cmpi slt, %28, %37 : vector<192x1xi32>
      %39 = arith.extui %38 : vector<192x1xi1> to vector<192x1xi32>
      %40 = arith.sitofp %39 : vector<192x1xi32> to vector<192x1xf32>
      %c23_i32 = arith.constant 23 : i32
      %41 = vector.broadcast %c23_i32 : i32 to vector<192x1xi32>
      %42 = arith.cmpi slt, %28, %41 : vector<192x1xi32>
      %43 = arith.extui %42 : vector<192x1xi1> to vector<192x1xi32>
      %44 = arith.sitofp %43 : vector<192x1xi32> to vector<192x1xf32>
      %c23_i32_15 = arith.constant 23 : i32
      %45 = vector.broadcast %c23_i32_15 : i32 to vector<192x1xi32>
      %46 = arith.cmpi slt, %28, %45 : vector<192x1xi32>
      %47 = arith.extui %46 : vector<192x1xi1> to vector<192x1xi32>
      %48 = arith.sitofp %47 : vector<192x1xi32> to vector<192x1xf32>
      %cst_16 = arith.constant 0.0434782617 : f32
      %49 = vector.broadcast %cst_16 : f32 to vector<192x1xf32>
      %50 = arith.mulf %48, %49 : vector<192x1xf32>
      %c0_17 = arith.constant 0 : index
      %c0_18 = arith.constant 0 : index
      %51 = vector.load %arg2[%c0_17, %c0_18] : memref<192x128xf32, #tpu.memory_space<vmem>>, vector<192x128xf32>
      %c16 = arith.constant 16 : index
      %c0_19 = arith.constant 0 : index
      %52 = vector.load %arg12[%c16, %c0_19] : memref<208x128xf32, #tpu.memory_space<vmem>>, vector<192x128xf32>
      tpu.vector_store %arg12[%c16, %c0_19], %51 {strides = array<i32>} : memref<208x128xf32, #tpu.memory_space<vmem>>, vector<192x128xf32>,
      %c15 = arith.constant 15 : index
      %c0_20 = arith.constant 0 : index
      %53 = vector.load %arg12[%c15, %c0_20] : memref<208x128xf32, #tpu.memory_space<vmem>>, vector<192x128xf32>
      %c0_21 = arith.constant 0 : index
      %c0_22 = arith.constant 0 : index
      %c0_23 = arith.constant 0 : index
      %54 = vector.load %arg3[%c0_21, %c0_22, %c0_23] : memref<4x128x128xf32, #tpu.memory_space<vmem>>, vector<1x128x128xf32>
      %55 = vector.shape_cast %54 : vector<1x128x128xf32> to vector<128x128xf32>
      %cst_24 = arith.constant dense<0.000000e+00> : vector<192x128xf32>
      %56 = tpu.matmul %53, %55, %cst_24 {dimension_numbers = #tpu.dot_dimension_numbers<[1], [0], [0], [1], [0, 0, 1, 1], [], []>} : vector<192x128xf32>, vector<128x128xf32>, vector<192x128xf32> -> vector<192x128xf32>
      %c0_25 = arith.constant 0 : index
      %c0_26 = arith.constant 0 : index
      %c0_27 = arith.constant 0 : index
      %57 = vector.load %arg4[%c0_25, %c0_26, %c0_27] : memref<4x128x128xf32, #tpu.memory_space<vmem>>, vector<1x128x128xf32>
      %58 = vector.shape_cast %57 : vector<1x128x128xf32> to vector<128x128xf32>
      %cst_28 = arith.constant dense<0.000000e+00> : vector<192x128xf32>
      %59 = tpu.matmul %51, %58, %cst_28 {dimension_numbers = #tpu.dot_dimension_numbers<[1], [0], [0], [1], [0, 0, 1, 1], [], []>} : vector<192x128xf32>, vector<128x128xf32>, vector<192x128xf32> -> vector<192x128xf32>
      %60 = arith.addf %56, %59 : vector<192x128xf32>
      %c0_29 = arith.constant 0 : index
      %c0_30 = arith.constant 0 : index
      %c0_31 = arith.constant 0 : index
      %61 = vector.load %arg5[%c0_29, %c0_30, %c0_31] : memref<4x1x128xf32, #tpu.memory_space<vmem>>, vector<1x1x128xf32>
      %62 = vector.shape_cast %61 : vector<1x1x128xf32> to vector<1x128xf32>
      %63 = vector.broadcast %62 : vector<1x128xf32> to vector<192x128xf32>
      %64 = arith.addf %60, %63 : vector<192x128xf32>
      %cst_32 = arith.constant 0.000000e+00 : f32
      %65 = vector.broadcast %cst_32 : f32 to vector<192x128xf32>
      %66 = arith.maximumf %64, %65 : vector<192x128xf32>
      %67 = vector.broadcast %32 : vector<192x1xf32> to vector<192x128xf32>
      %68 = arith.mulf %66, %67 : vector<192x128xf32>
      %c16_33 = arith.constant 16 : index
      %c0_34 = arith.constant 0 : index
      %69 = vector.load %arg12[%c16_33, %c0_34] : memref<208x128xf32, #tpu.memory_space<vmem>>, vector<192x128xf32>
      tpu.vector_store %arg12[%c16_33, %c0_34], %68 {strides = array<i32>} : memref<208x128xf32, #tpu.memory_space<vmem>>, vector<192x128xf32>,
      %c14 = arith.constant 14 : index
      %c0_35 = arith.constant 0 : index
      %70 = vector.load %arg12[%c14, %c0_35] : memref<208x128xf32, #tpu.memory_space<vmem>>, vector<192x128xf32>
      %c1 = arith.constant 1 : index
      %c0_36 = arith.constant 0 : index
      %c0_37 = arith.constant 0 : index
      %71 = vector.load %arg3[%c1, %c0_36, %c0_37] : memref<4x128x128xf32, #tpu.memory_space<vmem>>, vector<1x128x128xf32>
      %72 = vector.shape_cast %71 : vector<1x128x128xf32> to vector<128x128xf32>
      %cst_38 = arith.constant dense<0.000000e+00> : vector<192x128xf32>
      %73 = tpu.matmul %70, %72, %cst_38 {dimension_numbers = #tpu.dot_dimension_numbers<[1], [0], [0], [1], [0, 0, 1, 1], [], []>} : vector<192x128xf32>, vector<128x128xf32>, vector<192x128xf32> -> vector<192x128xf32>
      %c1_39 = arith.constant 1 : index
      %c0_40 = arith.constant 0 : index
      %c0_41 = arith.constant 0 : index
      %74 = vector.load %arg4[%c1_39, %c0_40, %c0_41] : memref<4x128x128xf32, #tpu.memory_space<vmem>>, vector<1x128x128xf32>
      %75 = vector.shape_cast %74 : vector<1x128x128xf32> to vector<128x128xf32>
      %cst_42 = arith.constant dense<0.000000e+00> : vector<192x128xf32>
      %76 = tpu.matmul %68, %75, %cst_42 {dimension_numbers = #tpu.dot_dimension_numbers<[1], [0], [0], [1], [0, 0, 1, 1], [], []>} : vector<192x128xf32>, vector<128x128xf32>, vector<192x128xf32> -> vector<192x128xf32>
      %77 = arith.addf %73, %76 : vector<192x128xf32>
      %c1_43 = arith.constant 1 : index
      %c0_44 = arith.constant 0 : index
      %c0_45 = arith.constant 0 : index
      %78 = vector.load %arg5[%c1_43, %c0_44, %c0_45] : memref<4x1x128xf32, #tpu.memory_space<vmem>>, vector<1x1x128xf32>
      %79 = vector.shape_cast %78 : vector<1x1x128xf32> to vector<1x128xf32>
      %80 = vector.broadcast %79 : vector<1x128xf32> to vector<192x128xf32>
      %81 = arith.addf %77, %80 : vector<192x128xf32>
      %cst_46 = arith.constant 0.000000e+00 : f32
      %82 = vector.broadcast %cst_46 : f32 to vector<192x128xf32>
      %83 = arith.maximumf %81, %82 : vector<192x128xf32>
      %84 = vector.broadcast %36 : vector<192x1xf32> to vector<192x128xf32>
      %85 = arith.mulf %83, %84 : vector<192x128xf32>
      %c16_47 = arith.constant 16 : index
      %c0_48 = arith.constant 0 : index
      %86 = vector.load %arg12[%c16_47, %c0_48] : memref<208x128xf32, #tpu.memory_space<vmem>>, vector<192x128xf32>
      tpu.vector_store %arg12[%c16_47, %c0_48], %85 {strides = array<i32>} : memref<208x128xf32, #tpu.memory_space<vmem>>, vector<192x128xf32>,
      %c12 = arith.constant 12 : index
      %c0_49 = arith.constant 0 : index
      %87 = vector.load %arg12[%c12, %c0_49] : memref<208x128xf32, #tpu.memory_space<vmem>>, vector<192x128xf32>
      %c2 = arith.constant 2 : index
      %c0_50 = arith.constant 0 : index
      %c0_51 = arith.constant 0 : index
      %88 = vector.load %arg3[%c2, %c0_50, %c0_51] : memref<4x128x128xf32, #tpu.memory_space<vmem>>, vector<1x128x128xf32>
      %89 = vector.shape_cast %88 : vector<1x128x128xf32> to vector<128x128xf32>
      %cst_52 = arith.constant dense<0.000000e+00> : vector<192x128xf32>
      %90 = tpu.matmul %87, %89, %cst_52 {dimension_numbers = #tpu.dot_dimension_numbers<[1], [0], [0], [1], [0, 0, 1, 1], [], []>} : vector<192x128xf32>, vector<128x128xf32>, vector<192x128xf32> -> vector<192x128xf32>
      %c2_53 = arith.constant 2 : index
      %c0_54 = arith.constant 0 : index
      %c0_55 = arith.constant 0 : index
      %91 = vector.load %arg4[%c2_53, %c0_54, %c0_55] : memref<4x128x128xf32, #tpu.memory_space<vmem>>, vector<1x128x128xf32>
      %92 = vector.shape_cast %91 : vector<1x128x128xf32> to vector<128x128xf32>
      %cst_56 = arith.constant dense<0.000000e+00> : vector<192x128xf32>
      %93 = tpu.matmul %85, %92, %cst_56 {dimension_numbers = #tpu.dot_dimension_numbers<[1], [0], [0], [1], [0, 0, 1, 1], [], []>} : vector<192x128xf32>, vector<128x128xf32>, vector<192x128xf32> -> vector<192x128xf32>
      %94 = arith.addf %90, %93 : vector<192x128xf32>
      %c2_57 = arith.constant 2 : index
      %c0_58 = arith.constant 0 : index
      %c0_59 = arith.constant 0 : index
      %95 = vector.load %arg5[%c2_57, %c0_58, %c0_59] : memref<4x1x128xf32, #tpu.memory_space<vmem>>, vector<1x1x128xf32>
      %96 = vector.shape_cast %95 : vector<1x1x128xf32> to vector<1x128xf32>
      %97 = vector.broadcast %96 : vector<1x128xf32> to vector<192x128xf32>
      %98 = arith.addf %94, %97 : vector<192x128xf32>
      %cst_60 = arith.constant 0.000000e+00 : f32
      %99 = vector.broadcast %cst_60 : f32 to vector<192x128xf32>
      %100 = arith.maximumf %98, %99 : vector<192x128xf32>
      %101 = vector.broadcast %40 : vector<192x1xf32> to vector<192x128xf32>
      %102 = arith.mulf %100, %101 : vector<192x128xf32>
      %c16_61 = arith.constant 16 : index
      %c0_62 = arith.constant 0 : index
      %103 = vector.load %arg12[%c16_61, %c0_62] : memref<208x128xf32, #tpu.memory_space<vmem>>, vector<192x128xf32>
      tpu.vector_store %arg12[%c16_61, %c0_62], %102 {strides = array<i32>} : memref<208x128xf32, #tpu.memory_space<vmem>>, vector<192x128xf32>,
      %c8 = arith.constant 8 : index
      %c0_63 = arith.constant 0 : index
      %104 = vector.load %arg12[%c8, %c0_63] : memref<208x128xf32, #tpu.memory_space<vmem>>, vector<192x128xf32>
      %c3 = arith.constant 3 : index
      %c0_64 = arith.constant 0 : index
      %c0_65 = arith.constant 0 : index
      %105 = vector.load %arg3[%c3, %c0_64, %c0_65] : memref<4x128x128xf32, #tpu.memory_space<vmem>>, vector<1x128x128xf32>
      %106 = vector.shape_cast %105 : vector<1x128x128xf32> to vector<128x128xf32>
      %cst_66 = arith.constant dense<0.000000e+00> : vector<192x128xf32>
      %107 = tpu.matmul %104, %106, %cst_66 {dimension_numbers = #tpu.dot_dimension_numbers<[1], [0], [0], [1], [0, 0, 1, 1], [], []>} : vector<192x128xf32>, vector<128x128xf32>, vector<192x128xf32> -> vector<192x128xf32>
      %c3_67 = arith.constant 3 : index
      %c0_68 = arith.constant 0 : index
      %c0_69 = arith.constant 0 : index
      %108 = vector.load %arg4[%c3_67, %c0_68, %c0_69] : memref<4x128x128xf32, #tpu.memory_space<vmem>>, vector<1x128x128xf32>
      %109 = vector.shape_cast %108 : vector<1x128x128xf32> to vector<128x128xf32>
      %cst_70 = arith.constant dense<0.000000e+00> : vector<192x128xf32>
      %110 = tpu.matmul %102, %109, %cst_70 {dimension_numbers = #tpu.dot_dimension_numbers<[1], [0], [0], [1], [0, 0, 1, 1], [], []>} : vector<192x128xf32>, vector<128x128xf32>, vector<192x128xf32> -> vector<192x128xf32>
      %111 = arith.addf %107, %110 : vector<192x128xf32>
      %c3_71 = arith.constant 3 : index
      %c0_72 = arith.constant 0 : index
      %c0_73 = arith.constant 0 : index
      %112 = vector.load %arg5[%c3_71, %c0_72, %c0_73] : memref<4x1x128xf32, #tpu.memory_space<vmem>>, vector<1x1x128xf32>
      %113 = vector.shape_cast %112 : vector<1x1x128xf32> to vector<1x128xf32>
      %114 = vector.broadcast %113 : vector<1x128xf32> to vector<192x128xf32>
      %115 = arith.addf %111, %114 : vector<192x128xf32>
      %cst_74 = arith.constant 0.000000e+00 : f32
      %116 = vector.broadcast %cst_74 : f32 to vector<192x128xf32>
      %117 = arith.maximumf %115, %116 : vector<192x128xf32>
      %118 = vector.broadcast %44 : vector<192x1xf32> to vector<192x128xf32>
      %119 = arith.mulf %117, %118 : vector<192x128xf32>
      %cst_75 = arith.constant dense<0.000000e+00> : vector<192xf32>
      %120 = vector.multi_reduction <add>, %119, %cst_75 [1] : vector<192x128xf32> to vector<192xf32>
      %121 = vector.shape_cast %120 : vector<192xf32> to vector<192x1xf32>
      %cst_76 = arith.constant 3.125000e-02 : f32
      %122 = vector.broadcast %cst_76 : f32 to vector<192x1xf32>
      %123 = arith.mulf %121, %122 : vector<192x1xf32>
      %124 = vector.broadcast %123 : vector<192x1xf32> to vector<192x128xf32>
      %125 = arith.subf %119, %124 : vector<192x128xf32>
      %126 = tpu.iota {dimensions = array<i32: 1>} : vector<1x128xi32>
      %c32_i32 = arith.constant 32 : i32
      %127 = vector.broadcast %c32_i32 : i32 to vector<1x128xi32>
      %128 = arith.cmpi slt, %126, %127 : vector<1x128xi32>
      %129 = arith.extui %128 : vector<1x128xi1> to vector<1x128xi32>
      %130 = arith.sitofp %129 : vector<1x128xi32> to vector<1x128xf32>
      %131 = vector.broadcast %130 : vector<1x128xf32> to vector<192x128xf32>
      %132 = arith.mulf %125, %131 : vector<192x128xf32>
      %133 = arith.mulf %132, %132 : vector<192x128xf32>
      %cst_77 = arith.constant dense<0.000000e+00> : vector<192xf32>
      %134 = vector.multi_reduction <add>, %133, %cst_77 [1] : vector<192x128xf32> to vector<192xf32>
      %135 = vector.shape_cast %134 : vector<192xf32> to vector<192x1xf32>
      %cst_78 = arith.constant 3.125000e-02 : f32
      %136 = vector.broadcast %cst_78 : f32 to vector<192x1xf32>
      %137 = arith.mulf %135, %136 : vector<192x1xf32>
      %cst_79 = arith.constant 9.99999974E-6 : f32
      %138 = vector.broadcast %cst_79 : f32 to vector<192x1xf32>
      %139 = arith.addf %137, %138 : vector<192x1xf32>
      %140 = math.rsqrt %139 : vector<192x1xf32>
      %141 = vector.broadcast %140 : vector<192x1xf32> to vector<192x128xf32>
      %142 = arith.mulf %125, %141 : vector<192x128xf32>
      %c0_80 = arith.constant 0 : index
      %c0_81 = arith.constant 0 : index
      %143 = vector.load %arg6[%c0_80, %c0_81] : memref<1x128xf32, #tpu.memory_space<vmem>>, vector<1x128xf32>
      %144 = vector.broadcast %143 : vector<1x128xf32> to vector<192x128xf32>
      %145 = arith.mulf %142, %144 : vector<192x128xf32>
      %c0_82 = arith.constant 0 : index
      %c0_83 = arith.constant 0 : index
      %146 = vector.load %arg7[%c0_82, %c0_83] : memref<1x128xf32, #tpu.memory_space<vmem>>, vector<1x128xf32>
      %147 = vector.broadcast %146 : vector<1x128xf32> to vector<192x128xf32>
      %148 = arith.addf %145, %147 : vector<192x128xf32>
      %149 = vector.broadcast %50 : vector<192x1xf32> to vector<192x128xf32>
      %150 = arith.mulf %148, %149 : vector<192x128xf32>
      %151 = vector.shape_cast %150 : vector<192x128xf32> to vector<8x24x128xf32>
      %cst_84 = arith.constant dense<0.000000e+00> : vector<8x128xf32>
      %152 = vector.multi_reduction <add>, %151, %cst_84 [1] : vector<8x24x128xf32> to vector<8x128xf32>
      %c0_85 = arith.constant 0 : index
      %c0_86 = arith.constant 0 : index
      %153 = vector.load %arg11[%c0_85, %c0_86] : memref<8x128xf32, #tpu.memory_space<vmem>>, vector<8x128xf32>
      tpu.vector_store %arg11[%c0_85, %c0_86], %152 {strides = array<i32>} : memref<8x128xf32, #tpu.memory_space<vmem>>, vector<8x128xf32>,
    } else {
    }
    %c0 = arith.constant 0 : index
    %c0_1 = arith.constant 0 : index
    %3 = vector.load %arg11[%c0, %c0_1] : memref<8x128xf32, #tpu.memory_space<vmem>>, vector<8x128xf32>
    %c0_2 = arith.constant 0 : index
    %c0_3 = arith.constant 0 : index
    %4 = vector.load %arg8[%c0_2, %c0_3] : memref<128x128xf32, #tpu.memory_space<vmem>>, vector<128x128xf32>
    %cst = arith.constant dense<0.000000e+00> : vector<8x128xf32>
    %5 = tpu.matmul %3, %4, %cst {dimension_numbers = #tpu.dot_dimension_numbers<[1], [0], [0], [1], [0, 0, 1, 1], [], []>} : vector<8x128xf32>, vector<128x128xf32>, vector<8x128xf32> -> vector<8x128xf32>
    %c0_4 = arith.constant 0 : index
    %c0_5 = arith.constant 0 : index
    %6 = vector.load %arg9[%c0_4, %c0_5] : memref<1x128xf32, #tpu.memory_space<vmem>>, vector<1x128xf32>
    %7 = vector.broadcast %6 : vector<1x128xf32> to vector<8x128xf32>
    %8 = arith.addf %5, %7 : vector<8x128xf32>
    %c0_6 = arith.constant 0 : index
    %c0_7 = arith.constant 0 : index
    %9 = vector.load %arg10[%c0_6, %c0_7] : memref<8x128xf32, #tpu.memory_space<vmem>>, vector<8x128xf32>
    tpu.vector_store %arg10[%c0_6, %c0_7], %8 {strides = array<i32>} : memref<8x128xf32, #tpu.memory_space<vmem>>, vector<8x128xf32>,
    return
  }
  func.func @transform_0(%arg0: i32, %arg1: i32) -> (i32, i32) {
    %c0_i32 = arith.constant 0 : i32
    %c0_i32_0 = arith.constant 0 : i32
    return %arg0, %c0_i32 : i32, i32
  }
  func.func @transform_1(%arg0: i32, %arg1: i32) -> (i32, i32, i32) {
    %c0_i32 = arith.constant 0 : i32
    %c0_i32_0 = arith.constant 0 : i32
    %c0_i32_1 = arith.constant 0 : i32
    %c0_i32_2 = arith.constant 0 : i32
    return %c0_i32, %c0_i32_0, %c0_i32_1 : i32, i32, i32
  }
  func.func @transform_2(%arg0: i32, %arg1: i32) -> (i32, i32, i32) {
    %c0_i32 = arith.constant 0 : i32
    %c0_i32_0 = arith.constant 0 : i32
    %c0_i32_1 = arith.constant 0 : i32
    %c0_i32_2 = arith.constant 0 : i32
    return %c0_i32, %c0_i32_0, %c0_i32_1 : i32, i32, i32
  }
  func.func @transform_3(%arg0: i32, %arg1: i32) -> (i32, i32, i32) {
    %c0_i32 = arith.constant 0 : i32
    %c0_i32_0 = arith.constant 0 : i32
    %c0_i32_1 = arith.constant 0 : i32
    %c0_i32_2 = arith.constant 0 : i32
    return %c0_i32, %c0_i32_0, %c0_i32_1 : i32, i32, i32
  }
  func.func @transform_4(%arg0: i32, %arg1: i32) -> (i32, i32) {
    %c0_i32 = arith.constant 0 : i32
    %c0_i32_0 = arith.constant 0 : i32
    %c0_i32_1 = arith.constant 0 : i32
    return %c0_i32, %c0_i32_0 : i32, i32
  }
  func.func @transform_5(%arg0: i32, %arg1: i32) -> (i32, i32) {
    %c0_i32 = arith.constant 0 : i32
    %c0_i32_0 = arith.constant 0 : i32
    %c0_i32_1 = arith.constant 0 : i32
    return %c0_i32, %c0_i32_0 : i32, i32
  }
  func.func @transform_6(%arg0: i32, %arg1: i32) -> (i32, i32) {
    %c0_i32 = arith.constant 0 : i32
    %c0_i32_0 = arith.constant 0 : i32
    return %c0_i32, %arg1 : i32, i32
  }
  func.func @transform_7(%arg0: i32, %arg1: i32) -> (i32, i32) {
    %c0_i32 = arith.constant 0 : i32
    %c0_i32_0 = arith.constant 0 : i32
    return %c0_i32, %arg1 : i32, i32
  }
  func.func @transform_8(%arg0: i32, %arg1: i32) -> (i32, i32) {
    %c0_i32 = arith.constant 0 : i32
    return %arg0, %arg1 : i32, i32
  }
}

</mosaic_0001>

<bundles_post_ra>
// kernel: tpu_custom_call.1
= control target key start
LH: loop header
LB: loop body
LE: loop exit
PB: predicated region body
PF: predicated region fallthrough
CT: control target
= control target key end

     0   :  { %13 = vsyncpa [#allocation5], 0  ;;  %s6394_s0 = inlined_call_operand.hbm [shape: f32[192,128], index: 0, kind: input, shape index: {}]   ;;  %s6395_s1 = inlined_call_operand.hbm [shape: f32[4,128,128], index: 1, kind: input, shape index: {}]   ;;  %s6396_s2 = inlined_call_operand.hbm [shape: f32[4,128,128], index: 2, kind: input, shape index: {}]   ;;  %s6397_s3 = inlined_call_operand.vmem [shape: f32[4,1,128], index: 3, kind: input, shape index: {}]   ;;  %s6398_s4 = inlined_call_operand.vmem [shape: f32[1,128], index: 4, kind: input, shape index: {}]   ;;  %s6399_s5 = inlined_call_operand.vmem [shape: f32[1,128], index: 5, kind: input, shape index: {}]   ;;  %s6400_s6 = inlined_call_operand.hbm [shape: f32[128,128], index: 6, kind: input, shape index: {}]   ;;  %s6401_s7 = inlined_call_operand.vmem [shape: f32[1,128], index: 7, kind: input, shape index: {}]   ;;  %s6402_s8 = inlined_call_operand.hbm [shape: f32[8,128], index: 8, kind: output, shape index: {}]  }
   0x1   :  { %14 = vsyncpa [#allocation8], 0 }
   0x2   :  { %15 = vsyncpa [#allocation11], 0 }
   0x3   :  { %16 = vsyncpa [#allocation6], 0  ;;  %s4779_s27 = smov [#allocation7]   ;;  %s4780_s29 = smov [#allocation4]  }
   0x4   :  { %s34_s28 = sshll.u32 %s4779_s27, 4  ;;  %s22_s30 = sshll.u32 %s4780_s29, 4  ;;  %s35_s28 = int_to_ptr.vmem [resolvable:$true] %s34_s28  ;;  %s23_s30 = int_to_ptr.vmem [resolvable:$true] %s22_s30 }
   0x5   :  { %s4679_s9 = scalar_lea.vmem %s35_s28, 8192  ;;  %p4684_p1 = scmp.lt.s32.totalorder %s35_s28, %s35_s28 }
   0x6   :  { %p4680_p0 = scmp.ne.s32.totalorder %s35_s28, %s4679_s9  ;;  %p4685_p2 = scmp.lt.s32.totalorder %s4679_s9, %s4679_s9 }
   0x8   :  { %p4686_p3 = por %p4685_p2, %p4684_p1 }
   0xa   :  { %p4687_p4 = pnand %p4686_p3, %p4680_p0 }
   0xc   :  { %4690 = shalt.err (!%p4687_p4)
}
   0xd   :  { %s4781_s10 = smov 128   ;;  %s4782_s11 = smov 8  }
   0xe   :  { %40 = dma.hbm_to_vmem [thread:$0]  %s6395_s1, 8192, %s35_s28, [#allocation8], %s4781_s10, %s4781_s10, %s4782_s11  }
   0xf   :  { %s4699_s14 = scalar_lea.vmem %s23_s30, 3072  ;;  %p4704_p6 = scmp.lt.s32.totalorder %s23_s30, %s23_s30 }
  0x10   :  { %p4700_p5 = scmp.ne.s32.totalorder %s23_s30, %s4699_s14  ;;  %p4705_p7 = scmp.lt.s32.totalorder %s4699_s14, %s4699_s14 }
  0x12   :  { %p4706_p8 = por %p4705_p7, %p4704_p6 }
  0x14   :  { %p4707_p9 = pnand %p4706_p8, %p4700_p5 }
  0x16   :  { %4710 = shalt.err (!%p4707_p9)
}
  0x17   :  { %28 = dma.hbm_to_vmem [thread:$0]  %s6394_s0, 3072, %s23_s30, [#allocation5], %s4781_s10, %s4781_s10, %s4782_s11  }
  0x18   :  { %s4783_s17 = smov [#allocation9]   ;;  %s4784_s19 = smov [#allocation10]  }
  0x19   :  { %s46_s18 = sshll.u32 %s4783_s17, 4  ;;  %s64_s20 = sshll.u32 %s4784_s19, 4  ;;  %s47_s18 = int_to_ptr.vmem [resolvable:$true] %s46_s18  ;;  %s65_s20 = int_to_ptr.vmem [resolvable:$true] %s64_s20 }
  0x1a   :  { %s4719_s1 = scalar_lea.vmem %s47_s18, 8192  ;;  %p4724_p11 = scmp.lt.s32.totalorder %s47_s18, %s47_s18 }
  0x1b   :  { %p4720_p10 = scmp.ne.s32.totalorder %s47_s18, %s4719_s1  ;;  %p4725_p12 = scmp.lt.s32.totalorder %s4719_s1, %s4719_s1 }
  0x1d   :  { %p4726_p13 = por %p4725_p12, %p4724_p11 }
  0x1f   :  { %p4727_p0 = pnand %p4726_p13, %p4720_p10 }
  0x21   :  { %4730 = shalt.err (!%p4727_p0)
}
  0x22   :  { %52 = dma.hbm_to_vmem [thread:$0]  %s6396_s2, 8192, %s47_s18, [#allocation8], %s4781_s10, %s4781_s10, %s4782_s11  }
  0x23   :  { %s4739_s0 = scalar_lea.vmem %s65_s20, 2048  ;;  %p4744_p2 = scmp.lt.s32.totalorder %s65_s20, %s65_s20 }
  0x24   :  { %p4740_p1 = scmp.ne.s32.totalorder %s65_s20, %s4739_s0  ;;  %p4745_p3 = scmp.lt.s32.totalorder %s4739_s0, %s4739_s0 }
  0x26   :  { %p4746_p4 = por %p4745_p3, %p4744_p2 }
  0x28   :  { %p4747_p5 = pnand %p4746_p4, %p4740_p1 }
  0x2a   :  { %4750 = shalt.err (!%p4747_p5)
}
  0x2b   :  { %70 = dma.hbm_to_vmem [thread:$0]  %s6400_s6, 2048, %s65_s20, [#allocation11], %s4781_s10, %s4781_s10, %s4782_s11  }
  0x2c   :  { %4771 = dma.done.wait [#allocation5], 3072  }
  0x2d   :  { %4772 = vsyncadd [#allocation5], 4294964224 }
  0x2e   :  { %4773 = dma.done.wait [#allocation8], 16384  }
  0x2f   :  { %4774 = vsyncadd [#allocation8], 4294950912 }
  0x30   :  { %4775 = dma.done.wait [#allocation11], 2048  }
  0x31   :  { %4776 = vsyncadd [#allocation11], 4294965248  ;;  %v4785_v0 = vmov 0.0   ;;  %v915_v1 = vld [vmem:[#allocation9 + $0x78] sm:$0xff]  ;;  %v914_v3 = vld [vmem:[#allocation9 + $0x70] sm:$0xff]  ;;  %s4787_s12 = smov [#allocation12]  }
  0x32   :  { %89 = vst [vmem:[#allocation3] sm:$0xff] %v4785_v0  ;;  %90 = vst [vmem:[#allocation3 + $0x8] sm:$0xff] %v4785_v0  ;;  %v899_v2 = vld [vmem:[#allocation7 + $0x78] sm:$0xff]  ;;  %3984 = vmatprep.subr.mxu0 %v915_v1  ;;  %v898_v4 = vld [vmem:[#allocation7 + $0x70] sm:$0xff]  ;;  %s3529_s13 = sshll.u32 %s4787_s12, 4  ;;  %s3530_s13 = int_to_ptr.vmem [resolvable:$true] %s3529_s13 }
  0x33   :  { %4052 = vmatprep.subr.mxu1 %v899_v2  ;;  %3985 = vmatpush3.msra.mxu0 %v915_v1  ;;  %v913_v5 = vld [vmem:[#allocation9 + $0x68] sm:$0xff]  ;;  %v912_v7 = vld [vmem:[#allocation9 + $0x60] sm:$0xff]  ;;  %v911_v9 = vld [vmem:[#allocation9 + $0x58] sm:$0xff]  ;;  %s4751_s14 = scalar_lea.vmem %s3530_s13, 128  ;;  %p4756_p7 = scmp.lt.s32.totalorder %s3530_s13, %s3530_s13 }
  0x34   :  { %4053 = vmatpush3.msra.mxu1 %v899_v2  ;;  %v897_v6 = vld [vmem:[#allocation7 + $0x68] sm:$0xff]  ;;  %3986 = vmatprep.subr.mxu0 %v914_v3  ;;  %v896_v8 = vld [vmem:[#allocation7 + $0x60] sm:$0xff]  ;;  %v895_v10 = vld [vmem:[#allocation7 + $0x58] sm:$0xff]  ;;  %p4752_p6 = scmp.ne.s32.totalorder %s3530_s13, %s4751_s14  ;;  %p4757_p8 = scmp.lt.s32.totalorder %s4751_s14, %s4751_s14 }
  0x35   :  { %4054 = vmatprep.subr.mxu1 %v898_v4  ;;  %3987 = vmatpush3.msra.mxu0 %v914_v3  ;;  %v910_v11 = vld [vmem:[#allocation9 + $0x50] sm:$0xff]  ;;  %v909_v13 = vld [vmem:[#allocation9 + $0x48] sm:$0xff]  ;;  %v908_v15 = vld [vmem:[#allocation9 + $0x40] sm:$0xff] }
  0x36   :  { %4055 = vmatpush3.msra.mxu1 %v898_v4  ;;  %3988 = vmatprep.subr.mxu0 %v913_v5  ;;  %v894_v12 = vld [vmem:[#allocation7 + $0x50] sm:$0xff]  ;;  %v893_v14 = vld [vmem:[#allocation7 + $0x48] sm:$0xff]  ;;  %v892_v16 = vld [vmem:[#allocation7 + $0x40] sm:$0xff]  ;;  %p4758_p9 = por %p4757_p8, %p4756_p7 }
  0x37   :  { %4056 = vmatprep.subr.mxu1 %v897_v6  ;;  %3989 = vmatpush3.msra.mxu0 %v913_v5  ;;  %v4859_v17 = vld [vmem:[#allocation4] sm:$0xff]  ;;  %v4862_v18 = vld [vmem:[#allocation4 + $0x8] sm:$0xff]  ;;  %v4864_v19 = vld [vmem:[#allocation4 + $0x10] sm:$0xff] }
  0x38   :  { %4057 = vmatpush3.msra.mxu1 %v897_v6  ;;  %3990 = vmatprep.subr.mxu0 %v912_v7  ;;  %836 = vst [vmem:[#allocation3 + $0x10] sm:$0xff] %v4859_v17  ;;  %v4866_v20 = vld [vmem:[#allocation4 + $0x18] sm:$0xff]  ;;  %837 = vst [vmem:[#allocation3 + $0x18] sm:$0xff] %v4862_v18  ;;  %v4871_v23 = vld [vmem:[#allocation4 + $0x20] sm:$0xff]  ;;  %p4759_p10 = pnand %p4758_p9, %p4752_p6 }
  0x39   :  { %4058 = vmatprep.subr.mxu1 %v896_v8  ;;  %3991 = vmatpush3.msra.mxu0 %v912_v7  ;;  %v907_v21 = vld [vmem:[#allocation9 + $0x38] sm:$0xff]  ;;  %838 = vst [vmem:[#allocation3 + $0x20] sm:$0xff] %v4864_v19  ;;  %839 = vst [vmem:[#allocation3 + $0x28] sm:$0xff] %v4866_v20  ;;  %v4873_v24 = vld [vmem:[#allocation4 + $0x28] sm:$0xff] }
  0x3a   :  { %4059 = vmatpush3.msra.mxu1 %v896_v8  ;;  %3992 = vmatprep.subr.mxu0 %v911_v9  ;;  %v891_v22 = vld [vmem:[#allocation7 + $0x38] sm:$0xff]  ;;  %v4875_v25 = vld [vmem:[#allocation4 + $0x30] sm:$0xff]  ;;  %840 = vst [vmem:[#allocation3 + $0x30] sm:$0xff] %v4871_v23  ;;  %841 = vst [vmem:[#allocation3 + $0x38] sm:$0xff] %v4873_v24 }
  0x3b   :  { %4060 = vmatprep.subr.mxu1 %v895_v10  ;;  %3993 = vmatpush3.msra.mxu0 %v911_v9  ;;  %842 = vst [vmem:[#allocation3 + $0x40] sm:$0xff] %v4875_v25  ;;  %v4880_v26 = vld [vmem:[#allocation4 + $0x38] sm:$0xff]  ;;  %v4882_v27 = vld [vmem:[#allocation4 + $0x40] sm:$0xff]  ;;  %v4884_v28 = vld [vmem:[#allocation4 + $0x48] sm:$0xff] }
  0x3c   :  { %4061 = vmatpush3.msra.mxu1 %v895_v10  ;;  %3994 = vmatprep.subr.mxu0 %v910_v11  ;;  %v906_v29 = vld [vmem:[#allocation9 + $0x30] sm:$0xff]  ;;  %843 = vst [vmem:[#allocation3 + $0x48] sm:$0xff] %v4880_v26  ;;  %844 = vst [vmem:[#allocation3 + $0x50] sm:$0xff] %v4882_v27  ;;  %v4891_v32 = vld [vmem:[#allocation4 + $0x58] sm:$0xff] }
  0x3d   :  { %4062 = vmatprep.subr.mxu1 %v894_v12  ;;  %3995 = vmatpush3.msra.mxu0 %v910_v11  ;;  %v890_v30 = vld [vmem:[#allocation7 + $0x30] sm:$0xff]  ;;  %845 = vst [vmem:[#allocation3 + $0x58] sm:$0xff] %v4884_v28  ;;  %v4893_v33 = vld [vmem:[#allocation4 + $0x60] sm:$0xff]  ;;  %847 = vst [vmem:[#allocation3 + $0x68] sm:$0xff] %v4891_v32 }
  0x3e   :  { %4063 = vmatpush3.msra.mxu1 %v894_v12  ;;  %3996 = vmatprep.subr.mxu0 %v909_v13  ;;  %v4889_v31 = vld [vmem:[#allocation4 + $0x50] sm:$0xff]  ;;  %848 = vst [vmem:[#allocation3 + $0x70] sm:$0xff] %v4893_v33  ;;  %v4898_v34 = vld [vmem:[#allocation4 + $0x68] sm:$0xff]  ;;  %v4902_v36 = vld [vmem:[#allocation4 + $0x78] sm:$0xff] }
  0x3f   :  { %4064 = vmatprep.subr.mxu1 %v893_v14  ;;  %3997 = vmatpush3.msra.mxu0 %v909_v13  ;;  %846 = vst [vmem:[#allocation3 + $0x60] sm:$0xff] %v4889_v31  ;;  %v4900_v35 = vld [vmem:[#allocation4 + $0x70] sm:$0xff]  ;;  %v905_v37 = vld [vmem:[#allocation9 + $0x28] sm:$0xff]  ;;  %849 = vst [vmem:[#allocation3 + $0x78] sm:$0xff] %v4898_v34 }
  0x40   :  { %4065 = vmatpush3.msra.mxu1 %v893_v14  ;;  %3998 = vmatprep.subr.mxu0 %v908_v15  ;;  %850 = vst [vmem:[#allocation3 + $0x80] sm:$0xff] %v4900_v35  ;;  %851 = vst [vmem:[#allocation3 + $0x88] sm:$0xff] %v4902_v36  ;;  %v4907_v38 = vld [vmem:[#allocation4 + $0x80] sm:$0xff]  ;;  %v4909_v39 = vld [vmem:[#allocation4 + $0x88] sm:$0xff] }
  0x41   :  { %4066 = vmatprep.subr.mxu1 %v892_v16  ;;  %3999 = vmatpush3.msra.mxu0 %v908_v15  ;;  %v4911_v40 = vld [vmem:[#allocation4 + $0x90] sm:$0xff]  ;;  %852 = vst [vmem:[#allocation3 + $0x90] sm:$0xff] %v4907_v38  ;;  %853 = vst [vmem:[#allocation3 + $0x98] sm:$0xff] %v4909_v39  ;;  %v4916_v41 = vld [vmem:[#allocation4 + $0x98] sm:$0xff] }
  0x42   :  { %4067 = vmatpush3.msra.mxu1 %v892_v16  ;;  %4000 = vmatprep.subr.mxu0 %v907_v21  ;;  %854 = vst [vmem:[#allocation3 + $0xa0] sm:$0xff] %v4911_v40  ;;  %v4918_v42 = vld [vmem:[#allocation4 + $0xa0] sm:$0xff]  ;;  %v4920_v43 = vld [vmem:[#allocation4 + $0xa8] sm:$0xff]  ;;  %855 = vst [vmem:[#allocation3 + $0xa8] sm:$0xff] %v4916_v41 }
  0x43   :  { %4068 = vmatprep.subr.mxu1 %v891_v22  ;;  %4001 = vmatpush3.msra.mxu0 %v907_v21  ;;  %v889_v44 = vld [vmem:[#allocation7 + $0x28] sm:$0xff]  ;;  %856 = vst [vmem:[#allocation3 + $0xb0] sm:$0xff] %v4918_v42  ;;  %857 = vst [vmem:[#allocation3 + $0xb8] sm:$0xff] %v4920_v43  ;;  %v4925_v45 = vld [vmem:[#allocation4 + $0xb0] sm:$0xff] }
  0x44   :  { %4069 = vmatpush3.msra.mxu1 %v891_v22  ;;  %v4927_v46 = vld [vmem:[#allocation4 + $0xb8] sm:$0xff]  ;;  %4002 = vmatprep.subr.mxu0 %v906_v29  ;;  %858 = vst [vmem:[#allocation3 + $0xc0] sm:$0xff] %v4925_v45  ;;  %v904_v47 = vld [vmem:[#allocation9 + $0x20] sm:$0xff]  ;;  %v902_v51 = vld [vmem:[#allocation9 + $0x10] sm:$0xff] }
  0x45   :  { %4070 = vmatprep.subr.mxu1 %v890_v30  ;;  %859 = vst [vmem:[#allocation3 + $0xc8] sm:$0xff] %v4927_v46  ;;  %4003 = vmatpush3.msra.mxu0 %v906_v29  ;;  %v888_v48 = vld [vmem:[#allocation7 + $0x20] sm:$0xff]  ;;  %v903_v49 = vld [vmem:[#allocation9 + $0x18] sm:$0xff]  ;;  %v886_v52 = vld [vmem:[#allocation7 + $0x10] sm:$0xff] }
  0x46   :  { %4071 = vmatpush3.msra.mxu1 %v890_v30  ;;  %4004 = vmatprep.subr.mxu0 %v905_v37  ;;  %v887_v50 = vld [vmem:[#allocation7 + $0x18] sm:$0xff]  ;;  %v901_v53 = vld [vmem:[#allocation9 + $0x8] sm:$0xff]  ;;  %v900_v55 = vld [vmem:[#allocation9] sm:$0xff] }
  0x47   :  { %4072 = vmatprep.subr.mxu1 %v889_v44  ;;  %4005 = vmatpush3.msra.mxu0 %v905_v37  ;;  %v885_v54 = vld [vmem:[#allocation7 + $0x8] sm:$0xff]  ;;  %v884_v56 = vld [vmem:[#allocation7] sm:$0xff]  ;;  %v1446_v60 = vld [vmem:[#allocation9 + $0xf8] sm:$0xff] }
  0x48   :  { %4073 = vmatpush3.msra.mxu1 %v889_v44  ;;  %4006 = vmatprep.subr.mxu0 %v904_v47  ;;  %v860_v57 = vld [vmem:[#allocation3 + $0xf] sm:$0xff]  ;;  %v861_v58 = vld [vmem:[#allocation3 + $0x17] sm:$0xff]  ;;  %v862_v59 = vld [vmem:[#allocation3 + $0x1f] sm:$0xff] }
  0x49   :  { %4074 = vmatprep.subr.mxu1 %v888_v48  ;;  %4007 = vmatpush3.msra.mxu0 %v904_v47  ;;  %v1429_v61 = vld [vmem:[#allocation7 + $0xf8] sm:$0xff]  ;;  %v1445_v1 = vld [vmem:[#allocation9 + $0xf0] sm:$0xff]  ;;  %v865_v3 = vld [vmem:[#allocation3 + $0x37] sm:$0xff] }
  0x4a   :  { %4075 = vmatpush3.msra.mxu1 %v888_v48  ;;  %4008 = vmatprep.subr.mxu0 %v903_v49  ;;  %v863_v62 = vld [vmem:[#allocation3 + $0x27] sm:$0xff]  ;;  %v864_v63 = vld [vmem:[#allocation3 + $0x2f] sm:$0xff]  ;;  %v866_v4 = vld [vmem:[#allocation3 + $0x3f] sm:$0xff] }
  0x4b   :  { %4076 = vmatprep.subr.mxu1 %v887_v50  ;;  %4009 = vmatpush3.msra.mxu0 %v903_v49  ;;  %v1428_v2 = vld [vmem:[#allocation7 + $0xf0] sm:$0xff]  ;;  %v1444_v5 = vld [vmem:[#allocation9 + $0xe8] sm:$0xff]  ;;  %v868_v8 = vld [vmem:[#allocation3 + $0x4f] sm:$0xff] }
  0x4c   :  { %4077 = vmatpush3.msra.mxu1 %v887_v50  ;;  %4010 = vmatprep.subr.mxu0 %v902_v51  ;;  %v1427_v6 = vld [vmem:[#allocation7 + $0xe8] sm:$0xff]  ;;  %v867_v7 = vld [vmem:[#allocation3 + $0x47] sm:$0xff]  ;;  %v1443_v9 = vld [vmem:[#allocation9 + $0xe0] sm:$0xff]  ;;  %v6403_v50 = vlaneseq }
  0x4d   :  { %4078 = vmatprep.subr.mxu1 %v886_v52  ;;  %4011 = vmatpush3.msra.mxu0 %v902_v51  ;;  %v1426_v10 = vld [vmem:[#allocation7 + $0xe0] sm:$0xff]  ;;  %v870_v12 = vld [vmem:[#allocation3 + $0x5f] sm:$0xff]  ;;  %v1442_v13 = vld [vmem:[#allocation9 + $0xd8] sm:$0xff] }
  0x4e   :  { %4079 = vmatpush3.msra.mxu1 %v886_v52  ;;  %4012 = vmatprep.subr.mxu0 %v901_v53  ;;  %v869_v11 = vld [vmem:[#allocation3 + $0x57] sm:$0xff]  ;;  %v1425_v14 = vld [vmem:[#allocation7 + $0xd8] sm:$0xff]  ;;  %v1416_v47 = vld [vmem:[#allocation7 + $0x90] sm:$0xff]  ;;  %v4956_v51 = vshrl.u32 %v6403_v50, 7 }
  0x4f   :  { %4080 = vmatprep.subr.mxu1 %v885_v54  ;;  %4013 = vmatpush3.msra.mxu0 %v901_v53  ;;  %v871_v15 = vld [vmem:[#allocation3 + $0x67] sm:$0xff]  ;;  %v872_v16 = vld [vmem:[#allocation3 + $0x6f] sm:$0xff]  ;;  %v1440_v21 = vld [vmem:[#allocation9 + $0xc8] sm:$0xff] }
  0x50   :  { %4081 = vmatpush3.msra.mxu1 %v885_v54  ;;  %4014 = vmatprep.subr.mxu0 %v900_v55  ;;  %v1423_v22 = vld [vmem:[#allocation7 + $0xc8] sm:$0xff]  ;;  %v1438_v29 = vld [vmem:[#allocation9 + $0xb8] sm:$0xff]  ;;  %v1418_v44 = vld [vmem:[#allocation7 + $0xa0] sm:$0xff]  ;;  %v93_v52 = vadd.s32 8, %v4956_v51 }
  0x51   :  { %4082 = vmatprep.subr.mxu1 %v884_v56  ;;  %4015 = vmatpush3.msra.mxu0 %v900_v55  ;;  %v1421_v30 = vld [vmem:[#allocation7 + $0xb8] sm:$0xff]  ;;  %v1415_v48 = vld [vmem:[#allocation7 + $0x88] sm:$0xff]  ;;  %v1414_v49 = vld [vmem:[#allocation7 + $0x80] sm:$0xff] }
  0x52   :  { %4016 = vmatprep.mubr.f32.mxu0 %v4859_v17  ;;  %4083 = vmatpush3.msra.mxu1 %v884_v56  ;;  %v1441_v17 = vld [vmem:[#allocation9 + $0xd0] sm:$0xff]  ;;  %v4959_v53 = vld [vmem:[#allocation9 + $0x178] sm:$0xff]  ;;  %v4965_v55 = vmul.u32.u64.low 2863311531, %v93_v52  ;;  %v4966_v56 = vmul.u32.u64.high 2863311531, %v93_v52, %v4965_v55 }
  0x53   :  { %4084 = vmatprep.mubr.f32.mxu1 %v860_v57  ;;  %4017 = vmatmul.mubr.f32.vlgmr.msra.gmra.mxu0 %v4862_v18  ;;  %v1424_v18 = vld [vmem:[#allocation7 + $0xd0] sm:$0xff]  ;;  %v4961_v54 = vld [vmem:[#allocation7 + $0x178] sm:$0xff] }
  0x54   :  { %4085 = vmatmul.mubr.f32.vlgmr.msra.gmra.mxu1 %v861_v58  ;;  %4019 = vmatprep.mubr.f32.mxu0 %v4864_v19  ;;  %v873_v19 = vld [vmem:[#allocation3 + $0x77] sm:$0xff]  ;;  %v883_v37 = vld [vmem:[#allocation3 + $0xc7] sm:$0xff]  ;;  %v4969_v57 = vmul.u32.u64.low 2863311531, %v4956_v51  ;;  %v4970_v58 = vmul.u32.u64.high 2863311531, %v4956_v51, %v4969_v57 }
  0x55   :  { %4087 = vmatprep.mubr.f32.mxu1 %v862_v59  ;;  %4120 = vmatprep.subr.mxu0 %v1446_v60  ;;  %v95_v59 = vadd.s32 24, %v4956_v51 }
  0x56   :  { %4188 = vmatprep.subr.mxu1 %v1429_v61  ;;  %4121 = vmatpush3.msra.mxu0 %v1446_v60  ;;  %v94_v60 = vadd.s32 16, %v4956_v51 }
  0x57   :  { %4189 = vmatpush3.msra.mxu1 %v1429_v61  ;;  %4020 = vmatmul.mubr.f32.gmra.mxu0 %v4866_v20  ;;  %v874_v20 = vld [vmem:[#allocation3 + $0x7f] sm:$0xff]  ;;  %v133_v61 = vshrl.u32 %v4966_v56, 4 }
  0x58   :  { %4088 = vmatmul.mubr.f32.gmra.mxu1 %v863_v62  ;;  %4022 = vmatprep.mubr.f32.mxu0 %v4871_v23  ;;  %v875_v23 = vld [vmem:[#allocation3 + $0x87] sm:$0xff] }
  0x59   :  { %4090 = vmatprep.mubr.f32.mxu1 %v864_v63  ;;  %4122 = vmatprep.subr.mxu0 %v1445_v1  ;;  %v4975_v62 = vmul.u32.u64.low 2863311531, %v95_v59  ;;  %v4976_v63 = vmul.u32.u64.high 2863311531, %v95_v59, %v4975_v62 }
  0x5a   :  { %4190 = vmatprep.subr.mxu1 %v1428_v2  ;;  %4123 = vmatpush3.msra.mxu0 %v1445_v1  ;;  %v122_v1 = vshrl.u32 %v4970_v58, 4 }
  0x5b   :  { %4191 = vmatpush3.msra.mxu1 %v1428_v2  ;;  %4023 = vmatmul.mubr.f32.gmra.mxu0 %v4873_v24  ;;  %v876_v24 = vld [vmem:[#allocation3 + $0x8f] sm:$0xff] }
  0x5c   :  { %4091 = vmatmul.mubr.f32.gmra.mxu1 %v865_v3  ;;  %4025 = vmatprep.mubr.f32.mxu0 %v4875_v25  ;;  %v1439_v25 = vld [vmem:[#allocation9 + $0xc0] sm:$0xff]  ;;  %v4979_v2 = vmul.u32.u64.low 2863311531, %v94_v60  ;;  %v4980_v3 = vmul.u32.u64.high 2863311531, %v94_v60, %v4979_v2 }
  0x5d   :  { %4093 = vmatprep.mubr.f32.mxu1 %v866_v4  ;;  %4124 = vmatprep.subr.mxu0 %v1444_v5  ;;  %v134_v4 = vmul.u32 24, %v133_v61 }
  0x5e   :  { %4192 = vmatprep.subr.mxu1 %v1427_v6  ;;  %4125 = vmatpush3.msra.mxu0 %v1444_v5  ;;  %v123_v5 = vmul.u32 24, %v122_v1 }
  0x5f   :  { %4193 = vmatpush3.msra.mxu1 %v1427_v6  ;;  %4026 = vmatmul.mubr.f32.gmra.mxu0 %v4880_v26  ;;  %v1422_v26 = vld [vmem:[#allocation7 + $0xc0] sm:$0xff]  ;;  %v97_v6 = vadd.s32 40, %v4956_v51 }
  0x60   :  { %4094 = vmatmul.mubr.f32.gmra.mxu1 %v867_v7  ;;  %4028 = vmatprep.mubr.f32.mxu0 %v4882_v27  ;;  %v877_v27 = vld [vmem:[#allocation3 + $0x97] sm:$0xff]  ;;  %v4984_v7 = vadd.s32 32, %v4956_v51 }
  0x61   :  { %4096 = vmatprep.mubr.f32.mxu1 %v868_v8  ;;  %4126 = vmatprep.subr.mxu0 %v1443_v9  ;;  %v135_v8 = vsub.s32 %v93_v52, %v134_v4 }
  0x62   :  { %4194 = vmatprep.subr.mxu1 %v1426_v10  ;;  %4127 = vmatpush3.msra.mxu0 %v1443_v9  ;;  %v155_v9 = vshrl.u32 %v4976_v63, 4 }
  0x63   :  { %4195 = vmatpush3.msra.mxu1 %v1426_v10  ;;  %4029 = vmatmul.mubr.f32.gmra.mxu0 %v4884_v28  ;;  %v878_v28 = vld [vmem:[#allocation3 + $0x9f] sm:$0xff]  ;;  %v124_v10 = vsub.s32 %v4956_v51, %v123_v5  ;;  %vm381_vm0 = vcmp.ne.s32.totalorder %v135_v8, 0  ;;  %vm405_vm1 = vcmp.lt.s32.totalorder %v135_v8, 0 }
  0x64   :  { %4097 = vmatmul.mubr.f32.gmra.mxu1 %v869_v11  ;;  %4031 = vmatprep.mubr.f32.mxu0 %v4889_v31  ;;  %v879_v31 = vld [vmem:[#allocation3 + $0xa7] sm:$0xff]  ;;  %vm429_vm4 = vmand %vm405_vm1, %vm381_vm0 }
  0x65   :  { %4099 = vmatprep.mubr.f32.mxu1 %v870_v12  ;;  %4128 = vmatprep.subr.mxu0 %v1442_v13  ;;  %v4988_v11 = vmul.u32.u64.low 2863311531, %v97_v6  ;;  %v4989_v12 = vmul.u32.u64.high 2863311531, %v97_v6, %v4988_v11  ;;  %vm380_vm2 = vcmp.ne.s32.totalorder %v124_v10, 0  ;;  %vm404_vm3 = vcmp.lt.s32.totalorder %v124_v10, 0 }
  0x66   :  { %4196 = vmatprep.subr.mxu1 %v1425_v14  ;;  %4129 = vmatpush3.msra.mxu0 %v1442_v13  ;;  %v4992_v13 = vadd.s32 48, %v4956_v51  ;;  %vm428_vm5 = vmand %vm404_vm3, %vm380_vm2 }
  0x67   :  { %4197 = vmatpush3.msra.mxu1 %v1425_v14  ;;  %4032 = vmatmul.mubr.f32.gmra.mxu0 %v4891_v32  ;;  %v880_v32 = vld [vmem:[#allocation3 + $0xaf] sm:$0xff]  ;;  %v144_v14 = vshrl.u32 %v4980_v3, 4 }
  0x68   :  { %4100 = vmatmul.mubr.f32.gmra.mxu1 %v871_v15  ;;  %4034 = vmatprep.mubr.f32.mxu0 %v4893_v33  ;;  %v1437_v33 = vld [vmem:[#allocation9 + $0xb0] sm:$0xff] }
  0x69   :  { %4102 = vmatprep.mubr.f32.mxu1 %v872_v16  ;;  %4130 = vmatprep.subr.mxu0 %v1441_v17  ;;  %v4996_v15 = vmul.u32.u64.low 2863311531, %v4984_v7  ;;  %v4997_v16 = vmul.u32.u64.high 2863311531, %v4984_v7, %v4996_v15 }
  0x6a   :  { %4198 = vmatprep.subr.mxu1 %v1424_v18  ;;  %4131 = vmatpush3.msra.mxu0 %v1441_v17  ;;  %v5000_v17 = vadd.s32 56, %v4956_v51 }
  0x6b   :  { %4199 = vmatpush3.msra.mxu1 %v1424_v18  ;;  %4035 = vmatmul.mubr.f32.gmra.mxu0 %v4898_v34  ;;  %v1420_v34 = vld [vmem:[#allocation7 + $0xb0] sm:$0xff]  ;;  %v5003_v18 = vadd.s32 64, %v4956_v51 }
  0x6c   :  { %4103 = vmatmul.mubr.f32.gmra.mxu1 %v873_v19  ;;  %4037 = vmatprep.mubr.f32.mxu0 %v4900_v35  ;;  %v881_v35 = vld [vmem:[#allocation3 + $0xb7] sm:$0xff]  ;;  %v156_v19 = vmul.u32 24, %v155_v9 }
  0x6d   :  { %4105 = vmatprep.mubr.f32.mxu1 %v874_v20  ;;  %4132 = vmatprep.subr.mxu0 %v1440_v21 }
  0x6e   :  { %4200 = vmatprep.subr.mxu1 %v1423_v22  ;;  %4133 = vmatpush3.msra.mxu0 %v1440_v21  ;;  %v5006_v20 = vmul.u32.u64.low 2863311531, %v4992_v13  ;;  %v5007_v21 = vmul.u32.u64.high 2863311531, %v4992_v13, %v5006_v20 }
  0x6f   :  { %4201 = vmatpush3.msra.mxu1 %v1423_v22  ;;  %4038 = vmatmul.mubr.f32.gmra.mxu0 %v4902_v36  ;;  %v882_v36 = vld [vmem:[#allocation3 + $0xbf] sm:$0xff]  ;;  %v145_v22 = vmul.u32 24, %v144_v14 }
  0x70   :  { %4106 = vmatmul.mubr.f32.gmra.mxu1 %v875_v23  ;;  %4040 = vmatprep.mubr.f32.mxu0 %v4907_v38  ;;  %v1436_v38 = vld [vmem:[#allocation9 + $0xa8] sm:$0xff] }
  0x71   :  { %4108 = vmatprep.mubr.f32.mxu1 %v876_v24  ;;  %4134 = vmatprep.subr.mxu0 %v1439_v25  ;;  %v5010_v23 = vmul.u32.u64.low 2863311531, %v5000_v17  ;;  %v5011_v24 = vmul.u32.u64.high 2863311531, %v5000_v17, %v5010_v23 }
  0x72   :  { %4202 = vmatprep.subr.mxu1 %v1422_v26  ;;  %4135 = vmatpush3.msra.mxu0 %v1439_v25  ;;  %v5014_v25 = vadd.s32 72, %v4956_v51 }
  0x73   :  { %4203 = vmatpush3.msra.mxu1 %v1422_v26  ;;  %4041 = vmatmul.mubr.f32.gmra.mxu0 %v4909_v39  ;;  %v1435_v39 = vld [vmem:[#allocation9 + $0xa0] sm:$0xff] }
  0x74   :  { %4109 = vmatmul.mubr.f32.gmra.mxu1 %v877_v27  ;;  %4043 = vmatprep.mubr.f32.mxu0 %v4911_v40  ;;  %v1434_v40 = vld [vmem:[#allocation9 + $0x98] sm:$0xff]  ;;  %v5017_v26 = vmul.u32.u64.low 2863311531, %v5003_v18  ;;  %v5018_v27 = vmul.u32.u64.high 2863311531, %v5003_v18, %v5017_v26 }
  0x75   :  { %4111 = vmatprep.mubr.f32.mxu1 %v878_v28  ;;  %4136 = vmatprep.subr.mxu0 %v1438_v29  ;;  %v5021_v28 = vadd.s32 80, %v4956_v51 }
  0x76   :  { %4204 = vmatprep.subr.mxu1 %v1421_v30  ;;  %4137 = vmatpush3.msra.mxu0 %v1438_v29  ;;  %v453_v29 = vadd.s32 24, %v135_v8 }
  0x77   :  { %4205 = vmatpush3.msra.mxu1 %v1421_v30  ;;  %4044 = vmatmul.mubr.f32.gmra.mxu0 %v4916_v41  ;;  %v1433_v41 = vld [vmem:[#allocation9 + $0x90] sm:$0xff]  ;;  %v452_v30 = vadd.s32 24, %v124_v10 }
  0x78   :  { %4112 = vmatmul.mubr.f32.gmra.mxu1 %v879_v31  ;;  %4046 = vmatprep.mubr.f32.mxu0 %v4918_v42  ;;  %v1419_v42 = vld [vmem:[#allocation7 + $0xa8] sm:$0xff]  ;;  %v157_v31 = vsub.s32 %v95_v59, %v156_v19  ;;  %v5063_v59 = vadd.s32 104, %v4956_v51 }
  0x79   :  { %4114 = vmatprep.mubr.f32.mxu1 %v880_v32  ;;  %4138 = vmatprep.subr.mxu0 %v1437_v33  ;;  %v177_v32 = vshrl.u32 %v4989_v12, 4  ;;  %v5089_v12 = vadd.s32 112, %v4956_v51 }
  0x7a   :  { %4206 = vmatprep.subr.mxu1 %v1420_v34  ;;  %4139 = vmatpush3.msra.mxu0 %v1437_v33  ;;  %v5025_v33 = vadd.s32 88, %v4956_v51  ;;  %vm383_vm6 = vcmp.ne.s32.totalorder %v157_v31, 0  ;;  %vm407_vm7 = vcmp.lt.s32.totalorder %v157_v31, 0  ;;  %v455_v58 = vadd.s32 24, %v157_v31 }
  0x7b   :  { %4207 = vmatpush3.msra.mxu1 %v1420_v34  ;;  %4047 = vmatmul.mubr.f32.gmra.mxu0 %v4920_v43  ;;  %v1432_v43 = vld [vmem:[#allocation9 + $0x88] sm:$0xff]  ;;  %v146_v34 = vsub.s32 %v94_v60, %v145_v22  ;;  %vm5058_vm12 = vmand %vm407_vm7, %vm383_vm6  ;;  %v5096_v22 = vadd.s32 120, %v4956_v51 }
  0x7c   :  { %4115 = vmatmul.mubr.f32.gmra.mxu1 %v881_v35  ;;  %4049 = vmatprep.mubr.f32.mxu0 %v4925_v45  ;;  %v1431_v45 = vld [vmem:[#allocation9 + $0x80] sm:$0xff]  ;;  %v166_v35 = vshrl.u32 %v4997_v16, 4 }
  0x7d   :  { %4117 = vmatprep.mubr.f32.mxu1 %v882_v36  ;;  %4140 = vmatprep.subr.mxu0 %v1436_v38  ;;  %vm382_vm8 = vcmp.ne.s32.totalorder %v146_v34, 0  ;;  %vm406_vm9 = vcmp.lt.s32.totalorder %v146_v34, 0  ;;  %v454_v56 = vadd.s32 24, %v146_v34 }
  0x7e   :  { %4141 = vmatpush3.msra.mxu0 %v1436_v38  ;;  %4208 = vmatprep.subr.mxu1 %v1419_v42  ;;  %vm430_vm13 = vmand %vm406_vm9, %vm382_vm8 }
  0x7f   :  { %4050 = vmatmul.mubr.f32.gmra.mxu0 %v4927_v46  ;;  %4142 = vmatprep.subr.mxu0 %v1435_v39  ;;  %v1417_v46 = vld [vmem:[#allocation7 + $0x98] sm:$0xff] }
  0x80   :  { %4118 = vmatmul.mubr.f32.gmra.mxu1 %v883_v37  ;;  %4143 = vmatpush3.msra.mxu0 %v1435_v39  ;;  %v5029_v36 = vmul.u32.u64.low 2863311531, %v5014_v25  ;;  %v5030_v37 = vmul.u32.u64.high 2863311531, %v5014_v25, %v5029_v36  ;;  %v5033_v38 = vmul.u32.u64.low 2863311531, %v5021_v28  ;;  %v5034_v39 = vmul.u32.u64.high 2863311531, %v5021_v28, %v5033_v38 }
  0x81   :  { %4144 = vmatprep.subr.mxu0 %v1434_v40  ;;  %4209 = vmatpush3.msra.mxu1 %v1419_v42  ;;  %v5041_v42 = vsel %vm428_vm5, %v452_v30, %v124_v10 }
  0x82   :  { %4145 = vmatpush3.msra.mxu0 %v1434_v40  ;;  %4210 = vmatprep.subr.mxu1 %v1418_v44  ;;  %v5037_v40 = vadd.s32 96, %v4956_v51  ;;  %vm500_vm11 = vcmp.lt.s32.totalorder %v5041_v42, 9  ;;  %v221_v1 = vshrl.u32 %v5030_v37, 4  ;;  %v232_v5 = vshrl.u32 %v5034_v39, 4  ;;  %v5260_v39 = vld [vmem:[%s6397_s3] ss:$0 sm:$0xff] }
  0x83   :  { %4146 = vmatprep.subr.mxu0 %v1433_v41  ;;  %4211 = vmatpush3.msra.mxu1 %v1418_v44  ;;  %v188_v44 = vshrl.u32 %v5007_v21, 4  ;;  %v5073_v3 = vsel %vm500_vm11, 1.0, %v4785_v0 }
  0x84   :  { %4147 = vmatpush3.msra.mxu0 %v1433_v41  ;;  %4212 = vmatprep.subr.mxu1 %v1417_v46  ;;  %v5039_v41 = vsel %vm429_vm4, %v453_v29, %v135_v8  ;;  %v5052_v52 = vmul.u32.u64.low 2863311531, %v5037_v40  ;;  %v5053_v55 = vmul.u32.u64.high 2863311531, %v5037_v40, %v5052_v52  ;;  %v5076_v8 = vsel %vm430_vm13, %v454_v56, %v146_v34 }
  0x85   :  { %4148 = vmatprep.subr.mxu0 %v1432_v43  ;;  %4213 = vmatpush3.msra.mxu1 %v1417_v46  ;;  %vm501_vm10 = vcmp.lt.s32.totalorder %v5039_v41, 9  ;;  %v189_v61 = vmul.u32 24, %v188_v44  ;;  %v222_v15 = vmul.u32 24, %v221_v1  ;;  %vm502_vm5 = vcmp.lt.s32.totalorder %v5076_v8, 9 }
  0x86   :  { %4149 = vmatpush3.msra.mxu0 %v1432_v43  ;;  %4214 = vmatprep.subr.mxu1 %v1416_v47  ;;  %v178_v43 = vmul.u32 24, %v177_v32  ;;  %v5070_v2 = vsel %vm501_vm10, 1.0, %v4785_v0  ;;  %v233_v19 = vmul.u32 24, %v232_v5  ;;  %v254_v20 = vshrl.u32 %v5053_v55, 4 }
  0x87   :  { %4150 = vmatprep.subr.mxu0 %v1431_v45  ;;  %4215 = vmatpush3.msra.mxu1 %v1416_v47  ;;  %v167_v47 = vmul.u32 24, %v166_v35  ;;  %v190_v10 = vsub.s32 %v4992_v13, %v189_v61  ;;  %v223_v26 = vsub.s32 %v5014_v25, %v222_v15  ;;  %v5117_v34 = vadd.s32 128, %v4956_v51 }
  0x88   :  { %4151 = vmatpush3.msra.mxu0 %v1431_v45  ;;  %4216 = vmatprep.subr.mxu1 %v1415_v48  ;;  %v5045_v45 = vmul.u32.u64.low 2863311531, %v5025_v33  ;;  %v5046_v46 = vmul.u32.u64.high 2863311531, %v5025_v33, %v5045_v45  ;;  %v179_v60 = vsub.s32 %v97_v6, %v178_v43  ;;  %v5080_v6 = vsel %vm5058_vm12, %v455_v58, %v157_v31 }
  0x89   :  { %4217 = vmatpush3.msra.mxu1 %v1415_v48  ;;  %4256 = vmatprep.subr.mxu0 %v4959_v53  ;;  %v199_v48 = vshrl.u32 %v5011_v24, 4  ;;  %v168_v62 = vsub.s32 %v4984_v7, %v167_v47  ;;  %v5083_v7 = vmul.u32.u64.low 2863311531, %v5063_v59  ;;  %v5084_v9 = vmul.u32.u64.high 2863311531, %v5063_v59, %v5083_v7 }
  0x8a   :  { %4218 = vmatprep.subr.mxu1 %v1414_v49  ;;  %vm385_vm14 = vcmp.ne.s32.totalorder %v179_v60, 0  ;;  %v243_v11 = vshrl.u32 %v5046_v46, 4  ;;  %vm409_vm0 = vcmp.lt.s32.totalorder %v179_v60, 0  ;;  %vm503_vm2 = vcmp.lt.s32.totalorder %v5080_v6, 9 }
  0x8b   :  { %4219 = vmatpush3.msra.mxu1 %v1414_v49  ;;  %v210_v49 = vshrl.u32 %v5018_v27, 4  ;;  %v200_v63 = vmul.u32 24, %v199_v48  ;;  %vm384_vm15 = vcmp.ne.s32.totalorder %v168_v62, 0  ;;  %vm408_vm1 = vcmp.lt.s32.totalorder %v168_v62, 0  ;;  %vm5099_vm3 = vmand %vm409_vm0, %vm385_vm14 }
  0x8c   :  { %4324 = vmatprep.subr.mxu1 %v4961_v54  ;;  %v456_v21 = vadd.s32 24, %v168_v62  ;;  %v457_v13 = vadd.s32 24, %v179_v60  ;;  %vm386_vm4 = vcmp.ne.s32.totalorder %v190_v10, 0  ;;  %vm432_vm6 = vmand %vm408_vm1, %vm384_vm15  ;;  %vm410_vm7 = vcmp.lt.s32.totalorder %v190_v10, 0 }
  0x8d   :  { %v211_v4 = vmul.u32 24, %v210_v49  ;;  %v201_v14 = vsub.s32 %v5000_v17, %v200_v63  ;;  %v244_v17 = vmul.u32 24, %v243_v11  ;;  %v234_v27 = vsub.s32 %v5021_v28, %v233_v19  ;;  %vm5131_vm12 = vmand %vm410_vm7, %vm386_vm4 }
  0x8e   :  { %v255_v29 = vmul.u32 24, %v254_v20  ;;  %v265_v30 = vshrl.u32 %v5084_v9, 4  ;;  %v5113_v31 = vmul.u32.u64.low 2863311531, %v5096_v22  ;;  %v5114_v32 = vmul.u32.u64.high 2863311531, %v5096_v22, %v5113_v31 }
  0x8f   :  { %v212_v16 = vsub.s32 %v5003_v18, %v211_v4  ;;  %v5104_v24 = vmul.u32.u64.low 2863311531, %v5089_v12  ;;  %v5105_v18 = vmul.u32.u64.high 2863311531, %v5089_v12, %v5104_v24  ;;  %vm387_vm8 = vcmp.ne.s32.totalorder %v201_v14, 0 }
  0x90   :  { %vm411_vm9 = vcmp.lt.s32.totalorder %v201_v14, 0  ;;  %v5122_v35 = vsel %vm503_vm2, 1.0, %v4785_v0  ;;  %v5124_v25 = vsel %vm432_vm6, %v456_v21, %v168_v62  ;;  %v5128_v28 = vsel %vm5099_vm3, %v457_v13, %v179_v60 }
  0x91   :  { %vm388_vm10 = vcmp.ne.s32.totalorder %v212_v16, 0  ;;  %vm412_vm11 = vcmp.lt.s32.totalorder %v212_v16, 0  ;;  %v245_v37 = vsub.s32 %v5025_v33, %v244_v17  ;;  %v458_v38 = vadd.s32 24, %v190_v10  ;;  %vm5138_vm13 = vmand %vm411_vm9, %vm387_vm8 }
  0x92   :  { %v459_v43 = vadd.s32 24, %v201_v14  ;;  %v460_v44 = vadd.s32 24, %v212_v16  ;;  %vm389_vm14 = vcmp.ne.s32.totalorder %v223_v26, 0  ;;  %vm436_vm15 = vmand %vm412_vm11, %vm388_vm10  ;;  %vm413_vm0 = vcmp.lt.s32.totalorder %v223_v26, 0 }
  0x93   :  { %vm390_vm1 = vcmp.ne.s32.totalorder %v234_v27, 0  ;;  %vm414_vm2 = vcmp.lt.s32.totalorder %v234_v27, 0  ;;  %v256_v45 = vsub.s32 %v5037_v40, %v255_v29  ;;  %v266_v46 = vmul.u32 24, %v265_v30  ;;  %vm5166_vm7 = vmand %vm413_vm0, %vm389_vm14 }
  0x94   :  { %v5146_v33 = vmul.u32.u64.low 2863311531, %v5117_v34  ;;  %v5147_v47 = vmul.u32.u64.high 2863311531, %v5117_v34, %v5146_v33  ;;  %v5150_v48 = vadd.s32 136, %v4956_v51  ;;  %vm505_vm3 = vcmp.lt.s32.totalorder %v5128_v28, 9  ;;  %vm5172_vm8 = vmand %vm414_vm2, %vm390_vm1 }
  0x95   :  { %vm391_vm4 = vcmp.ne.s32.totalorder %v245_v37, 0  ;;  %vm415_vm6 = vcmp.lt.s32.totalorder %v245_v37, 0  ;;  %v276_v49 = vshrl.u32 %v5105_v18, 4  ;;  %v5156_v52 = vsel %vm5131_vm12, %v458_v38, %v190_v10 }
  0x96   :  { %v5160_v40 = vsel %vm5138_vm13, %v459_v43, %v201_v14  ;;  %v5162_v55 = vsel %vm436_vm15, %v460_v44, %v212_v16  ;;  %v461_v57 = vadd.s32 24, %v223_v26  ;;  %v462_v60 = vadd.s32 24, %v234_v27  ;;  %vm5176_vm11 = vmand %vm415_vm6, %vm391_vm4 }
  0x97   :  { %v463_v61 = vadd.s32 24, %v245_v37  ;;  %vm392_vm9 = vcmp.ne.s32.totalorder %v256_v45, 0  ;;  %vm416_vm10 = vcmp.lt.s32.totalorder %v256_v45, 0  ;;  %v267_v63 = vsub.s32 %v5063_v59, %v266_v46 }
  0x98   :  { %v287_v1 = vshrl.u32 %v5114_v32, 4  ;;  %v5183_v4 = vmul.u32.u64.low 2863311531, %v5150_v48  ;;  %v5184_v5 = vmul.u32.u64.high 2863311531, %v5150_v48, %v5183_v4  ;;  %v5189_v7 = vsel %vm502_vm5, 1.0, %v4785_v0  ;;  %vm440_vm0 = vmand %vm416_vm10, %vm392_vm9  ;;  %v5249_v32 = vld [vmem:[#allocation3] sm:$0xff] }
  0x99   :  { %vm504_vm12 = vcmp.lt.s32.totalorder %v5124_v25, 9  ;;  %v464_v9 = vadd.s32 24, %v256_v45  ;;  %v277_v10 = vmul.u32 24, %v276_v49  ;;  %v5195_v11 = vsel %vm505_vm3, 1.0, %v4785_v0 }
  0x9a   :  { %vm506_vm13 = vcmp.lt.s32.totalorder %v5156_v52, 9  ;;  %vm507_vm14 = vcmp.lt.s32.totalorder %v5160_v40, 9  ;;  %vm508_vm15 = vcmp.lt.s32.totalorder %v5162_v55, 9  ;;  %v5203_v59 = vsel %vm5166_vm7, %v461_v57, %v223_v26 }
  0x9b   :  { %v5207_v14 = vsel %vm5172_vm8, %v462_v60, %v234_v27  ;;  %v5211_v15 = vsel %vm5176_vm11, %v463_v61, %v245_v37  ;;  %v5214_v16 = vadd.s32 144, %v4956_v51  ;;  %vm393_vm5 = vcmp.ne.s32.totalorder %v267_v63, 0 }
  0x9c   :  { %vm417_vm1 = vcmp.lt.s32.totalorder %v267_v63, 0  ;;  %v288_v19 = vmul.u32 24, %v287_v1  ;;  %v298_v20 = vshrl.u32 %v5147_v47, 4  ;;  %v5220_v21 = vsel %vm504_vm12, 1.0, %v4785_v0 }
  0x9d   :  { %v5223_v13 = vsel %vm506_vm13, 1.0, %v4785_v0  ;;  %v5225_v23 = vsel %vm440_vm0, %v464_v9, %v256_v45  ;;  %v278_v17 = vsub.s32 %v5089_v12, %v277_v10  ;;  %v5231_v24 = vsel %vm507_vm14, 1.0, %v4785_v0  ;;  %vm441_vm6 = vmand %vm417_vm1, %vm393_vm5 }
  0x9e   :  { %6426 = vst [vmem:[#allocation17_spill] sm:$0xff] %v5225_v23  ;;  %vm509_vm2 = vcmp.lt.s32.totalorder %v5203_v59, 9  ;;  %vm510_vm3 = vcmp.lt.s32.totalorder %v5207_v14, 9  ;;  %v465_v18 = vadd.s32 24, %v267_v63  ;;  %v5238_v26 = vsel %vm508_vm15, 1.0, %v4785_v0 }
  0x9f   :  { %vm511_vm4 = vcmp.lt.s32.totalorder %v5211_v15, 9  ;;  %v5243_v12 = vmul.u32.u64.low 2863311531, %v5214_v16  ;;  %v5244_v27 = vmul.u32.u64.high 2863311531, %v5214_v16, %v5243_v12  ;;  %vm512_vm7 = vcmp.lt.s32.totalorder %v5225_v23, 9 }
  0xa0   :  { %v289_v29 = vsub.s32 %v5096_v22, %v288_v19  ;;  %v299_v30 = vmul.u32 24, %v298_v20  ;;  %v309_v31 = vshrl.u32 %v5184_v5, 4  ;;  %v5252_v0 = vsel %vm509_vm2, 1.0, %v5249_v32 }
  0xa1   :  { %v5255_v36 = vsel %vm510_vm3, 1.0, %v5249_v32  ;;  %vm394_vm8 = vcmp.ne.s32.totalorder %v278_v17, 0  ;;  %vm418_vm9 = vcmp.lt.s32.totalorder %v278_v17, 0  ;;  %v5263_v22 = vsel %vm511_vm4, 1.0, %v5249_v32 }
  0xa2   :  { %v5265_v43 = vsel %vm441_vm6, %v465_v18, %v267_v63  ;;  %v5268_v44 = vadd.s32 152, %v4956_v51  ;;  %v5271_v45 = vadd.s32 160, %v4956_v51  ;;  %v5276_v33 = vsel %vm512_vm7, 1.0, %v5249_v32  ;;  %vm5282_vm10 = vmand %vm418_vm9, %vm394_vm8 }
  0xa3   :  { %v466_v47 = vadd.s32 24, %v278_v17  ;;  %v5279_v49 = vadd.s32 168, %v4956_v51  ;;  %vm395_vm11 = vcmp.ne.s32.totalorder %v289_v29, 0  ;;  %vm419_vm12 = vcmp.lt.s32.totalorder %v289_v29, 0 }
  0xa4   :  { %v5287_v60 = vsub.s32 %v5117_v34, %v299_v30  ;;  %v310_v61 = vmul.u32 24, %v309_v31  ;;  %vm513_vm13 = vcmp.lt.s32.totalorder %v5265_v43, 9  ;;  %v5292_v1 = vadd.s32 176, %v4956_v51  ;;  %vm443_vm14 = vmand %vm419_vm12, %vm395_vm11 }
  0xa5   :  { %v467_v9 = vadd.s32 24, %v289_v29  ;;  %v5295_v10 = vmul.u32.u64.low 2863311531, %v5268_v44  ;;  %v5296_v19 = vmul.u32.u64.high 2863311531, %v5268_v44, %v5295_v10  ;;  %v5299_v20 = vadd.s32 184, %v4956_v51 }
  0xa6   :  { %v5304_v30 = vsel %vm5282_vm10, %v466_v47, %v278_v17  ;;  %vm396_vm15 = vcmp.ne.s32.totalorder %v5287_v60, 0  ;;  %v5313_v51 = vsub.s32 %v5150_v48, %v310_v61  ;;  %vm420_vm5 = vcmp.lt.s32.totalorder %v5287_v60, 0 }
  0xa7   :  { %6429 = vst [vmem:[#allocation18_spill] sm:$0xff] %v5304_v30  ;;  %vm514_vm0 = vcmp.lt.s32.totalorder %v5304_v30, 9  ;;  %vm5352_vm3 = vmand %vm420_vm5, %vm396_vm15 }
  0xa8   :  { %vm397_vm1 = vcmp.ne.s32.totalorder %v5313_v51, 0  ;;  %vm421_vm2 = vcmp.lt.s32.totalorder %v5313_v51, 0 }
  0xa9   :  { %vm5367_vm4 = vmand %vm421_vm2, %vm397_vm1 }
 0x113   :  { %v4018_v37 = vpop.f32.mrf.mxu0 }
 0x114   :  { %v4086_v38 = vpop.f32.mrf.mxu1 }
 0x115   :  { %v1173_v46 = vadd.f32 %v4086_v38, %v4018_v37  ;;  %v982_v56 = vpop.f32.mrf.mxu0  ;;  %v5309_v38 = vsel %vm513_vm13, 1.0, %v5249_v32 }
 0x116   :  { %v1167_v57 = vpop.f32.mrf.mxu1 }
 0x117   :  { %v1294_v62 = vadd.f32 %v5260_v39, %v1173_v46  ;;  %v1168_v63 = vadd.f32 %v1167_v57, %v982_v56  ;;  %v4021_v4 = vpop.f32.mrf.mxu0  ;;  %v320_v46 = vshrl.u32 %v5244_v27, 4 }
 0x118   :  { %v4089_v5 = vpop.f32.mrf.mxu1 }
 0x119   :  { %v1318_v34 = vmax.f32 %v1294_v62, 0.0  ;;  %v1293_v18 = vadd.f32 %v5260_v39, %v1168_v63  ;;  %v1183_v12 = vadd.f32 %v4089_v5, %v4021_v4  ;;  %v992_v31 = vpop.f32.mrf.mxu0  ;;  %v5319_v63 = vsel %vm443_vm14, %v467_v9, %v289_v29 }
 0x11a   :  { %v1177_v37 = vpop.f32.mrf.mxu1  ;;  %v5323_v4 = vadd.s32 24, %v5287_v60  ;;  %v5329_v29 = vmul.u32.u64.low 2863311531, %v5279_v49  ;;  %v5330_v9 = vmul.u32.u64.high 2863311531, %v5279_v49, %v5329_v29  ;;  %vm515_vm6 = vcmp.lt.s32.totalorder %v5319_v63, 9 }
 0x11b   :  { %v1342_v56 = vmul.f32 %v5070_v2, %v1318_v34  ;;  %v1317_v57 = vmax.f32 %v1293_v18, 0.0  ;;  %v1296_v17 = vadd.f32 %v5260_v39, %v1183_v12  ;;  %v1178_v47 = vadd.f32 %v1177_v37, %v992_v31  ;;  %v4024_v58 = vpop.f32.mrf.mxu0 }
 0x11c   :  { %v4092_v62 = vpop.f32.mrf.mxu1  ;;  %v321_v34 = vmul.u32 24, %v320_v46  ;;  %v331_v46 = vshrl.u32 %v5296_v19, 4  ;;  %v5346_v19 = vsel %vm514_vm0, 1.0, %v5249_v32 }
 0x11d   :  { %1366 = vst [vmem:[#allocation3 + $0x18] sm:$0xff] %v1342_v56  ;;  %v1320_v48 = vmax.f32 %v1296_v17, 0.0  ;;  %v1295_v27 = vadd.f32 %v5260_v39, %v1178_v47  ;;  %v1193_v2 = vadd.f32 %v4092_v62, %v4024_v58  ;;  %v1341_v61 = vmul.f32 %v5073_v3, %v1317_v57  ;;  %v1002_v5 = vpop.f32.mrf.mxu0  ;;  %v1977_v17 = vld [vmem:[#allocation9 + $0x170] sm:$0xff] }
 0x11e   :  { %v1187_v10 = vpop.f32.mrf.mxu1  ;;  %v5337_v57 = vmul.u32.u64.low 2863311531, %v5271_v45  ;;  %v5338_v58 = vmul.u32.u64.high 2863311531, %v5271_v45, %v5337_v57 }
 0x11f   :  { %v1319_v18 = vmax.f32 %v1295_v27, 0.0  ;;  %v1298_v12 = vadd.f32 %v5260_v39, %v1193_v2  ;;  %v1188_v31 = vadd.f32 %v1187_v10, %v1002_v5  ;;  %1365 = vst [vmem:[#allocation3 + $0x10] sm:$0xff] %v1341_v61  ;;  %4152 = vmatprep.mubr.f32.mxu0 %v1341_v61  ;;  %v1344_v37 = vmul.f32 %v5122_v35, %v1320_v48  ;;  %v4027_v47 = vpop.f32.mrf.mxu0  ;;  %v1976_v35 = vld [vmem:[#allocation9 + $0x168] sm:$0xff]  ;;  %v1960_v5 = vld [vmem:[#allocation7 + $0x170] sm:$0xff] }
 0x120   :  { %v4095_v3 = vpop.f32.mrf.mxu1  ;;  %4153 = vmatmul.mubr.f32.vlgmr.msra.gmra.mxu0 %v1342_v56 }
 0x121   :  { %v1322_v62 = vmax.f32 %v1298_v12, 0.0  ;;  %v1297_v27 = vadd.f32 %v5260_v39, %v1188_v31  ;;  %v1203_v2 = vadd.f32 %v4095_v3, %v4027_v47  ;;  %v1343_v61 = vmul.f32 %v5189_v7, %v1319_v18  ;;  %1368 = vst [vmem:[#allocation3 + $0x28] sm:$0xff] %v1344_v37  ;;  %4257 = vmatpush3.msra.mxu0 %v4959_v53  ;;  %v1012_v48 = vpop.f32.mrf.mxu0  ;;  %v1975_v3 = vld [vmem:[#allocation9 + $0x160] sm:$0xff] }
 0x122   :  { %v1197_v56 = vpop.f32.mrf.mxu1  ;;  %v469_v7 = vadd.s32 24, %v5313_v51  ;;  %v5358_v53 = vmul.u32.u64.low 2863311531, %v5299_v20  ;;  %v5359_v10 = vmul.u32.u64.high 2863311531, %v5299_v20, %v5358_v53  ;;  %4258 = vmatprep.subr.mxu0 %v1977_v17 }
 0x123   :  { %v1321_v29 = vmax.f32 %v1297_v27, 0.0  ;;  %v1300_v18 = vadd.f32 %v5260_v39, %v1203_v2  ;;  %v1198_v12 = vadd.f32 %v1197_v56, %v1012_v48  ;;  %1367 = vst [vmem:[#allocation3 + $0x20] sm:$0xff] %v1343_v61  ;;  %4155 = vmatprep.mubr.f32.mxu0 %v1343_v61  ;;  %v1346_v31 = vmul.f32 %v5195_v11, %v1322_v62  ;;  %v4030_v57 = vpop.f32.mrf.mxu0 }
 0x124   :  { %4259 = vmatpush3.msra.mxu0 %v1977_v17  ;;  %v4098_v53 = vpop.f32.mrf.mxu1  ;;  %v5372_v27 = vsub.s32 %v5214_v16, %v321_v34  ;;  %v332_v2 = vmul.u32 24, %v331_v46  ;;  %v5375_v61 = vmul.u32.u64.low 2863311531, %v5292_v1  ;;  %v5376_v11 = vmul.u32.u64.high 2863311531, %v5292_v1, %v5375_v61 }
 0x125   :  { %4156 = vmatmul.mubr.f32.gmra.mxu0 %v1344_v37  ;;  %4260 = vmatprep.subr.mxu0 %v1976_v35  ;;  %v1324_v62 = vmax.f32 %v1300_v18, 0.0  ;;  %v1299_v48 = vadd.f32 %v5260_v39, %v1198_v12  ;;  %v1213_v56 = vadd.f32 %v4098_v53, %v4030_v57  ;;  %v1345_v50 = vmul.f32 %v5220_v21, %v1321_v29  ;;  %v1022_v17 = vpop.f32.mrf.mxu0 }
 0x126   :  { %1370 = vst [vmem:[#allocation3 + $0x38] sm:$0xff] %v1346_v31  ;;  %4261 = vmatpush3.msra.mxu0 %v1976_v35  ;;  %v1207_v30 = vpop.f32.mrf.mxu1  ;;  %v1389_v37 = vld [vmem:[#allocation3 + $0xe] sm:$0xff]  ;;  %v1390_v23 = vld [vmem:[#allocation3 + $0x16] sm:$0xff]  ;;  %v5385_v16 = vsel %vm5352_vm3, %v5323_v4, %v5287_v60  ;;  %v5390_v34 = vsel %vm5367_vm4, %v469_v7, %v5313_v51  ;;  %v353_v21 = vshrl.u32 %v5330_v9, 4  ;;  %vm398_vm7 = vcmp.ne.s32.totalorder %v5372_v27, 0 }
 0x127   :  { %4262 = vmatprep.subr.mxu0 %v1975_v3  ;;  %v1323_v46 = vmax.f32 %v1299_v48, 0.0  ;;  %v1302_v35 = vadd.f32 %v5260_v39, %v1213_v56  ;;  %v1208_v29 = vadd.f32 %v1207_v30, %v1022_v17  ;;  %1369 = vst [vmem:[#allocation3 + $0x30] sm:$0xff] %v1345_v50  ;;  %4158 = vmatprep.mubr.f32.mxu0 %v1345_v50  ;;  %v1974_v60 = vld [vmem:[#allocation9 + $0x158] sm:$0xff]  ;;  %v4033_v4 = vpop.f32.mrf.mxu0  ;;  %vm422_vm8 = vcmp.lt.s32.totalorder %v5372_v27, 0 }
 0x128   :  { %4220 = vmatprep.mubr.f32.mxu1 %v1389_v37  ;;  %v1348_v18 = vmul.f32 %v5231_v24, %v1324_v62  ;;  %v4101_v12 = vpop.f32.mrf.mxu1  ;;  %v5398_v51 = vsub.s32 %v5268_v44, %v332_v2  ;;  %v342_v30 = vshrl.u32 %v5338_v58, 4  ;;  %4263 = vmatpush3.msra.mxu0 %v1975_v3  ;;  %vm517_vm9 = vcmp.lt.s32.totalorder %v5390_v34, 9  ;;  %v1959_v3 = vld [vmem:[#allocation7 + $0x168] sm:$0xff]  ;;  %v1973_v62 = vld [vmem:[#allocation9 + $0x150] sm:$0xff]  ;;  %vm5418_vm12 = vmand %vm422_vm8, %vm398_vm7 }
 0x129   :  { %4159 = vmatmul.mubr.f32.gmra.mxu0 %v1346_v31  ;;  %4221 = vmatmul.mubr.f32.vlgmr.msra.gmra.mxu1 %v1390_v23  ;;  %v1326_v9 = vmax.f32 %v1302_v35, 0.0  ;;  %v1301_v50 = vadd.f32 %v5260_v39, %v1208_v29  ;;  %v1223_v7 = vadd.f32 %v4101_v12, %v4033_v4  ;;  %v1347_v24 = vmul.f32 %v5223_v13, %v1323_v46  ;;  %v1032_v23 = vpop.f32.mrf.mxu0 }
 0x12a   :  { %1372 = vst [vmem:[#allocation3 + $0x48] sm:$0xff] %v1348_v18  ;;  %4325 = vmatpush3.msra.mxu1 %v4961_v54  ;;  %v1217_v31 = vpop.f32.mrf.mxu1  ;;  %v1391_v47 = vld [vmem:[#allocation3 + $0x1e] sm:$0xff]  ;;  %v1392_v57 = vld [vmem:[#allocation3 + $0x26] sm:$0xff]  ;;  %v470_v44 = vadd.s32 24, %v5372_v27  ;;  %v354_v53 = vmul.u32 24, %v353_v21  ;;  %v375_v58 = vshrl.u32 %v5359_v10, 4  ;;  %4264 = vmatprep.subr.mxu0 %v1974_v60 }
 0x12b   :  { %4326 = vmatprep.subr.mxu1 %v1960_v5  ;;  %v1325_v2 = vmax.f32 %v1301_v50, 0.0  ;;  %v1304_v13 = vadd.f32 %v5260_v39, %v1223_v7  ;;  %v1218_v61 = vadd.f32 %v1217_v31, %v1032_v23  ;;  %1371 = vst [vmem:[#allocation3 + $0x40] sm:$0xff] %v1347_v24  ;;  %4161 = vmatprep.mubr.f32.mxu0 %v1347_v24  ;;  %v4036_v48 = vpop.f32.mrf.mxu0  ;;  %vm399_vm10 = vcmp.ne.s32.totalorder %v5398_v51, 0  ;;  %v1958_v24 = vld [vmem:[#allocation7 + $0x160] sm:$0xff]  ;;  %v1972_v23 = vld [vmem:[#allocation9 + $0x148] sm:$0xff] }
 0x12c   :  { %4223 = vmatprep.mubr.f32.mxu1 %v1391_v47  ;;  %v1350_v54 = vmul.f32 %v5252_v0, %v1326_v9  ;;  %v4104_v56 = vpop.f32.mrf.mxu1  ;;  %vm423_vm11 = vcmp.lt.s32.totalorder %v5398_v51, 0  ;;  %v343_v10 = vmul.u32 24, %v342_v30  ;;  %v364_v17 = vshrl.u32 %v5376_v11, 4  ;;  %4327 = vmatpush3.msra.mxu1 %v1960_v5 }
 0x12d   :  { %4162 = vmatmul.mubr.f32.gmra.mxu0 %v1348_v18  ;;  %4224 = vmatmul.mubr.f32.gmra.mxu1 %v1392_v57  ;;  %v1328_v37 = vmax.f32 %v1304_v13, 0.0  ;;  %v1303_v21 = vadd.f32 %v5260_v39, %v1218_v61  ;;  %v1233_v46 = vadd.f32 %v4104_v56, %v4036_v48  ;;  %v1349_v35 = vmul.f32 %v5238_v26, %v1325_v2  ;;  %v1042_v29 = vpop.f32.mrf.mxu0  ;;  %vm5438_vm14 = vmand %vm423_vm11, %vm399_vm10 }
 0x12e   :  { %1374 = vst [vmem:[#allocation3 + $0x58] sm:$0xff] %v1350_v54  ;;  %4265 = vmatpush3.msra.mxu0 %v1974_v60  ;;  %v1227_v18 = vpop.f32.mrf.mxu1  ;;  %v1393_v11 = vld [vmem:[#allocation3 + $0x2e] sm:$0xff]  ;;  %v1394_v4 = vld [vmem:[#allocation3 + $0x36] sm:$0xff]  ;;  %v5425_v12 = vsel %vm515_vm6, 1.0, %v5249_v32  ;;  %v471_v26 = vadd.s32 24, %v5398_v51  ;;  %v5429_v30 = vsub.s32 %v5279_v49, %v354_v53  ;;  %v376_v9 = vmul.u32 24, %v375_v58  ;;  %4328 = vmatprep.subr.mxu1 %v1959_v3 }
 0x12f   :  { %4266 = vmatprep.subr.mxu0 %v1973_v62  ;;  %v1327_v50 = vmax.f32 %v1303_v21, 0.0  ;;  %v1306_v5 = vadd.f32 %v5260_v39, %v1233_v46  ;;  %v1228_v60 = vadd.f32 %v1227_v18, %v1042_v29  ;;  %1373 = vst [vmem:[#allocation3 + $0x50] sm:$0xff] %v1349_v35  ;;  %4164 = vmatprep.mubr.f32.mxu0 %v1349_v35  ;;  %vm516_vm13 = vcmp.lt.s32.totalorder %v5385_v16, 9  ;;  %v4039_v31 = vpop.f32.mrf.mxu0  ;;  %v1956_v49 = vld [vmem:[#allocation7 + $0x150] sm:$0xff] }
 0x130   :  { %4226 = vmatprep.mubr.f32.mxu1 %v1393_v11  ;;  %v1352_v7 = vmul.f32 %v5263_v22, %v1328_v37  ;;  %v4107_v47 = vpop.f32.mrf.mxu1  ;;  %v5445_v22 = vsel %vm517_vm9, 1.0, %v5249_v32  ;;  %v5450_v57 = vsel %vm5418_vm12, %v470_v44, %v5372_v27  ;;  %v5453_v53 = vsub.s32 %v5271_v45, %v343_v10  ;;  %4329 = vmatpush3.msra.mxu1 %v1959_v3 }
 0x131   :  { %4165 = vmatmul.mubr.f32.gmra.mxu0 %v1350_v54  ;;  %4227 = vmatmul.mubr.f32.gmra.mxu1 %v1394_v4  ;;  %v365_v58 = vmul.u32 24, %v364_v17  ;;  %v1330_v2 = vmax.f32 %v1306_v5, 0.0  ;;  %v1305_v13 = vadd.f32 %v5260_v39, %v1228_v60  ;;  %v1243_v61 = vadd.f32 %v4107_v47, %v4039_v31  ;;  %v1052_v48 = vpop.f32.mrf.mxu0 }
 0x132   :  { %v1351_v54 = vmul.f32 %v5255_v36, %v1327_v50  ;;  %1376 = vst [vmem:[#allocation3 + $0x68] sm:$0xff] %v1352_v7  ;;  %4267 = vmatpush3.msra.mxu0 %v1973_v62  ;;  %v1237_v56 = vpop.f32.mrf.mxu1  ;;  %v1395_v37 = vld [vmem:[#allocation3 + $0x3e] sm:$0xff]  ;;  %v1396_v21 = vld [vmem:[#allocation3 + $0x46] sm:$0xff]  ;;  %v5460_v27 = vsel %vm5438_vm14, %v471_v26, %v5398_v51  ;;  %vm401_vm15 = vcmp.ne.s32.totalorder %v5429_v30, 0  ;;  %vm425_vm0 = vcmp.lt.s32.totalorder %v5429_v30, 0  ;;  %4330 = vmatprep.subr.mxu1 %v1958_v24 }
 0x133   :  { %v5465_v45 = vsub.s32 %v5299_v20, %v376_v9  ;;  %4268 = vmatprep.subr.mxu0 %v1972_v23  ;;  %v1329_v36 = vmax.f32 %v1305_v13, 0.0  ;;  %v1308_v44 = vadd.f32 %v5260_v39, %v1243_v61  ;;  %v1238_v3 = vadd.f32 %v1237_v56, %v1052_v48  ;;  %4229 = vmatprep.mubr.f32.mxu1 %v1395_v37  ;;  %v1957_v51 = vld [vmem:[#allocation7 + $0x158] sm:$0xff]  ;;  %v4042_v10 = vpop.f32.mrf.mxu0  ;;  %vm5481_vm2 = vmand %vm425_vm0, %vm401_vm15 }
 0x134   :  { %1375 = vst [vmem:[#allocation3 + $0x60] sm:$0xff] %v1351_v54  ;;  %4167 = vmatprep.mubr.f32.mxu0 %v1351_v54  ;;  %v1354_v62 = vmul.f32 %v5309_v38, %v1330_v2  ;;  %v4110_v17 = vpop.f32.mrf.mxu1  ;;  %vm400_vm5 = vcmp.ne.s32.totalorder %v5453_v53, 0  ;;  %vm424_vm1 = vcmp.lt.s32.totalorder %v5453_v53, 0  ;;  %v473_v20 = vadd.s32 24, %v5429_v30  ;;  %4331 = vmatpush3.msra.mxu1 %v1958_v24 }
 0x135   :  { %4168 = vmatmul.mubr.f32.gmra.mxu0 %v1352_v7  ;;  %4230 = vmatmul.mubr.f32.gmra.mxu1 %v1396_v21  ;;  %v5473_v46 = vsub.s32 %v5292_v1, %v365_v58  ;;  %v1332_v35 = vmax.f32 %v1308_v44, 0.0  ;;  %v1307_v0 = vadd.f32 %v5260_v39, %v1238_v3  ;;  %v1253_v29 = vadd.f32 %v4110_v17, %v4042_v10  ;;  %v1062_v11 = vpop.f32.mrf.mxu0  ;;  %vm5495_vm7 = vmand %vm424_vm1, %vm400_vm5 }
 0x136   :  { %v1353_v38 = vmul.f32 %v5276_v33, %v1329_v36  ;;  %1378 = vst [vmem:[#allocation3 + $0x78] sm:$0xff] %v1354_v62  ;;  %4269 = vmatpush3.msra.mxu0 %v1972_v23  ;;  %v1247_v1 = vpop.f32.mrf.mxu1  ;;  %v1397_v4 = vld [vmem:[#allocation3 + $0x4e] sm:$0xff]  ;;  %v1398_v26 = vld [vmem:[#allocation3 + $0x56] sm:$0xff]  ;;  %vm519_vm3 = vcmp.lt.s32.totalorder %v5460_v27, 9  ;;  %v472_v9 = vadd.s32 24, %v5453_v53  ;;  %vm403_vm4 = vcmp.ne.s32.totalorder %v5465_v45, 0  ;;  %4332 = vmatprep.subr.mxu1 %v1957_v51 }
 0x137   :  { %vm427_vm6 = vcmp.lt.s32.totalorder %v5465_v45, 0  ;;  %v1331_v33 = vmax.f32 %v1307_v0, 0.0  ;;  %v1310_v50 = vadd.f32 %v5260_v39, %v1253_v29  ;;  %v1248_v5 = vadd.f32 %v1247_v1, %v1062_v11  ;;  %4232 = vmatprep.mubr.f32.mxu1 %v1397_v4  ;;  %v4045_v24 = vpop.f32.mrf.mxu0  ;;  %4333 = vmatpush3.msra.mxu1 %v1957_v51 }
 0x138   :  { %1377 = vst [vmem:[#allocation3 + $0x70] sm:$0xff] %v1353_v38  ;;  %4170 = vmatprep.mubr.f32.mxu0 %v1353_v38  ;;  %v1356_v60 = vmul.f32 %v5425_v12, %v1332_v35  ;;  %v4113_v23 = vpop.f32.mrf.mxu1  ;;  %v5502_v31 = vsel %vm5481_vm2, %v473_v20, %v5429_v30  ;;  %vm402_vm8 = vcmp.ne.s32.totalorder %v5473_v46, 0  ;;  %vm426_vm9 = vcmp.lt.s32.totalorder %v5473_v46, 0  ;;  %vm5513_vm10 = vmand %vm427_vm6, %vm403_vm4  ;;  %4334 = vmatprep.subr.mxu1 %v1956_v49 }
 0x139   :  { %4171 = vmatmul.mubr.f32.gmra.mxu0 %v1354_v62  ;;  %4233 = vmatmul.mubr.f32.gmra.mxu1 %v1398_v26  ;;  %v475_v12 = vadd.s32 24, %v5465_v45  ;;  %v1334_v47 = vmax.f32 %v1310_v50, 0.0  ;;  %v1309_v58 = vadd.f32 %v5260_v39, %v1248_v5  ;;  %v1263_v2 = vadd.f32 %v4113_v23, %v4045_v24  ;;  %v1072_v61 = vpop.f32.mrf.mxu0  ;;  %vm5533_vm12 = vmand %vm426_vm9, %vm402_vm8 }
 0x13a   :  { %v1355_v13 = vmul.f32 %v5346_v19, %v1331_v33  ;;  %1380 = vst [vmem:[#allocation3 + $0x88] sm:$0xff] %v1356_v60  ;;  %v1257_v54 = vpop.f32.mrf.mxu1  ;;  %v3556_v37 = vsel %vm516_vm13, 1.0, %v5249_v32  ;;  %vm518_vm11 = vcmp.lt.s32.totalorder %v5450_v57, 9  ;;  %v5524_v19 = vsel %vm5495_vm7, %v472_v9, %v5453_v53  ;;  %v1955_v53 = vld [vmem:[#allocation7 + $0x148] sm:$0xff]  ;;  %4335 = vmatpush3.msra.mxu1 %v1956_v49 }
 0x13b   :  { %v1399_v48 = vld [vmem:[#allocation3 + $0x5e] sm:$0xff]  ;;  %v1400_v56 = vld [vmem:[#allocation3 + $0x66] sm:$0xff]  ;;  %v474_v21 = vadd.s32 24, %v5473_v46  ;;  %v1333_v36 = vmax.f32 %v1309_v58, 0.0  ;;  %v1312_v44 = vadd.f32 %v5260_v39, %v1263_v2  ;;  %v1258_v3 = vadd.f32 %v1257_v54, %v1072_v61  ;;  %v4048_v10 = vpop.f32.mrf.mxu0  ;;  %4336 = vmatprep.subr.mxu1 %v1955_v53 }
 0x13c   :  { %1379 = vst [vmem:[#allocation3 + $0x80] sm:$0xff] %v1355_v13  ;;  %4173 = vmatprep.mubr.f32.mxu0 %v1355_v13  ;;  %4235 = vmatprep.mubr.f32.mxu1 %v1399_v48  ;;  %v1358_v62 = vmul.f32 %v5445_v22, %v1334_v47  ;;  %v4116_v17 = vpop.f32.mrf.mxu1  ;;  %v3559_v20 = vsel %vm519_vm3, 1.0, %v5249_v32  ;;  %vm521_vm13 = vcmp.lt.s32.totalorder %v5502_v31, 9  ;;  %v5544_v22 = vsel %vm5513_vm10, %v475_v12, %v5465_v45 }
 0x13d   :  { %4174 = vmatmul.mubr.f32.gmra.mxu0 %v1356_v60  ;;  %4236 = vmatmul.mubr.f32.gmra.mxu1 %v1400_v56  ;;  %v1336_v35 = vmax.f32 %v1312_v44, 0.0  ;;  %v1311_v0 = vadd.f32 %v5260_v39, %v1258_v3  ;;  %v1273_v29 = vadd.f32 %v4116_v17, %v4048_v10  ;;  %v1357_v38 = vmul.f32 %v3556_v37, %v1333_v36  ;;  %v1082_v18 = vpop.f32.mrf.mxu0 }
 0x13e   :  { %1382 = vst [vmem:[#allocation3 + $0x98] sm:$0xff] %v1358_v62  ;;  %v1267_v11 = vpop.f32.mrf.mxu1  ;;  %v3558_v26 = vsel %vm518_vm11, 1.0, %v5249_v32  ;;  %vm520_vm14 = vcmp.lt.s32.totalorder %v5524_v19, 9  ;;  %v5554_v45 = vsel %vm5533_vm12, %v474_v21, %v5473_v46  ;;  %v3561_v49 = vsel %vm521_vm13, 1.0, %v5249_v32  ;;  %4337 = vmatpush3.msra.mxu1 %v1955_v53 }
 0x13f   :  { %v1401_v1 = vld [vmem:[#allocation3 + $0x6e] sm:$0xff]  ;;  %v1402_v4 = vld [vmem:[#allocation3 + $0x76] sm:$0xff]  ;;  %v1335_v9 = vmax.f32 %v1311_v0, 0.0  ;;  %v1314_v33 = vadd.f32 %v5260_v39, %v1273_v29  ;;  %v1268_v50 = vadd.f32 %v1267_v11, %v1082_v18  ;;  %1381 = vst [vmem:[#allocation3 + $0x90] sm:$0xff] %v1357_v38  ;;  %4176 = vmatprep.mubr.f32.mxu0 %v1357_v38  ;;  %v1360_v5 = vmul.f32 %v3559_v20, %v1336_v35  ;;  %v4051_v60 = vpop.f32.mrf.mxu0 }
 0x140   :  { %4238 = vmatprep.mubr.f32.mxu1 %v1401_v1  ;;  %v4119_v7 = vpop.f32.mrf.mxu1  ;;  %vm523_vm15 = vcmp.lt.s32.totalorder %v5544_v22, 9  ;;  %v3560_v30 = vsel %vm520_vm14, 1.0, %v5249_v32  ;;  %vm522_vm0 = vcmp.lt.s32.totalorder %v5554_v45, 9  ;;  %v1971_v18 = vld [vmem:[#allocation9 + $0x140] sm:$0xff]  ;;  %v1970_v1 = vld [vmem:[#allocation9 + $0x138] sm:$0xff]  ;;  %vm573_vm5 = vcmp.lt.s32.totalorder %v5039_v41, 11 }
 0x141   :  { %4177 = vmatmul.mubr.f32.gmra.mxu0 %v1358_v62  ;;  %4239 = vmatmul.mubr.f32.gmra.mxu1 %v1402_v4  ;;  %v1338_v46 = vmax.f32 %v1314_v33, 0.0  ;;  %v1313_v24 = vadd.f32 %v5260_v39, %v1268_v50  ;;  %v1283_v23 = vadd.f32 %v4119_v7, %v4051_v60  ;;  %v1359_v12 = vmul.f32 %v3558_v26, %v1335_v9  ;;  %v1092_v47 = vpop.f32.mrf.mxu0  ;;  %v1954_v11 = vld [vmem:[#allocation7 + $0x140] sm:$0xff]  ;;  %v1953_v4 = vld [vmem:[#allocation7 + $0x138] sm:$0xff]  ;;  %v1969_v26 = vld [vmem:[#allocation9 + $0x130] sm:$0xff] }
 0x142   :  { %1384 = vst [vmem:[#allocation3 + $0xa8] sm:$0xff] %v1360_v5  ;;  %v1277_v58 = vpop.f32.mrf.mxu1  ;;  %v3563_v37 = vsel %vm523_vm15, 1.0, %v5249_v32  ;;  %v3562_v51 = vsel %vm522_vm0, 1.0, %v5249_v32  ;;  %4270 = vmatprep.subr.mxu0 %v1971_v18  ;;  %4338 = vmatprep.subr.mxu1 %v1954_v11  ;;  %v1952_v9 = vld [vmem:[#allocation7 + $0x130] sm:$0xff]  ;;  %v1968_v33 = vld [vmem:[#allocation9 + $0x128] sm:$0xff]  ;;  %v1967_v50 = vld [vmem:[#allocation9 + $0x120] sm:$0xff] }
 0x143   :  { %v1403_v2 = vld [vmem:[#allocation3 + $0x7e] sm:$0xff]  ;;  %v1404_v13 = vld [vmem:[#allocation3 + $0x86] sm:$0xff]  ;;  %v1337_v61 = vmax.f32 %v1313_v24, 0.0  ;;  %v1316_v54 = vadd.f32 %v5260_v39, %v1283_v23  ;;  %v1278_v48 = vadd.f32 %v1277_v58, %v1092_v47  ;;  %1383 = vst [vmem:[#allocation3 + $0xa0] sm:$0xff] %v1359_v12  ;;  %4179 = vmatprep.mubr.f32.mxu0 %v1359_v12  ;;  %v1362_v56 = vmul.f32 %v3561_v49, %v1338_v46  ;;  %v1950_v46 = vld [vmem:[#allocation7 + $0x120] sm:$0xff] }
 0x144   :  { %4241 = vmatprep.mubr.f32.mxu1 %v1403_v2  ;;  %4271 = vmatpush3.msra.mxu0 %v1971_v18  ;;  %v1965_v60 = vld [vmem:[#allocation9 + $0x110] sm:$0xff]  ;;  %v1951_v7 = vld [vmem:[#allocation7 + $0x128] sm:$0xff]  ;;  %v1963_v24 = vld [vmem:[#allocation9 + $0x100] sm:$0xff]  ;;  %vm572_vm1 = vcmp.lt.s32.totalorder %v5041_v42, 11  ;;  %vm575_vm2 = vcmp.lt.s32.totalorder %v5080_v6, 11  ;;  %vm574_vm3 = vcmp.lt.s32.totalorder %v5076_v8, 11 }
 0x145   :  { %4180 = vmatmul.mubr.f32.gmra.mxu0 %v1360_v5  ;;  %4242 = vmatmul.mubr.f32.gmra.mxu1 %v1404_v13  ;;  %v1340_v21 = vmax.f32 %v1316_v54, 0.0  ;;  %v1315_v36 = vadd.f32 %v5260_v39, %v1278_v48  ;;  %v1361_v44 = vmul.f32 %v3560_v30, %v1337_v61  ;;  %1386 = vst [vmem:[#allocation3 + $0xb8] sm:$0xff] %v1362_v56  ;;  %v1966_v5 = vld [vmem:[#allocation9 + $0x118] sm:$0xff]  ;;  %v1964_v49 = vld [vmem:[#allocation9 + $0x108] sm:$0xff]  ;;  %v1948_v12 = vld [vmem:[#allocation7 + $0x110] sm:$0xff]  ;;  %vm577_vm4 = vcmp.lt.s32.totalorder %v5128_v28, 11 }
 0x146   :  { %v1405_v3 = vld [vmem:[#allocation3 + $0x8e] sm:$0xff]  ;;  %v1406_v62 = vld [vmem:[#allocation3 + $0x96] sm:$0xff]  ;;  %4339 = vmatpush3.msra.mxu1 %v1954_v11  ;;  %4272 = vmatprep.subr.mxu0 %v1970_v1  ;;  %vm576_vm6 = vcmp.lt.s32.totalorder %v5124_v25, 11  ;;  %vm579_vm7 = vcmp.lt.s32.totalorder %v5160_v40, 11  ;;  %vm578_vm8 = vcmp.lt.s32.totalorder %v5156_v52, 11  ;;  %vm581_vm9 = vcmp.lt.s32.totalorder %v5203_v59, 11 }
 0x147   :  { %v1339_v53 = vmax.f32 %v1315_v36, 0.0  ;;  %1385 = vst [vmem:[#allocation3 + $0xb0] sm:$0xff] %v1361_v44  ;;  %4182 = vmatprep.mubr.f32.mxu0 %v1361_v44  ;;  %4244 = vmatprep.mubr.f32.mxu1 %v1405_v3  ;;  %v1364_v10 = vmul.f32 %v3563_v37, %v1340_v21  ;;  %v1949_v23 = vld [vmem:[#allocation7 + $0x118] sm:$0xff]  ;;  %v1947_v47 = vld [vmem:[#allocation7 + $0x108] sm:$0xff]  ;;  %v1946_v58 = vld [vmem:[#allocation7 + $0x100] sm:$0xff]  ;;  %vm580_vm10 = vcmp.lt.s32.totalorder %v5162_v55, 11 }
 0x148   :  { %4340 = vmatprep.subr.mxu1 %v1953_v4  ;;  %4273 = vmatpush3.msra.mxu0 %v1970_v1  ;;  %v2510_v2 = vld [vmem:[#allocation9 + $0x1f8] sm:$0xff]  ;;  %v5580_v21 = vld [vmem:[%s6397_s3 + $0x1] ss:$0 sm:$0xff]  ;;  %vm583_vm11 = vcmp.lt.s32.totalorder %v5211_v15, 11  ;;  %vm582_vm12 = vcmp.lt.s32.totalorder %v5207_v14, 11  ;;  %vm585_vm13 = vcmp.lt.s32.totalorder %v5265_v43, 11 }
 0x149   :  { %4183 = vmatmul.mubr.f32.gmra.mxu0 %v1362_v56  ;;  %4245 = vmatmul.mubr.f32.gmra.mxu1 %v1406_v62  ;;  %v1363_v17 = vmul.f32 %v3562_v51, %v1339_v53  ;;  %1388 = vst [vmem:[#allocation3 + $0xc8] sm:$0xff] %v1364_v10  ;;  %v5574_v13 = vld [vmem:[#allocation7 + $0x1f8] sm:$0xff]  ;;  %v3565_v53 = vsel %vm573_vm5, 1.0, %v5249_v32  ;;  %vm587_vm15 = vcmp.lt.s32.totalorder %v5319_v63, 11  ;;  %vm589_vm5 = vcmp.lt.s32.totalorder %v5390_v34, 11 }
 0x14a   :  { %v1407_v20 = vld [vmem:[#allocation3 + $0x9e] sm:$0xff]  ;;  %v1408_v35 = vld [vmem:[#allocation3 + $0xa6] sm:$0xff]  ;;  %4341 = vmatpush3.msra.mxu1 %v1953_v4  ;;  %4274 = vmatprep.subr.mxu0 %v1969_v26 }
 0x14b   :  { %1387 = vst [vmem:[#allocation3 + $0xc0] sm:$0xff] %v1363_v17  ;;  %4185 = vmatprep.mubr.f32.mxu0 %v1363_v17  ;;  %4247 = vmatprep.mubr.f32.mxu1 %v1407_v20 }
 0x14c   :  { %4342 = vmatprep.subr.mxu1 %v1952_v9  ;;  %4275 = vmatpush3.msra.mxu0 %v1969_v26 }
 0x14d   :  { %4186 = vmatmul.mubr.f32.gmra.mxu0 %v1364_v10  ;;  %4248 = vmatmul.mubr.f32.gmra.mxu1 %v1408_v35 }
 0x14e   :  { %v1409_v39 = vld [vmem:[#allocation3 + $0xae] sm:$0xff]  ;;  %v1410_v0 = vld [vmem:[#allocation3 + $0xb6] sm:$0xff]  ;;  %4343 = vmatpush3.msra.mxu1 %v1952_v9  ;;  %4276 = vmatprep.subr.mxu0 %v1968_v33 }
 0x14f   :  { %4250 = vmatprep.mubr.f32.mxu1 %v1409_v39  ;;  %4277 = vmatpush3.msra.mxu0 %v1968_v33  ;;  %v3567_v33 = vsel %vm575_vm2, 1.0, %v5249_v32  ;;  %vm591_vm2 = vcmp.lt.s32.totalorder %v5460_v27, 11 }
 0x150   :  { %4278 = vmatprep.subr.mxu0 %v1967_v50  ;;  %4344 = vmatprep.subr.mxu1 %v1951_v7 }
 0x151   :  { %4251 = vmatmul.mubr.f32.gmra.mxu1 %v1410_v0  ;;  %4279 = vmatpush3.msra.mxu0 %v1967_v50 }
 0x152   :  { %v1411_v29 = vld [vmem:[#allocation3 + $0xbe] sm:$0xff]  ;;  %v1412_v38 = vld [vmem:[#allocation3 + $0xc6] sm:$0xff]  ;;  %4280 = vmatprep.subr.mxu0 %v1966_v5  ;;  %4345 = vmatpush3.msra.mxu1 %v1951_v7 }
 0x153   :  { %4253 = vmatprep.mubr.f32.mxu1 %v1411_v29  ;;  %4281 = vmatpush3.msra.mxu0 %v1966_v5 }
 0x154   :  { %4282 = vmatprep.subr.mxu0 %v1965_v60  ;;  %4346 = vmatprep.subr.mxu1 %v1950_v46 }
 0x155   :  { %4254 = vmatmul.mubr.f32.gmra.mxu1 %v1412_v38  ;;  %4283 = vmatpush3.msra.mxu0 %v1965_v60  ;;  %v3564_v38 = vsel %vm572_vm1, 1.0, %v5249_v32  ;;  %vm588_vm1 = vcmp.lt.s32.totalorder %v5385_v16, 11 }
 0x156   :  { %4284 = vmatprep.subr.mxu0 %v1964_v49  ;;  %4347 = vmatpush3.msra.mxu1 %v1950_v46 }
 0x157   :  { %4285 = vmatpush3.msra.mxu0 %v1964_v49  ;;  %4348 = vmatprep.subr.mxu1 %v1949_v23 }
 0x158   :  { %4286 = vmatprep.subr.mxu0 %v1963_v24  ;;  %4349 = vmatpush3.msra.mxu1 %v1949_v23 }
 0x159   :  { %4287 = vmatpush3.msra.mxu0 %v1963_v24  ;;  %4350 = vmatprep.subr.mxu1 %v1948_v12  ;;  %v3566_v24 = vsel %vm574_vm3, 1.0, %v5249_v32  ;;  %vm590_vm3 = vcmp.lt.s32.totalorder %v5450_v57, 11 }
 0x15a   :  { %4351 = vmatpush3.msra.mxu1 %v1948_v12  ;;  %4392 = vmatprep.subr.mxu0 %v2510_v2 }
 0x15b   :  { %4352 = vmatprep.subr.mxu1 %v1947_v47 }
 0x15c   :  { %4353 = vmatpush3.msra.mxu1 %v1947_v47 }
 0x15d   :  { %4354 = vmatprep.subr.mxu1 %v1946_v58 }
 0x15e   :  { %4355 = vmatpush3.msra.mxu1 %v1946_v58 }
 0x15f   :  { %4460 = vmatprep.subr.mxu1 %v5574_v13 }
 0x1e0   :  { %v4154_v30 = vpop.f32.mrf.mxu0 }
 0x1e2   :  { %v1513_v61 = vpop.f32.mrf.mxu0 }
 0x1e5   :  { %v4157_v54 = vpop.f32.mrf.mxu0 }
 0x1e7   :  { %v1523_v48 = vpop.f32.mrf.mxu0 }
 0x1e9   :  { %v4160_v56 = vpop.f32.mrf.mxu0  ;;  %v4222_v37 = vpop.f32.mrf.mxu1 }
 0x1ea   :  { %v1704_v36 = vadd.f32 %v4222_v37, %v4154_v30  ;;  %v2509_v30 = vld [vmem:[#allocation9 + $0x1f0] sm:$0xff] }
 0x1eb   :  { %v1533_v44 = vpop.f32.mrf.mxu0  ;;  %v1698_v3 = vpop.f32.mrf.mxu1 }
 0x1ec   :  { %v1826_v62 = vadd.f32 %v5580_v21, %v1704_v36  ;;  %v1699_v51 = vadd.f32 %v1698_v3, %v1513_v61 }
 0x1ed   :  { %v4163_v10 = vpop.f32.mrf.mxu0  ;;  %v4225_v17 = vpop.f32.mrf.mxu1 }
 0x1ee   :  { %v1850_v20 = vmax.f32 %v1826_v62, 0.0  ;;  %v1825_v35 = vadd.f32 %v5580_v21, %v1699_v51  ;;  %v1714_v39 = vadd.f32 %v4225_v17, %v4157_v54 }
 0x1ef   :  { %v1543_v0 = vpop.f32.mrf.mxu0  ;;  %v1708_v29 = vpop.f32.mrf.mxu1 }
 0x1f0   :  { %v1874_v18 = vmul.f32 %v3565_v53, %v1850_v20  ;;  %v1849_v11 = vmax.f32 %v1825_v35, 0.0  ;;  %v1828_v1 = vadd.f32 %v5580_v21, %v1714_v39  ;;  %v1709_v4 = vadd.f32 %v1708_v29, %v1523_v48  ;;  %v5606_v53 = vld [vmem:[#allocation3] sm:$0xff]  ;;  %v2507_v35 = vld [vmem:[#allocation9 + $0x1e0] sm:$0xff] }
 0x1f1   :  { %v4166_v26 = vpop.f32.mrf.mxu0  ;;  %v4228_v9 = vpop.f32.mrf.mxu1  ;;  %v3569_v48 = vsel %vm577_vm4, 1.0, %v5249_v32  ;;  %v3568_v17 = vsel %vm576_vm6, 1.0, %v5606_v53  ;;  %vm593_vm4 = vcmp.lt.s32.totalorder %v5502_v31, 11  ;;  %vm592_vm6 = vcmp.lt.s32.totalorder %v5524_v19, 11 }
 0x1f2   :  { %1898 = vst [vmem:[#allocation3 + $0x18] sm:$0xff] %v1874_v18  ;;  %v1852_v50 = vmax.f32 %v1828_v1, 0.0  ;;  %v1827_v5 = vadd.f32 %v5580_v21, %v1709_v4  ;;  %v1724_v60 = vadd.f32 %v4228_v9, %v4160_v56  ;;  %v1873_v7 = vmul.f32 %v3564_v38, %v1849_v11 }
 0x1f3   :  { %v1553_v49 = vpop.f32.mrf.mxu0  ;;  %v1718_v46 = vpop.f32.mrf.mxu1  ;;  %v3571_v38 = vsel %vm579_vm7, 1.0, %v5606_v53  ;;  %vm595_vm7 = vcmp.lt.s32.totalorder %v5544_v22, 11 }
 0x1f4   :  { %v1851_v23 = vmax.f32 %v1827_v5, 0.0  ;;  %v1830_v12 = vadd.f32 %v5580_v21, %v1724_v60  ;;  %v1719_v47 = vadd.f32 %v1718_v46, %v1533_v44  ;;  %1897 = vst [vmem:[#allocation3 + $0x10] sm:$0xff] %v1873_v7  ;;  %4288 = vmatprep.mubr.f32.mxu0 %v1873_v7  ;;  %v1876_v58 = vmul.f32 %v3567_v33, %v1852_v50  ;;  %v2508_v44 = vld [vmem:[#allocation9 + $0x1e8] sm:$0xff] }
 0x1f5   :  { %v4169_v61 = vpop.f32.mrf.mxu0  ;;  %v4231_v54 = vpop.f32.mrf.mxu1  ;;  %4289 = vmatmul.mubr.f32.vlgmr.msra.gmra.mxu0 %v1874_v18  ;;  %v3570_v5 = vsel %vm578_vm8, 1.0, %v5606_v53  ;;  %vm594_vm8 = vcmp.lt.s32.totalorder %v5554_v45, 11 }
 0x1f6   :  { %v1854_v56 = vmax.f32 %v1830_v12, 0.0  ;;  %v1829_v37 = vadd.f32 %v5580_v21, %v1719_v47  ;;  %v1734_v36 = vadd.f32 %v4231_v54, %v4163_v10  ;;  %v1875_v3 = vmul.f32 %v3566_v24, %v1851_v23  ;;  %1900 = vst [vmem:[#allocation3 + $0x28] sm:$0xff] %v1876_v58  ;;  %4393 = vmatpush3.msra.mxu0 %v2510_v2  ;;  %v2492_v24 = vld [vmem:[#allocation7 + $0x1f0] sm:$0xff]  ;;  %v2506_v23 = vld [vmem:[#allocation9 + $0x1d8] sm:$0xff] }
 0x1f7   :  { %v5604_v62 = vpop.f32.mrf.mxu0  ;;  %v1728_v51 = vpop.f32.mrf.mxu1  ;;  %4394 = vmatprep.subr.mxu0 %v2509_v30 }
 0x1f8   :  { %v1853_v32 = vmax.f32 %v1829_v37, 0.0  ;;  %v1832_v20 = vadd.f32 %v5580_v21, %v1734_v36  ;;  %v1729_v10 = vadd.f32 %v1728_v51, %v1543_v0  ;;  %1899 = vst [vmem:[#allocation3 + $0x20] sm:$0xff] %v1875_v3  ;;  %4291 = vmatprep.mubr.f32.mxu0 %v1875_v3  ;;  %v1878_v2 = vmul.f32 %v3569_v48, %v1854_v56 }
 0x1f9   :  { %4395 = vmatpush3.msra.mxu0 %v2509_v30  ;;  %v5613_v39 = vpop.f32.mrf.mxu0  ;;  %v4234_v29 = vpop.f32.mrf.mxu1 }
 0x1fa   :  { %4292 = vmatmul.mubr.f32.gmra.mxu0 %v1876_v58  ;;  %4396 = vmatprep.subr.mxu0 %v2508_v44  ;;  %v1856_v18 = vmax.f32 %v1832_v20, 0.0  ;;  %v1831_v11 = vadd.f32 %v5580_v21, %v1729_v10  ;;  %v1744_v0 = vadd.f32 %v4234_v29, %v4166_v26  ;;  %v1877_v1 = vmul.f32 %v3568_v17, %v1853_v32  ;;  %v2491_v32 = vld [vmem:[#allocation7 + $0x1e8] sm:$0xff]  ;;  %v2505_v20 = vld [vmem:[#allocation9 + $0x1d0] sm:$0xff] }
 0x1fb   :  { %1902 = vst [vmem:[#allocation3 + $0x38] sm:$0xff] %v1878_v2  ;;  %4397 = vmatpush3.msra.mxu0 %v2508_v44  ;;  %v5620_v4 = vpop.f32.mrf.mxu0  ;;  %v1738_v9 = vpop.f32.mrf.mxu1  ;;  %v1921_v33 = vld [vmem:[#allocation3 + $0xc] sm:$0xff]  ;;  %v1922_v50 = vld [vmem:[#allocation3 + $0x14] sm:$0xff]  ;;  %v3573_v58 = vsel %vm581_vm9, 1.0, %v5606_v53  ;;  %v3572_v44 = vsel %vm580_vm10, 1.0, %v5606_v53  ;;  %vm645_vm9 = vcmp.lt.s32.totalorder %v5039_v41, 15 }
 0x1fc   :  { %4398 = vmatprep.subr.mxu0 %v2507_v35  ;;  %v1855_v60 = vmax.f32 %v1831_v11, 0.0  ;;  %v1834_v7 = vadd.f32 %v5580_v21, %v1744_v0  ;;  %v1739_v46 = vadd.f32 %v1738_v9, %v1553_v49  ;;  %1901 = vst [vmem:[#allocation3 + $0x30] sm:$0xff] %v1877_v1  ;;  %4294 = vmatprep.mubr.f32.mxu0 %v1877_v1  ;;  %vm644_vm10 = vcmp.lt.s32.totalorder %v5041_v42, 15 }
 0x1fd   :  { %4356 = vmatprep.mubr.f32.mxu1 %v1921_v33  ;;  %v1880_v26 = vmul.f32 %v3571_v38, %v1856_v18  ;;  %v5627_v12 = vpop.f32.mrf.mxu0  ;;  %v4237_v47 = vpop.f32.mrf.mxu1  ;;  %4399 = vmatpush3.msra.mxu0 %v2507_v35  ;;  %v3575_v35 = vsel %vm583_vm11, 1.0, %v5606_v53  ;;  %v3574_v33 = vsel %vm582_vm12, 1.0, %v5606_v53  ;;  %vm647_vm11 = vcmp.lt.s32.totalorder %v5080_v6, 15 }
 0x1fe   :  { %4295 = vmatmul.mubr.f32.gmra.mxu0 %v1878_v2  ;;  %4357 = vmatmul.mubr.f32.vlgmr.msra.gmra.mxu1 %v1922_v50  ;;  %v1858_v30 = vmax.f32 %v1834_v7, 0.0  ;;  %v1833_v49 = vadd.f32 %v5580_v21, %v1739_v46  ;;  %v1754_v54 = vadd.f32 %v4237_v47, %v4169_v61  ;;  %v1879_v48 = vmul.f32 %v3570_v5, %v1855_v60  ;;  %v6446_v50 = vld [vmem:[#allocation17_spill] sm:$0xff]  ;;  %v2490_v46 = vld [vmem:[#allocation7 + $0x1e0] sm:$0xff] }
 0x1ff   :  { %1904 = vst [vmem:[#allocation3 + $0x48] sm:$0xff] %v1880_v26  ;;  %4461 = vmatpush3.msra.mxu1 %v5574_v13  ;;  %v5635_v56 = vpop.f32.mrf.mxu0  ;;  %v1748_v37 = vpop.f32.mrf.mxu1  ;;  %v1923_v36 = vld [vmem:[#allocation3 + $0x1c] sm:$0xff]  ;;  %v1924_v3 = vld [vmem:[#allocation3 + $0x24] sm:$0xff]  ;;  %4400 = vmatprep.subr.mxu0 %v2506_v23  ;;  %vm584_vm14 = vcmp.lt.s32.totalorder %v6446_v50, 11  ;;  %v3577_v47 = vsel %vm585_vm13, 1.0, %v5606_v53  ;;  %vm646_vm12 = vcmp.lt.s32.totalorder %v5076_v8, 15 }
 0x200   :  { %4462 = vmatprep.subr.mxu1 %v2492_v24  ;;  %v1857_v51 = vmax.f32 %v1833_v49, 0.0  ;;  %v1836_v61 = vadd.f32 %v5580_v21, %v1754_v54  ;;  %v1749_v17 = vadd.f32 %v1748_v37, %v5604_v62  ;;  %1903 = vst [vmem:[#allocation3 + $0x40] sm:$0xff] %v1879_v48  ;;  %4297 = vmatprep.mubr.f32.mxu0 %v1879_v48  ;;  %vm649_vm13 = vcmp.lt.s32.totalorder %v5128_v28, 15 }
 0x201   :  { %4359 = vmatprep.mubr.f32.mxu1 %v1923_v36  ;;  %v1882_v13 = vmul.f32 %v3573_v58, %v1858_v30  ;;  %v5643_v10 = vpop.f32.mrf.mxu0  ;;  %v4240_v2 = vpop.f32.mrf.mxu1  ;;  %4463 = vmatpush3.msra.mxu1 %v2492_v24 }
 0x202   :  { %4298 = vmatmul.mubr.f32.gmra.mxu0 %v1880_v26  ;;  %4360 = vmatmul.mubr.f32.gmra.mxu1 %v1924_v3  ;;  %v1860_v29 = vmax.f32 %v1836_v61, 0.0  ;;  %v1835_v62 = vadd.f32 %v5580_v21, %v1749_v17  ;;  %v1764_v38 = vadd.f32 %v4240_v2, %v5613_v39  ;;  %v1881_v18 = vmul.f32 %v3572_v44, %v1857_v51  ;;  %v2504_v26 = vld [vmem:[#allocation9 + $0x1c8] sm:$0xff]  ;;  %v6447_v44 = vld [vmem:[#allocation18_spill] sm:$0xff] }
 0x203   :  { %1906 = vst [vmem:[#allocation3 + $0x58] sm:$0xff] %v1882_v13  ;;  %4401 = vmatpush3.msra.mxu0 %v2506_v23  ;;  %v5651_v11 = vpop.f32.mrf.mxu0  ;;  %v1758_v0 = vpop.f32.mrf.mxu1  ;;  %v1925_v1 = vld [vmem:[#allocation3 + $0x2c] sm:$0xff]  ;;  %v1926_v9 = vld [vmem:[#allocation3 + $0x34] sm:$0xff]  ;;  %4464 = vmatprep.subr.mxu1 %v2491_v32  ;;  %v3576_v3 = vsel %vm584_vm14, 1.0, %v5606_v53  ;;  %vm586_vm0 = vcmp.lt.s32.totalorder %v6447_v44, 11  ;;  %v3579_v2 = vsel %vm587_vm15, 1.0, %v5606_v53 }
 0x204   :  { %4402 = vmatprep.subr.mxu0 %v2505_v20  ;;  %v1859_v5 = vmax.f32 %v1835_v62, 0.0  ;;  %v1838_v39 = vadd.f32 %v5580_v21, %v1764_v38  ;;  %v1759_v60 = vadd.f32 %v1758_v0, %v5620_v4  ;;  %1905 = vst [vmem:[#allocation3 + $0x50] sm:$0xff] %v1881_v18  ;;  %4300 = vmatprep.mubr.f32.mxu0 %v1881_v18  ;;  %vm648_vm14 = vcmp.lt.s32.totalorder %v5124_v25, 15 }
 0x205   :  { %4362 = vmatprep.mubr.f32.mxu1 %v1925_v1  ;;  %v1884_v7 = vmul.f32 %v3575_v35, %v1860_v29  ;;  %v5659_v24 = vpop.f32.mrf.mxu0  ;;  %v4243_v23 = vpop.f32.mrf.mxu1  ;;  %4465 = vmatpush3.msra.mxu1 %v2491_v32  ;;  %v2503_v32 = vld [vmem:[#allocation9 + $0x1c0] sm:$0xff]  ;;  %vm651_vm15 = vcmp.lt.s32.totalorder %v5160_v40, 15 }
 0x206   :  { %4301 = vmatmul.mubr.f32.gmra.mxu0 %v1882_v13  ;;  %4363 = vmatmul.mubr.f32.gmra.mxu1 %v1926_v9  ;;  %v1862_v58 = vmax.f32 %v1838_v39, 0.0  ;;  %v1837_v4 = vadd.f32 %v5580_v21, %v1759_v60  ;;  %v1774_v30 = vadd.f32 %v4243_v23, %v5627_v12  ;;  %v1883_v49 = vmul.f32 %v3574_v33, %v1859_v5  ;;  %v2489_v13 = vld [vmem:[#allocation7 + $0x1d8] sm:$0xff]  ;;  %v2488_v60 = vld [vmem:[#allocation7 + $0x1d0] sm:$0xff] }
 0x207   :  { %1908 = vst [vmem:[#allocation3 + $0x68] sm:$0xff] %v1884_v7  ;;  %4403 = vmatpush3.msra.mxu0 %v2505_v20  ;;  %v5667_v54 = vpop.f32.mrf.mxu0  ;;  %v1768_v48 = vpop.f32.mrf.mxu1  ;;  %v1927_v37 = vld [vmem:[#allocation3 + $0x3c] sm:$0xff]  ;;  %v1928_v36 = vld [vmem:[#allocation3 + $0x44] sm:$0xff]  ;;  %4466 = vmatprep.subr.mxu1 %v2490_v46  ;;  %v3578_v9 = vsel %vm586_vm0, 1.0, %v5606_v53  ;;  %vm650_vm0 = vcmp.lt.s32.totalorder %v5156_v52, 15 }
 0x208   :  { %4404 = vmatprep.subr.mxu0 %v2504_v26  ;;  %v1861_v51 = vmax.f32 %v1837_v4, 0.0  ;;  %v1840_v12 = vadd.f32 %v5580_v21, %v1774_v30  ;;  %v1769_v61 = vadd.f32 %v1768_v48, %v5635_v56  ;;  %1907 = vst [vmem:[#allocation3 + $0x60] sm:$0xff] %v1883_v49  ;;  %4303 = vmatprep.mubr.f32.mxu0 %v1883_v49  ;;  %v3580_v48 = vsel %vm588_vm1, 1.0, %v5606_v53 }
 0x209   :  { %4365 = vmatprep.mubr.f32.mxu1 %v1927_v37  ;;  %v1886_v17 = vmul.f32 %v3577_v47, %v1862_v58  ;;  %v4246_v20 = vpop.f32.mrf.mxu1  ;;  %4467 = vmatpush3.msra.mxu1 %v2490_v46  ;;  %v4184_v38 = vpop.f32.mrf.mxu0  ;;  %v3581_v46 = vsel %vm589_vm5, 1.0, %v5606_v53  ;;  %vm653_vm5 = vcmp.lt.s32.totalorder %v5203_v59, 15  ;;  %vm652_vm1 = vcmp.lt.s32.totalorder %v5162_v55, 15 }
 0x20a   :  { %4304 = vmatmul.mubr.f32.gmra.mxu0 %v1884_v7  ;;  %4366 = vmatmul.mubr.f32.gmra.mxu1 %v1928_v36  ;;  %v1864_v35 = vmax.f32 %v1840_v12, 0.0  ;;  %v1839_v29 = vadd.f32 %v5580_v21, %v1769_v61  ;;  %v1784_v56 = vadd.f32 %v4246_v20, %v5643_v10  ;;  %v1885_v62 = vmul.f32 %v3576_v3, %v1861_v51  ;;  %v2487_v51 = vld [vmem:[#allocation7 + $0x1c8] sm:$0xff] }
 0x20b   :  { %1910 = vst [vmem:[#allocation3 + $0x78] sm:$0xff] %v1886_v17  ;;  %4405 = vmatpush3.msra.mxu0 %v2504_v26  ;;  %v1778_v18 = vpop.f32.mrf.mxu1  ;;  %v1929_v0 = vld [vmem:[#allocation3 + $0x4c] sm:$0xff]  ;;  %v1930_v1 = vld [vmem:[#allocation3 + $0x54] sm:$0xff]  ;;  %4468 = vmatprep.subr.mxu1 %v2489_v13  ;;  %v1613_v58 = vpop.f32.mrf.mxu0  ;;  %v3583_v61 = vsel %vm591_vm2, 1.0, %v5606_v53  ;;  %vm655_vm2 = vcmp.lt.s32.totalorder %v5211_v15, 15 }
 0x20c   :  { %4406 = vmatprep.subr.mxu0 %v2503_v32  ;;  %v1863_v33 = vmax.f32 %v1839_v29, 0.0  ;;  %v1842_v5 = vadd.f32 %v5580_v21, %v1784_v56  ;;  %v1779_v10 = vadd.f32 %v1778_v18, %v5651_v11  ;;  %1909 = vst [vmem:[#allocation3 + $0x70] sm:$0xff] %v1885_v62  ;;  %4306 = vmatprep.mubr.f32.mxu0 %v1885_v62  ;;  %v3582_v56 = vsel %vm590_vm3, 1.0, %v5606_v53 }
 0x20d   :  { %4368 = vmatprep.mubr.f32.mxu1 %v1929_v0  ;;  %v1888_v39 = vmul.f32 %v3579_v2, %v1864_v35  ;;  %v4249_v7 = vpop.f32.mrf.mxu1  ;;  %4469 = vmatpush3.msra.mxu1 %v2489_v13  ;;  %vm654_vm3 = vcmp.lt.s32.totalorder %v5207_v14, 15 }
 0x20e   :  { %4307 = vmatmul.mubr.f32.gmra.mxu0 %v1886_v17  ;;  %4369 = vmatmul.mubr.f32.gmra.mxu1 %v1930_v1  ;;  %v1866_v26 = vmax.f32 %v1842_v5, 0.0  ;;  %v1841_v23 = vadd.f32 %v5580_v21, %v1779_v10  ;;  %v1794_v47 = vadd.f32 %v4249_v7, %v5659_v24  ;;  %v1887_v11 = vmul.f32 %v3578_v9, %v1863_v33  ;;  %v2486_v1 = vld [vmem:[#allocation7 + $0x1c0] sm:$0xff] }
 0x20f   :  { %1912 = vst [vmem:[#allocation3 + $0x88] sm:$0xff] %v1888_v39  ;;  %4407 = vmatpush3.msra.mxu0 %v2503_v32  ;;  %v1788_v4 = vpop.f32.mrf.mxu1  ;;  %v1931_v30 = vld [vmem:[#allocation3 + $0x5c] sm:$0xff]  ;;  %v1932_v49 = vld [vmem:[#allocation3 + $0x64] sm:$0xff]  ;;  %4470 = vmatprep.subr.mxu1 %v2488_v60  ;;  %v3585_v33 = vsel %vm593_vm4, 1.0, %v5606_v53  ;;  %vm657_vm4 = vcmp.lt.s32.totalorder %v5265_v43, 15 }
 0x210   :  { %v1865_v37 = vmax.f32 %v1841_v23, 0.0  ;;  %v1844_v36 = vadd.f32 %v5580_v21, %v1794_v47  ;;  %v1789_v24 = vadd.f32 %v1788_v4, %v5667_v54  ;;  %1911 = vst [vmem:[#allocation3 + $0x80] sm:$0xff] %v1887_v11  ;;  %4309 = vmatprep.mubr.f32.mxu0 %v1887_v11  ;;  %4371 = vmatprep.mubr.f32.mxu1 %v1931_v30  ;;  %v4187_v54 = vpop.f32.mrf.mxu0  ;;  %v3584_v47 = vsel %vm592_vm6, 1.0, %v5606_v53 }
 0x211   :  { %v1890_v3 = vmul.f32 %v3581_v46, %v1866_v26  ;;  %v4252_v12 = vpop.f32.mrf.mxu1  ;;  %4471 = vmatpush3.msra.mxu1 %v2488_v60  ;;  %vm656_vm6 = vcmp.lt.s32.totalorder %v6446_v50, 15 }
 0x212   :  { %4310 = vmatmul.mubr.f32.gmra.mxu0 %v1888_v39  ;;  %4372 = vmatmul.mubr.f32.gmra.mxu1 %v1932_v49  ;;  %v1868_v17 = vmax.f32 %v1844_v36, 0.0  ;;  %v1843_v13 = vadd.f32 %v5580_v21, %v1789_v24  ;;  %v1804_v32 = vadd.f32 %v4252_v12, %v4184_v38  ;;  %v1889_v20 = vmul.f32 %v3580_v48, %v1865_v37  ;;  %v1623_v7 = vpop.f32.mrf.mxu0 }
 0x213   :  { %1914 = vst [vmem:[#allocation3 + $0x98] sm:$0xff] %v1890_v3  ;;  %v1798_v2 = vpop.f32.mrf.mxu1  ;;  %v1933_v35 = vld [vmem:[#allocation3 + $0x6c] sm:$0xff]  ;;  %v1934_v29 = vld [vmem:[#allocation3 + $0x74] sm:$0xff]  ;;  %4472 = vmatprep.subr.mxu1 %v2487_v51  ;;  %v3587_v49 = vsel %vm595_vm7, 1.0, %v5606_v53  ;;  %vm659_vm7 = vcmp.lt.s32.totalorder %v5319_v63, 15 }
 0x214   :  { %v1867_v62 = vmax.f32 %v1843_v13, 0.0  ;;  %v1846_v18 = vadd.f32 %v5580_v21, %v1804_v32  ;;  %v1799_v0 = vadd.f32 %v1798_v2, %v1613_v58  ;;  %1913 = vst [vmem:[#allocation3 + $0x90] sm:$0xff] %v1889_v20  ;;  %4312 = vmatprep.mubr.f32.mxu0 %v1889_v20  ;;  %4374 = vmatprep.mubr.f32.mxu1 %v1933_v35  ;;  %v2502_v35 = vld [vmem:[#allocation9 + $0x1b8] sm:$0xff] }
 0x215   :  { %v1892_v38 = vmul.f32 %v3583_v61, %v1868_v17  ;;  %v4255_v9 = vpop.f32.mrf.mxu1  ;;  %4473 = vmatpush3.msra.mxu1 %v2487_v51  ;;  %v3586_v51 = vsel %vm594_vm8, 1.0, %v5606_v53  ;;  %4408 = vmatprep.subr.mxu0 %v2502_v35  ;;  %vm658_vm8 = vcmp.lt.s32.totalorder %v6447_v44, 15 }
 0x216   :  { %4313 = vmatmul.mubr.f32.gmra.mxu0 %v1890_v3  ;;  %4375 = vmatmul.mubr.f32.gmra.mxu1 %v1934_v29  ;;  %v1870_v5 = vmax.f32 %v1846_v18, 0.0  ;;  %v1845_v10 = vadd.f32 %v5580_v21, %v1799_v0  ;;  %v1814_v39 = vadd.f32 %v4255_v9, %v4187_v54  ;;  %v1891_v60 = vmul.f32 %v3582_v56, %v1867_v62  ;;  %v2485_v29 = vld [vmem:[#allocation7 + $0x1b8] sm:$0xff]  ;;  %v2501_v56 = vld [vmem:[#allocation9 + $0x1b0] sm:$0xff]  ;;  %v2483_v18 = vld [vmem:[#allocation7 + $0x1a8] sm:$0xff] }
 0x217   :  { %1916 = vst [vmem:[#allocation3 + $0xa8] sm:$0xff] %v1892_v38  ;;  %v1808_v46 = vpop.f32.mrf.mxu1  ;;  %v1935_v26 = vld [vmem:[#allocation3 + $0x7c] sm:$0xff]  ;;  %v1936_v23 = vld [vmem:[#allocation3 + $0x84] sm:$0xff]  ;;  %4474 = vmatprep.subr.mxu1 %v2486_v1  ;;  %4409 = vmatpush3.msra.mxu0 %v2502_v35 }
 0x218   :  { %v1869_v11 = vmax.f32 %v1845_v10, 0.0  ;;  %v1848_v58 = vadd.f32 %v5580_v21, %v1814_v39  ;;  %v1809_v4 = vadd.f32 %v1808_v46, %v1623_v7  ;;  %1915 = vst [vmem:[#allocation3 + $0xa0] sm:$0xff] %v1891_v60  ;;  %4315 = vmatprep.mubr.f32.mxu0 %v1891_v60  ;;  %4377 = vmatprep.mubr.f32.mxu1 %v1935_v26  ;;  %v2484_v62 = vld [vmem:[#allocation7 + $0x1b0] sm:$0xff]  ;;  %v2500_v0 = vld [vmem:[#allocation9 + $0x1a8] sm:$0xff]  ;;  %v2481_v9 = vld [vmem:[#allocation7 + $0x198] sm:$0xff] }
 0x219   :  { %v1894_v30 = vmul.f32 %v3585_v33, %v1870_v5  ;;  %4475 = vmatpush3.msra.mxu1 %v2486_v1  ;;  %4410 = vmatprep.subr.mxu0 %v2501_v56  ;;  %v2499_v1 = vld [vmem:[#allocation9 + $0x1a0] sm:$0xff]  ;;  %v2498_v33 = vld [vmem:[#allocation9 + $0x198] sm:$0xff]  ;;  %v2480_v5 = vld [vmem:[#allocation7 + $0x190] sm:$0xff] }
 0x21a   :  { %4316 = vmatmul.mubr.f32.gmra.mxu0 %v1892_v38  ;;  %4378 = vmatmul.mubr.f32.gmra.mxu1 %v1936_v23  ;;  %v1872_v48 = vmax.f32 %v1848_v58, 0.0  ;;  %v1847_v37 = vadd.f32 %v5580_v21, %v1809_v4  ;;  %v1893_v36 = vmul.f32 %v3584_v47, %v1869_v11  ;;  %v2482_v38 = vld [vmem:[#allocation7 + $0x1a0] sm:$0xff]  ;;  %v2497_v10 = vld [vmem:[#allocation9 + $0x190] sm:$0xff]  ;;  %v2479_v39 = vld [vmem:[#allocation7 + $0x188] sm:$0xff] }
 0x21b   :  { %1918 = vst [vmem:[#allocation3 + $0xb8] sm:$0xff] %v1894_v30  ;;  %v1937_v24 = vld [vmem:[#allocation3 + $0x8c] sm:$0xff]  ;;  %v1938_v3 = vld [vmem:[#allocation3 + $0x94] sm:$0xff]  ;;  %4476 = vmatprep.subr.mxu1 %v2485_v29  ;;  %4411 = vmatpush3.msra.mxu0 %v2501_v56 }
 0x21c   :  { %v1871_v12 = vmax.f32 %v1847_v37, 0.0  ;;  %1917 = vst [vmem:[#allocation3 + $0xb0] sm:$0xff] %v1893_v36  ;;  %4318 = vmatprep.mubr.f32.mxu0 %v1893_v36  ;;  %4380 = vmatprep.mubr.f32.mxu1 %v1937_v24  ;;  %v1896_v61 = vmul.f32 %v3587_v49, %v1872_v48  ;;  %v2496_v60 = vld [vmem:[#allocation9 + $0x188] sm:$0xff]  ;;  %v2478_v7 = vld [vmem:[#allocation7 + $0x180] sm:$0xff] }
 0x21d   :  { %4477 = vmatpush3.msra.mxu1 %v2485_v29  ;;  %4412 = vmatprep.subr.mxu0 %v2500_v0  ;;  %v2495_v46 = vld [vmem:[#allocation9 + $0x180] sm:$0xff] }
 0x21e   :  { %4319 = vmatmul.mubr.f32.gmra.mxu0 %v1894_v30  ;;  %4381 = vmatmul.mubr.f32.gmra.mxu1 %v1938_v3  ;;  %v1895_v17 = vmul.f32 %v3586_v51, %v1871_v12  ;;  %1920 = vst [vmem:[#allocation3 + $0xc8] sm:$0xff] %v1896_v61  ;;  %v5731_v30 = vld [vmem:[%s6397_s3 + $0x2] ss:$0 sm:$0xff]  ;;  %v3589_v3 = vsel %vm645_vm9, 1.0, %v5606_v53  ;;  %vm661_vm9 = vcmp.lt.s32.totalorder %v5390_v34, 15 }
 0x21f   :  { %v1939_v13 = vld [vmem:[#allocation3 + $0x9c] sm:$0xff]  ;;  %v1940_v21 = vld [vmem:[#allocation3 + $0xa4] sm:$0xff]  ;;  %4478 = vmatprep.subr.mxu1 %v2484_v62  ;;  %4413 = vmatpush3.msra.mxu0 %v2500_v0 }
 0x220   :  { %1919 = vst [vmem:[#allocation3 + $0xc0] sm:$0xff] %v1895_v17  ;;  %4321 = vmatprep.mubr.f32.mxu0 %v1895_v17  ;;  %4383 = vmatprep.mubr.f32.mxu1 %v1939_v13 }
 0x221   :  { %4479 = vmatpush3.msra.mxu1 %v2484_v62  ;;  %4414 = vmatprep.subr.mxu0 %v2499_v1 }
 0x222   :  { %4322 = vmatmul.mubr.f32.gmra.mxu0 %v1896_v61  ;;  %4384 = vmatmul.mubr.f32.gmra.mxu1 %v1940_v21 }
 0x223   :  { %v1941_v32 = vld [vmem:[#allocation3 + $0xac] sm:$0xff]  ;;  %v1942_v20 = vld [vmem:[#allocation3 + $0xb4] sm:$0xff]  ;;  %4480 = vmatprep.subr.mxu1 %v2483_v18  ;;  %4415 = vmatpush3.msra.mxu0 %v2499_v1 }
 0x224   :  { %4386 = vmatprep.mubr.f32.mxu1 %v1941_v32  ;;  %4481 = vmatpush3.msra.mxu1 %v2483_v18  ;;  %v3591_v18 = vsel %vm647_vm11, 1.0, %v5606_v53  ;;  %vm663_vm11 = vcmp.lt.s32.totalorder %v5460_v27, 15 }
 0x225   :  { %4482 = vmatprep.subr.mxu1 %v2482_v38  ;;  %4416 = vmatprep.subr.mxu0 %v2498_v33 }
 0x226   :  { %4387 = vmatmul.mubr.f32.gmra.mxu1 %v1942_v20  ;;  %4417 = vmatpush3.msra.mxu0 %v2498_v33  ;;  %v3588_v20 = vsel %vm644_vm10, 1.0, %v5606_v53  ;;  %vm660_vm10 = vcmp.lt.s32.totalorder %v5385_v16, 15 }
 0x227   :  { %v1943_v54 = vld [vmem:[#allocation3 + $0xbc] sm:$0xff]  ;;  %v1944_v2 = vld [vmem:[#allocation3 + $0xc4] sm:$0xff]  ;;  %4483 = vmatpush3.msra.mxu1 %v2482_v38  ;;  %4418 = vmatprep.subr.mxu0 %v2497_v10 }
 0x228   :  { %4389 = vmatprep.mubr.f32.mxu1 %v1943_v54  ;;  %4484 = vmatprep.subr.mxu1 %v2481_v9 }
 0x229   :  { %4485 = vmatpush3.msra.mxu1 %v2481_v9  ;;  %4419 = vmatpush3.msra.mxu0 %v2497_v10  ;;  %v3590_v10 = vsel %vm646_vm12, 1.0, %v5606_v53  ;;  %vm662_vm12 = vcmp.lt.s32.totalorder %v5450_v57, 15 }
 0x22a   :  { %4390 = vmatmul.mubr.f32.gmra.mxu1 %v1944_v2  ;;  %4486 = vmatprep.subr.mxu1 %v2480_v5 }
 0x22b   :  { %4492 = vmatprep.mubr.f32.mxu1 %v5606_v53  ;;  %4487 = vmatpush3.msra.mxu1 %v2480_v5 }
 0x22c   :  { %4488 = vmatprep.subr.mxu1 %v2479_v39  ;;  %4420 = vmatprep.subr.mxu0 %v2496_v60 }
 0x22d   :  { %4489 = vmatpush3.msra.mxu1 %v2479_v39  ;;  %4421 = vmatpush3.msra.mxu0 %v2496_v60 }
 0x22e   :  { %4490 = vmatprep.subr.mxu1 %v2478_v7  ;;  %4422 = vmatprep.subr.mxu0 %v2495_v46 }
 0x22f   :  { %4491 = vmatpush3.msra.mxu1 %v2478_v7  ;;  %4423 = vmatpush3.msra.mxu0 %v2495_v46 }
 0x230   :  { %4528 = vmatprep.subr.mxu0 %v5606_v53 }
 0x2b5   :  { %v4290_v26 = vpop.f32.mrf.mxu0 }
 0x2b7   :  { %v2045_v23 = vpop.f32.mrf.mxu0 }
 0x2ba   :  { %v4293_v47 = vpop.f32.mrf.mxu0 }
 0x2bc   :  { %v2055_v11 = vpop.f32.mrf.mxu0 }
 0x2be   :  { %v4296_v58 = vpop.f32.mrf.mxu0  ;;  %v4358_v4 = vpop.f32.mrf.mxu1 }
 0x2bf   :  { %v2236_v49 = vadd.f32 %v4358_v4, %v4290_v26 }
 0x2c0   :  { %v2065_v48 = vpop.f32.mrf.mxu0  ;;  %v2230_v37 = vpop.f32.mrf.mxu1 }
 0x2c1   :  { %v2358_v36 = vadd.f32 %v5731_v30, %v2236_v49  ;;  %v2231_v24 = vadd.f32 %v2230_v37, %v2045_v23 }
 0x2c2   :  { %v4299_v51 = vpop.f32.mrf.mxu0  ;;  %v4361_v12 = vpop.f32.mrf.mxu1 }
 0x2c3   :  { %v2382_v61 = vmax.f32 %v2358_v36, 0.0  ;;  %v2357_v17 = vadd.f32 %v5731_v30, %v2231_v24  ;;  %v2246_v13 = vadd.f32 %v4361_v12, %v4293_v47  ;;  %v3593_v47 = vsel %vm649_vm13, 1.0, %v5606_v53 }
 0x2c4   :  { %v2075_v21 = vpop.f32.mrf.mxu0  ;;  %v2240_v32 = vpop.f32.mrf.mxu1  ;;  %v3592_v36 = vsel %vm648_vm14, 1.0, %v5606_v53  ;;  %vm665_vm13 = vcmp.lt.s32.totalorder %v5502_v31, 15  ;;  %vm664_vm14 = vcmp.lt.s32.totalorder %v5524_v19, 15 }
 0x2c5   :  { %v2406_v54 = vmul.f32 %v3589_v3, %v2382_v61  ;;  %v2381_v2 = vmax.f32 %v2357_v17, 0.0  ;;  %v2360_v35 = vadd.f32 %v5731_v30, %v2246_v13  ;;  %v2241_v29 = vadd.f32 %v2240_v32, %v2055_v11 }
 0x2c6   :  { %v4302_v56 = vpop.f32.mrf.mxu0  ;;  %v4364_v62 = vpop.f32.mrf.mxu1  ;;  %v3595_v13 = vsel %vm651_vm15, 1.0, %v5606_v53  ;;  %vm667_vm15 = vcmp.lt.s32.totalorder %v5544_v22, 15 }
 0x2c7   :  { %2430 = vst [vmem:[#allocation3 + $0x18] sm:$0xff] %v2406_v54  ;;  %v2384_v0 = vmax.f32 %v2360_v35, 0.0  ;;  %v2359_v38 = vadd.f32 %v5731_v30, %v2241_v29  ;;  %v2256_v1 = vadd.f32 %v4364_v62, %v4296_v58  ;;  %v2405_v9 = vmul.f32 %v3588_v20, %v2381_v2 }
 0x2c8   :  { %v2085_v33 = vpop.f32.mrf.mxu0  ;;  %v2250_v5 = vpop.f32.mrf.mxu1  ;;  %v3594_v29 = vsel %vm650_vm0, 1.0, %v5606_v53  ;;  %vm666_vm0 = vcmp.lt.s32.totalorder %v5554_v45, 15 }
 0x2c9   :  { %v2383_v39 = vmax.f32 %v2359_v38, 0.0  ;;  %v2362_v60 = vadd.f32 %v5731_v30, %v2256_v1  ;;  %v2251_v7 = vadd.f32 %v2250_v5, %v2065_v48  ;;  %4424 = vmatprep.mubr.f32.mxu0 %v2405_v9  ;;  %2429 = vst [vmem:[#allocation3 + $0x10] sm:$0xff] %v2405_v9  ;;  %v2408_v46 = vmul.f32 %v3591_v18, %v2384_v0 }
 0x2ca   :  { %4493 = vmatmul.mubr.f32.vlgmr.msra.gmra.mxu1 %v2405_v9  ;;  %v4305_v26 = vpop.f32.mrf.mxu0  ;;  %v4367_v23 = vpop.f32.mrf.mxu1  ;;  %4425 = vmatmul.mubr.f32.vlgmr.msra.gmra.mxu0 %v2406_v54  ;;  %v3597_v9 = vsel %vm653_vm5, 1.0, %v5606_v53  ;;  %vm717_vm5 = vcmp.lt.s32.totalorder %v5039_v41, 23 }
 0x2cb   :  { %4495 = vmatprep.mubr.f32.mxu1 %v2406_v54  ;;  %v2386_v11 = vmax.f32 %v2362_v60, 0.0  ;;  %v2361_v58 = vadd.f32 %v5731_v30, %v2251_v7  ;;  %v2266_v4 = vadd.f32 %v4367_v23, %v4299_v51  ;;  %v2407_v49 = vmul.f32 %v3590_v10, %v2383_v39  ;;  %2432 = vst [vmem:[#allocation3 + $0x28] sm:$0xff] %v2408_v46 }
 0x2cc   :  { %v2095_v48 = vpop.f32.mrf.mxu0  ;;  %v2260_v37 = vpop.f32.mrf.mxu1 }
 0x2cd   :  { %v2385_v24 = vmax.f32 %v2361_v58, 0.0  ;;  %v2364_v3 = vadd.f32 %v5731_v30, %v2266_v4  ;;  %v2261_v12 = vadd.f32 %v2260_v37, %v2075_v21  ;;  %4427 = vmatprep.mubr.f32.mxu0 %v2407_v49  ;;  %2431 = vst [vmem:[#allocation3 + $0x20] sm:$0xff] %v2407_v49  ;;  %v2410_v61 = vmul.f32 %v3593_v47, %v2386_v11 }
 0x2ce   :  { %4496 = vmatmul.mubr.f32.gmra.mxu1 %v2407_v49  ;;  %v4308_v17 = vpop.f32.mrf.mxu0  ;;  %v4370_v51 = vpop.f32.mrf.mxu1  ;;  %4428 = vmatmul.mubr.f32.gmra.mxu0 %v2408_v46  ;;  %v3599_v49 = vsel %vm655_vm2, 1.0, %v5606_v53  ;;  %vm719_vm2 = vcmp.lt.s32.totalorder %v5080_v6, 23 }
 0x2cf   :  { %4498 = vmatprep.mubr.f32.mxu1 %v2408_v46  ;;  %v2388_v32 = vmax.f32 %v2364_v3, 0.0  ;;  %v2363_v20 = vadd.f32 %v5731_v30, %v2261_v12  ;;  %v2276_v54 = vadd.f32 %v4370_v51, %v4302_v56  ;;  %v2409_v2 = vmul.f32 %v3592_v36, %v2385_v24  ;;  %2434 = vst [vmem:[#allocation3 + $0x38] sm:$0xff] %v2410_v61 }
 0x2d0   :  { %v2105_v21 = vpop.f32.mrf.mxu0  ;;  %v2270_v35 = vpop.f32.mrf.mxu1  ;;  %v3596_v46 = vsel %vm652_vm1, 1.0, %v5606_v53  ;;  %vm716_vm1 = vcmp.lt.s32.totalorder %v5041_v42, 23 }
 0x2d1   :  { %v2387_v62 = vmax.f32 %v2363_v20, 0.0  ;;  %v2366_v18 = vadd.f32 %v5731_v30, %v2276_v54  ;;  %v2271_v0 = vadd.f32 %v2270_v35, %v2085_v33  ;;  %4430 = vmatprep.mubr.f32.mxu0 %v2409_v2  ;;  %2433 = vst [vmem:[#allocation3 + $0x30] sm:$0xff] %v2409_v2  ;;  %v2412_v38 = vmul.f32 %v3595_v13, %v2388_v32 }
 0x2d2   :  { %4499 = vmatmul.mubr.f32.gmra.mxu1 %v2409_v2  ;;  %v4311_v1 = vpop.f32.mrf.mxu0  ;;  %v4373_v56 = vpop.f32.mrf.mxu1  ;;  %4431 = vmatmul.mubr.f32.gmra.mxu0 %v2410_v61  ;;  %v3601_v2 = vsel %vm657_vm4, 1.0, %v5606_v53  ;;  %vm721_vm4 = vcmp.lt.s32.totalorder %v5128_v28, 23 }
 0x2d3   :  { %4501 = vmatprep.mubr.f32.mxu1 %v2410_v61  ;;  %v2390_v5 = vmax.f32 %v2366_v18, 0.0  ;;  %v2365_v10 = vadd.f32 %v5731_v30, %v2271_v0  ;;  %v2286_v39 = vadd.f32 %v4373_v56, %v4305_v26  ;;  %v2411_v60 = vmul.f32 %v3594_v29, %v2387_v62  ;;  %2436 = vst [vmem:[#allocation3 + $0x48] sm:$0xff] %v2412_v38 }
 0x2d4   :  { %v2115_v33 = vpop.f32.mrf.mxu0  ;;  %v2280_v7 = vpop.f32.mrf.mxu1  ;;  %v3598_v61 = vsel %vm654_vm3, 1.0, %v5606_v53  ;;  %vm718_vm3 = vcmp.lt.s32.totalorder %v5076_v8, 23 }
 0x2d5   :  { %v2389_v23 = vmax.f32 %v2365_v10, 0.0  ;;  %v2368_v47 = vadd.f32 %v5731_v30, %v2286_v39  ;;  %v2281_v11 = vadd.f32 %v2280_v7, %v2095_v48  ;;  %4433 = vmatprep.mubr.f32.mxu0 %v2411_v60  ;;  %2435 = vst [vmem:[#allocation3 + $0x40] sm:$0xff] %v2411_v60  ;;  %v2414_v58 = vmul.f32 %v3597_v9, %v2390_v5 }
 0x2d6   :  { %4502 = vmatmul.mubr.f32.gmra.mxu1 %v2411_v60  ;;  %v4314_v4 = vpop.f32.mrf.mxu0  ;;  %v4376_v26 = vpop.f32.mrf.mxu1  ;;  %4434 = vmatmul.mubr.f32.gmra.mxu0 %v2412_v38 }
 0x2d7   :  { %4504 = vmatprep.mubr.f32.mxu1 %v2412_v38  ;;  %v2392_v37 = vmax.f32 %v2368_v47, 0.0  ;;  %v2367_v36 = vadd.f32 %v5731_v30, %v2281_v11  ;;  %v2296_v24 = vadd.f32 %v4376_v26, %v4308_v17  ;;  %v2413_v3 = vmul.f32 %v3596_v46, %v2389_v23  ;;  %2438 = vst [vmem:[#allocation3 + $0x58] sm:$0xff] %v2414_v58 }
 0x2d8   :  { %v2125_v48 = vpop.f32.mrf.mxu0  ;;  %v2290_v12 = vpop.f32.mrf.mxu1  ;;  %v3600_v38 = vsel %vm656_vm6, 1.0, %v5606_v53  ;;  %v3602_v11 = vsel %vm658_vm8, 1.0, %v5606_v53  ;;  %vm720_vm6 = vcmp.lt.s32.totalorder %v5124_v25, 23  ;;  %vm723_vm8 = vcmp.lt.s32.totalorder %v5160_v40, 23 }
 0x2d9   :  { %v2391_v51 = vmax.f32 %v2367_v36, 0.0  ;;  %v2370_v13 = vadd.f32 %v5731_v30, %v2296_v24  ;;  %v2291_v32 = vadd.f32 %v2290_v12, %v2105_v21  ;;  %4436 = vmatprep.mubr.f32.mxu0 %v2413_v3  ;;  %2437 = vst [vmem:[#allocation3 + $0x50] sm:$0xff] %v2413_v3  ;;  %v2416_v20 = vmul.f32 %v3599_v49, %v2392_v37 }
 0x2da   :  { %4505 = vmatmul.mubr.f32.gmra.mxu1 %v2413_v3  ;;  %v4317_v54 = vpop.f32.mrf.mxu0  ;;  %v4379_v17 = vpop.f32.mrf.mxu1  ;;  %4437 = vmatmul.mubr.f32.gmra.mxu0 %v2414_v58 }
 0x2db   :  { %4507 = vmatprep.mubr.f32.mxu1 %v2414_v58  ;;  %v2394_v35 = vmax.f32 %v2370_v13, 0.0  ;;  %v2369_v29 = vadd.f32 %v5731_v30, %v2291_v32  ;;  %v2306_v62 = vadd.f32 %v4379_v17, %v4311_v1  ;;  %v2415_v18 = vmul.f32 %v3598_v61, %v2391_v51  ;;  %2440 = vst [vmem:[#allocation3 + $0x68] sm:$0xff] %v2416_v20  ;;  %v5815_v13 = vld [vmem:[#allocation3] sm:$0xff] }
 0x2dc   :  { %v2135_v21 = vpop.f32.mrf.mxu0  ;;  %v2300_v0 = vpop.f32.mrf.mxu1  ;;  %v3603_v1 = vsel %vm659_vm7, 1.0, %v5606_v53  ;;  %v3604_v32 = vsel %vm660_vm10, 1.0, %v5815_v13  ;;  %v5861_v41 = vsel %vm716_vm1, 1.0, %v5815_v13  ;;  %v5887_v28 = vsel %vm721_vm4, 1.0, %v5815_v13 }
 0x2dd   :  { %v2393_v56 = vmax.f32 %v2369_v29, 0.0  ;;  %v2372_v9 = vadd.f32 %v5731_v30, %v2306_v62  ;;  %v2301_v5 = vadd.f32 %v2300_v0, %v2115_v33  ;;  %4439 = vmatprep.mubr.f32.mxu0 %v2415_v18  ;;  %2439 = vst [vmem:[#allocation3 + $0x60] sm:$0xff] %v2415_v18  ;;  %v2418_v10 = vmul.f32 %v3601_v2, %v2394_v35 }
 0x2de   :  { %4508 = vmatmul.mubr.f32.gmra.mxu1 %v2415_v18  ;;  %v4382_v39 = vpop.f32.mrf.mxu1  ;;  %4440 = vmatmul.mubr.f32.gmra.mxu0 %v2416_v20  ;;  %v4320_v33 = vpop.f32.mrf.mxu0  ;;  %v3607_v35 = vsel %vm663_vm11, 1.0, %v5815_v13  ;;  %vm722_vm7 = vcmp.lt.s32.totalorder %v5156_v52, 23  ;;  %v5919_v40 = vsel %vm723_vm8, 1.0, %v5815_v13  ;;  %vm727_vm10 = vcmp.lt.s32.totalorder %v5211_v15, 23 }
 0x2df   :  { %4510 = vmatprep.mubr.f32.mxu1 %v2416_v20  ;;  %v2396_v60 = vmax.f32 %v2372_v9, 0.0  ;;  %v2371_v7 = vadd.f32 %v5731_v30, %v2301_v5  ;;  %v2316_v46 = vadd.f32 %v4382_v39, %v4314_v4  ;;  %v2417_v23 = vmul.f32 %v3600_v38, %v2393_v56  ;;  %2442 = vst [vmem:[#allocation3 + $0x78] sm:$0xff] %v2418_v10 }
 0x2e0   :  { %v2310_v47 = vpop.f32.mrf.mxu1  ;;  %v3605_v4 = vsel %vm661_vm9, 1.0, %v5606_v53  ;;  %v3606_v56 = vsel %vm662_vm12, 1.0, %v5815_v13  ;;  %vm725_vm9 = vcmp.lt.s32.totalorder %v5203_v59, 23  ;;  %vm724_vm11 = vcmp.lt.s32.totalorder %v5162_v55, 23 }
 0x2e1   :  { %v2395_v58 = vmax.f32 %v2371_v7, 0.0  ;;  %v2374_v26 = vadd.f32 %v5731_v30, %v2316_v46  ;;  %v2311_v49 = vadd.f32 %v2310_v47, %v2125_v48  ;;  %4442 = vmatprep.mubr.f32.mxu0 %v2417_v23  ;;  %2441 = vst [vmem:[#allocation3 + $0x70] sm:$0xff] %v2417_v23  ;;  %v2420_v37 = vmul.f32 %v3603_v1, %v2396_v60  ;;  %v2145_v48 = vpop.f32.mrf.mxu0 }
 0x2e2   :  { %4511 = vmatmul.mubr.f32.gmra.mxu1 %v2417_v23  ;;  %v4385_v36 = vpop.f32.mrf.mxu1  ;;  %4443 = vmatmul.mubr.f32.gmra.mxu0 %v2418_v10  ;;  %v3609_v60 = vsel %vm665_vm13, 1.0, %v5815_v13  ;;  %vm726_vm12 = vcmp.lt.s32.totalorder %v5207_v14, 23  ;;  %vm729_vm13 = vcmp.lt.s32.totalorder %v5265_v43, 23  ;;  %vm732_vm1 = vcmp.lt.s32.totalorder %v5385_v16, 23 }
 0x2e3   :  { %4513 = vmatprep.mubr.f32.mxu1 %v2418_v10  ;;  %v2398_v24 = vmax.f32 %v2374_v26, 0.0  ;;  %v2373_v3 = vadd.f32 %v5731_v30, %v2311_v49  ;;  %v2326_v12 = vadd.f32 %v4385_v36, %v4317_v54  ;;  %v2419_v61 = vmul.f32 %v3602_v11, %v2395_v58  ;;  %2444 = vst [vmem:[#allocation3 + $0x88] sm:$0xff] %v2420_v37 }
 0x2e4   :  { %v2320_v51 = vpop.f32.mrf.mxu1  ;;  %v3608_v58 = vsel %vm664_vm14, 1.0, %v5815_v13  ;;  %vm728_vm14 = vcmp.lt.s32.totalorder %v6446_v50, 23  ;;  %vm737_vm4 = vcmp.lt.s32.totalorder %v5502_v31, 23  ;;  %vm739_vm8 = vcmp.lt.s32.totalorder %v5544_v22, 23 }
 0x2e5   :  { %v2397_v53 = vmax.f32 %v2373_v3, 0.0  ;;  %v2376_v20 = vadd.f32 %v5731_v30, %v2326_v12  ;;  %v2321_v17 = vadd.f32 %v2320_v51, %v2135_v21  ;;  %4445 = vmatprep.mubr.f32.mxu0 %v2419_v61  ;;  %2443 = vst [vmem:[#allocation3 + $0x80] sm:$0xff] %v2419_v61  ;;  %v2422_v2 = vmul.f32 %v3605_v4, %v2398_v24  ;;  %v4323_v21 = vpop.f32.mrf.mxu0 }
 0x2e6   :  { %4514 = vmatmul.mubr.f32.gmra.mxu1 %v2419_v61  ;;  %v4388_v54 = vpop.f32.mrf.mxu1  ;;  %4446 = vmatmul.mubr.f32.gmra.mxu0 %v2420_v37  ;;  %v3611_v4 = vsel %vm667_vm15, 1.0, %v5815_v13  ;;  %v3610_v61 = vsel %vm666_vm0, 1.0, %v5815_v13  ;;  %vm731_vm15 = vcmp.lt.s32.totalorder %v5319_v63, 23  ;;  %vm733_vm0 = vcmp.lt.s32.totalorder %v5390_v34, 23 }
 0x2e7   :  { %4516 = vmatprep.mubr.f32.mxu1 %v2420_v37  ;;  %v2400_v29 = vmax.f32 %v2376_v20, 0.0  ;;  %v2375_v62 = vadd.f32 %v5731_v30, %v2321_v17  ;;  %v2336_v18 = vadd.f32 %v4388_v54, %v4320_v33  ;;  %v2421_v0 = vmul.f32 %v3604_v32, %v2397_v53  ;;  %2446 = vst [vmem:[#allocation3 + $0x98] sm:$0xff] %v2422_v2  ;;  %v2155_v47 = vpop.f32.mrf.mxu0 }
 0x2e8   :  { %v2330_v38 = vpop.f32.mrf.mxu1  ;;  %v6450_v22 = vlaneseq }
 0x2e9   :  { %v2399_v9 = vmax.f32 %v2375_v62, 0.0  ;;  %v2378_v5 = vadd.f32 %v5731_v30, %v2336_v18  ;;  %v2331_v10 = vadd.f32 %v2330_v38, %v2145_v48  ;;  %4448 = vmatprep.mubr.f32.mxu0 %v2421_v0  ;;  %2445 = vst [vmem:[#allocation3 + $0x90] sm:$0xff] %v2421_v0  ;;  %v2424_v39 = vmul.f32 %v3607_v35, %v2400_v29 }
 0x2ea   :  { %4517 = vmatmul.mubr.f32.gmra.mxu1 %v2421_v0  ;;  %v4391_v1 = vpop.f32.mrf.mxu1  ;;  %4449 = vmatmul.mubr.f32.gmra.mxu0 %v2422_v2  ;;  %v5856_v0 = vsel %vm717_vm5, 1.0, %v5815_v13  ;;  %vm730_vm5 = vcmp.lt.s32.totalorder %v6447_v44, 23 }
 0x2eb   :  { %4519 = vmatprep.mubr.f32.mxu1 %v2422_v2  ;;  %v2402_v7 = vmax.f32 %v2378_v5, 0.0  ;;  %v2377_v46 = vadd.f32 %v5731_v30, %v2331_v10  ;;  %v2346_v23 = vadd.f32 %v4391_v1, %v4323_v21  ;;  %v2423_v33 = vmul.f32 %v3606_v56, %v2399_v9  ;;  %2448 = vst [vmem:[#allocation3 + $0xa8] sm:$0xff] %v2424_v39 }
 0x2ec   :  { %v2340_v11 = vpop.f32.mrf.mxu1 }
 0x2ed   :  { %v2401_v26 = vmax.f32 %v2377_v46, 0.0  ;;  %v2380_v49 = vadd.f32 %v5731_v30, %v2346_v23  ;;  %v2341_v37 = vadd.f32 %v2340_v11, %v2155_v47  ;;  %4451 = vmatprep.mubr.f32.mxu0 %v2423_v33  ;;  %2447 = vst [vmem:[#allocation3 + $0xa0] sm:$0xff] %v2423_v33  ;;  %v2426_v36 = vmul.f32 %v3609_v60, %v2402_v7 }
 0x2ee   :  { %4520 = vmatmul.mubr.f32.gmra.mxu1 %v2423_v33  ;;  %4452 = vmatmul.mubr.f32.gmra.mxu0 %v2424_v39  ;;  %v5869_v46 = vsel %vm719_vm2, 1.0, %v5815_v13  ;;  %vm735_vm2 = vcmp.lt.s32.totalorder %v5460_v27, 23 }
 0x2ef   :  { %4522 = vmatprep.mubr.f32.mxu1 %v2424_v39  ;;  %v2404_v24 = vmax.f32 %v2380_v49, 0.0  ;;  %v2379_v3 = vadd.f32 %v5731_v30, %v2341_v37  ;;  %v2425_v12 = vmul.f32 %v3608_v58, %v2401_v26  ;;  %2450 = vst [vmem:[#allocation3 + $0xb8] sm:$0xff] %v2426_v36  ;;  %v5850_v30 = vld [vmem:[%s6397_s3 + $0x3] ss:$0 sm:$0xff]  ;;  %v5880_v26 = vsel %vm718_vm3, 1.0, %v5815_v13 }
 0x2f0   :  { %vm734_vm3 = vcmp.lt.s32.totalorder %v5450_v57, 23 }
 0x2f1   :  { %v2403_v48 = vmax.f32 %v2379_v3, 0.0  ;;  %4454 = vmatprep.mubr.f32.mxu0 %v2425_v12  ;;  %2449 = vst [vmem:[#allocation3 + $0xb0] sm:$0xff] %v2425_v12  ;;  %v2428_v51 = vmul.f32 %v3611_v4, %v2404_v24 }
 0x2f2   :  { %4523 = vmatmul.mubr.f32.gmra.mxu1 %v2425_v12  ;;  %4455 = vmatmul.mubr.f32.gmra.mxu0 %v2426_v36 }
 0x2f3   :  { %4525 = vmatprep.mubr.f32.mxu1 %v2426_v36  ;;  %v2427_v32 = vmul.f32 %v3610_v61, %v2403_v48  ;;  %2452 = vst [vmem:[#allocation3 + $0xc8] sm:$0xff] %v2428_v51 }
 0x2f5   :  { %4457 = vmatprep.mubr.f32.mxu0 %v2427_v32  ;;  %2451 = vst [vmem:[#allocation3 + $0xc0] sm:$0xff] %v2427_v32 }
 0x2f6   :  { %4526 = vmatmul.mubr.f32.gmra.mxu1 %v2427_v32  ;;  %4458 = vmatmul.mubr.f32.gmra.mxu0 %v2428_v51 }
 0x38a   :  { %v4494_v53 = vpop.f32.mrf.mxu1  ;;  %v4426_v20 = vpop.f32.mrf.mxu0 }
 0x38b   :  { %v2768_v17 = vadd.f32 %v4494_v53, %v4426_v20 }
 0x38c   :  { %v2762_v2 = vpop.f32.mrf.mxu1  ;;  %v2577_v54 = vpop.f32.mrf.mxu0 }
 0x38d   :  { %v2890_v35 = vadd.f32 %v5850_v30, %v2768_v17  ;;  %v2763_v29 = vadd.f32 %v2762_v2, %v2577_v54 }
 0x38e   :  { %v4497_v62 = vpop.f32.mrf.mxu1  ;;  %v4429_v18 = vpop.f32.mrf.mxu0 }
 0x38f   :  { %v2914_v21 = vmax.f32 %v2890_v35, 0.0  ;;  %v2889_v38 = vadd.f32 %v5850_v30, %v2763_v29  ;;  %v2778_v56 = vadd.f32 %v4497_v62, %v4429_v18  ;;  %v5902_v29 = vsel %vm720_vm6, 1.0, %v5815_v13 }
 0x390   :  { %v2772_v9 = vpop.f32.mrf.mxu1  ;;  %v2587_v5 = vpop.f32.mrf.mxu0  ;;  %vm738_vm6 = vcmp.lt.s32.totalorder %v5554_v45, 23 }
 0x391   :  { %v2913_v10 = vmax.f32 %v2889_v38, 0.0  ;;  %v2892_v42 = vadd.f32 %v5850_v30, %v2778_v56  ;;  %v2773_v39 = vadd.f32 %v2772_v9, %v2587_v5  ;;  %v5866_v60 = vmul.f32 %v5856_v0, %v2914_v21 }
 0x392   :  { %v4500_v1 = vpop.f32.mrf.mxu1  ;;  %v4432_v7 = vpop.f32.mrf.mxu0  ;;  %v5911_v56 = vsel %vm722_vm7, 1.0, %v5815_v13  ;;  %vm736_vm7 = vcmp.lt.s32.totalorder %v5524_v19, 23 }
 0x393   :  { %v2916_v23 = vmax.f32 %v2892_v42, 0.0  ;;  %v2891_v6 = vadd.f32 %v5850_v30, %v2773_v39  ;;  %v2788_v33 = vadd.f32 %v4500_v1, %v4432_v7  ;;  %2963 = vadd.xlane.f32.xlu0 %v5866_v60  ;;  %v5875_v58 = vmul.f32 %v5861_v41, %v2913_v10 }
 0x394   :  { %v2782_v47 = vpop.f32.mrf.mxu1  ;;  %v2597_v11 = vpop.f32.mrf.mxu0 }
 0x395   :  { %v2915_v49 = vmax.f32 %v2891_v6, 0.0  ;;  %v2894_v37 = vadd.f32 %v5850_v30, %v2788_v33  ;;  %v2783_v36 = vadd.f32 %v2782_v47, %v2597_v11  ;;  %v5884_v24 = vmul.f32 %v5869_v46, %v2916_v23 }
 0x396   :  { %v4503_v4 = vpop.f32.mrf.mxu1  ;;  %v4435_v3 = vpop.f32.mrf.mxu0  ;;  %v5930_v11 = vsel %vm725_vm9, 1.0, %v5815_v13 }
 0x397   :  { %v2918_v12 = vmax.f32 %v2894_v37, 0.0  ;;  %v2893_v61 = vadd.f32 %v5850_v30, %v2783_v36  ;;  %v2798_v48 = vadd.f32 %v4503_v4, %v4435_v3  ;;  %2967 = vadd.xlane.f32.xlu1 %v5884_v24  ;;  %2961 = vadd.xlane.f32.xlu0 %v5875_v58  ;;  %v5894_v32 = vmul.f32 %v5880_v26, %v2915_v49 }
 0x398   :  { %v2792_v8 = vpop.f32.mrf.mxu1  ;;  %v2607_v51 = vpop.f32.mrf.mxu0 }
 0x399   :  { %v2917_v53 = vmax.f32 %v2893_v61, 0.0  ;;  %v2896_v20 = vadd.f32 %v5850_v30, %v2798_v48  ;;  %v2793_v17 = vadd.f32 %v2792_v8, %v2607_v51  ;;  %v5899_v54 = vmul.f32 %v5887_v28, %v2918_v12 }
 0x39a   :  { %v4506_v2 = vpop.f32.mrf.mxu1  ;;  %v4438_v35 = vpop.f32.mrf.mxu0  ;;  %v5941_v61 = vsel %vm727_vm10, 1.0, %v5815_v13  ;;  %vm4786_vm10 = vmmov 0  }
 0x39b   :  { %v2895_v25 = vadd.f32 %v5850_v30, %v2793_v17  ;;  %v2808_v62 = vadd.f32 %v4506_v2, %v4438_v35  ;;  %2971 = vadd.xlane.f32.xlu1 %v5899_v54  ;;  %2965 = vadd.xlane.f32.xlu0 %v5894_v32  ;;  %v2920_v38 = vmax.f32 %v2896_v20, 0.0  ;;  %v5916_v39 = vmul.f32 %v5902_v29, %v2917_v53 }
 0x39c   :  { %v2802_v18 = vpop.f32.mrf.mxu1  ;;  %v2617_v21 = vpop.f32.mrf.mxu0  ;;  %v5950_v20 = vsel %vm724_vm11, 1.0, %v5815_v13  ;;  %4560 = vmatprep.mubr.msk.f32.mxu0 %vm4786_vm10, %v5815_v13  ;;  %vm3412_vm11 = vcmask 1041409  }
 0x39d   :  { %v2919_v9 = vmax.f32 %v2895_v25, 0.0  ;;  %v2898_v5 = vadd.f32 %v5850_v30, %v2808_v62  ;;  %v2803_v10 = vadd.f32 %v2802_v18, %v2617_v21  ;;  %v5935_v4 = vmul.f32 %v5919_v40, %v2920_v38 }
 0x39e   :  { %v4509_v42 = vpop.f32.mrf.mxu1  ;;  %v4441_v1 = vpop.f32.mrf.mxu0  ;;  %v5961_v18 = vsel %vm726_vm12, 1.0, %v5815_v13  ;;  %vm3414_vm12 = vcmask 1042434  }
 0x39f   :  { %v2922_v7 = vmax.f32 %v2898_v5, 0.0  ;;  %v2897_v52 = vadd.f32 %v5850_v30, %v2803_v10  ;;  %v2818_v23 = vadd.f32 %v4509_v42, %v4441_v1  ;;  %2969 = vadd.xlane.f32.xlu1 %v5916_v39  ;;  %v5925_v33 = vmul.f32 %v5911_v56, %v2919_v9 }
 0x3a0   :  { %v2812_v6 = vpop.f32.mrf.mxu1  ;;  %v2627_v47 = vpop.f32.mrf.mxu0  ;;  %v5972_v1 = vsel %vm729_vm13, 1.0, %v5815_v13  ;;  %vm3416_vm13 = vcmask 1043459  }
 0x3a1   :  { %v2900_v49 = vadd.f32 %v5850_v30, %v2818_v23  ;;  %v2813_v37 = vadd.f32 %v2812_v6, %v2627_v47  ;;  %2973 = vadd.xlane.f32.xlu0 %v5925_v33  ;;  %v2921_v12 = vmax.f32 %v2897_v52, 0.0  ;;  %v5947_v53 = vmul.f32 %v5930_v11, %v2922_v7 }
 0x3a2   :  { %v4512_v36 = vpop.f32.mrf.mxu1  ;;  %v4444_v3 = vpop.f32.mrf.mxu0 }
 0x3a3   :  { %v2924_v59 = vmax.f32 %v2900_v49, 0.0  ;;  %v2899_v48 = vadd.f32 %v5850_v30, %v2813_v37  ;;  %v2828_v8 = vadd.f32 %v4512_v36, %v4444_v3  ;;  %2975 = vadd.xlane.f32.xlu1 %v5935_v4  ;;  %v5967_v10 = vmul.f32 %v5950_v20, %v2921_v12 }
 0x3a4   :  { %v2822_v51 = vpop.f32.mrf.mxu1  ;;  %v2637_v55 = vpop.f32.mrf.mxu0  ;;  %v5983_v49 = vsel %vm728_vm14, 1.0, %v5815_v13  ;;  %vm3418_vm14 = vcmask 1044484  }
 0x3a5   :  { %v2923_v15 = vmax.f32 %v2899_v48, 0.0  ;;  %v2902_v17 = vadd.f32 %v5850_v30, %v2828_v8  ;;  %v2823_v2 = vadd.f32 %v2822_v51, %v2637_v55  ;;  %2979 = vadd.xlane.f32.xlu0 %v5947_v53  ;;  %v5956_v25 = vmul.f32 %v5941_v61, %v2924_v59 }
 0x3a6   :  { %v4515_v35 = vpop.f32.mrf.mxu1  ;;  %v4447_v62 = vpop.f32.mrf.mxu0  ;;  %v5994_v48 = vsel %vm731_vm15, 1.0, %v5815_v13  ;;  %vm3420_vm15 = vcmask 1045509  }
 0x3a7   :  { %v2926_v21 = vmax.f32 %v2902_v17, 0.0  ;;  %v2901_v38 = vadd.f32 %v5850_v30, %v2823_v2  ;;  %v2838_v9 = vadd.f32 %v4515_v35, %v4447_v62  ;;  %2983 = vadd.xlane.f32.xlu1 %v5956_v25  ;;  %v5978_v6 = vmul.f32 %v5961_v18, %v2923_v15 }
 0x3a8   :  { %v2832_v5 = vpop.f32.mrf.mxu1  ;;  %v2647_v42 = vpop.f32.mrf.mxu0  ;;  %v6005_v2 = vsel %vm733_vm0, 1.0, %v5815_v13  ;;  %vm3422_vm0 = vcmask 1046534  }
 0x3a9   :  { %v2925_v14 = vmax.f32 %v2901_v38, 0.0  ;;  %v2904_v7 = vadd.f32 %v5850_v30, %v2838_v9  ;;  %v2833_v52 = vadd.f32 %v2832_v5, %v2647_v42  ;;  %2977 = vadd.xlane.f32.xlu0 %v5967_v10  ;;  %v5989_v12 = vmul.f32 %v5972_v1, %v2926_v21 }
 0x3aa   :  { %v4518_v23 = vpop.f32.mrf.mxu1  ;;  %v4450_v47 = vpop.f32.mrf.mxu0  ;;  %v6014_v9 = vsel %vm730_vm5, 1.0, %v5815_v13  ;;  %vm3424_vm5 = vcmask 1047559  }
 0x3ab   :  { %v2928_v43 = vmax.f32 %v2904_v7, 0.0  ;;  %v2903_v37 = vadd.f32 %v5850_v30, %v2833_v52  ;;  %v2848_v36 = vadd.f32 %v4518_v23, %v4450_v47  ;;  %2981 = vadd.xlane.f32.xlu1 %v5978_v6  ;;  %v5999_v55 = vmul.f32 %v5983_v49, %v2925_v14 }
 0x3ac   :  { %v2842_v3 = vpop.f32.mrf.mxu1  ;;  %v2657_v59 = vpop.f32.mrf.mxu0  ;;  %v6025_v23 = vsel %vm732_vm1, 1.0, %v5815_v13 }
 0x3ad   :  { %v2906_v50 = vadd.f32 %v5850_v30, %v2848_v36  ;;  %v2843_v8 = vadd.f32 %v2842_v3, %v2657_v59  ;;  %2987 = vadd.xlane.f32.xlu0 %v5989_v12  ;;  %v2927_v17 = vmax.f32 %v2903_v37, 0.0  ;;  %v6011_v38 = vmul.f32 %v5994_v48, %v2928_v43 }
 0x3ae   :  { %v4521_v51 = vpop.f32.mrf.mxu1  ;;  %v4453_v15 = vpop.f32.mrf.mxu0 }
 0x3af   :  { %v2930_v63 = vmax.f32 %v2906_v50, 0.0  ;;  %v2905_v35 = vadd.f32 %v5850_v30, %v2843_v8  ;;  %v2858_v62 = vadd.f32 %v4521_v51, %v4453_v15  ;;  %2985 = vadd.xlane.f32.xlu1 %v5999_v55  ;;  %v6031_v3 = vmul.f32 %v6014_v9, %v2927_v17 }
 0x3b0   :  { %v2852_v21 = vpop.f32.mrf.mxu1  ;;  %v2667_v44 = vpop.f32.mrf.mxu0  ;;  %v6036_v50 = vsel %vm735_vm2, 1.0, %v5815_v13 }
 0x3b1   :  { %v2929_v34 = vmax.f32 %v2905_v35, 0.0  ;;  %v2908_v5 = vadd.f32 %v5850_v30, %v2858_v62  ;;  %v2853_v42 = vadd.f32 %v2852_v21, %v2667_v44  ;;  %2991 = vadd.xlane.f32.xlu0 %v6011_v38  ;;  %v6020_v7 = vmul.f32 %v6005_v2, %v2930_v63 }
 0x3b2   :  { %v4524_v14 = vpop.f32.mrf.mxu1  ;;  %v4456_v52 = vpop.f32.mrf.mxu0  ;;  %v6047_v35 = vsel %vm734_vm3, 1.0, %v5815_v13 }
 0x3b3   :  { %v2932_v47 = vmax.f32 %v2908_v5, 0.0  ;;  %v2907_v43 = vadd.f32 %v5850_v30, %v2853_v42  ;;  %v2868_v37 = vadd.f32 %v4524_v14, %v4456_v52  ;;  %2995 = vadd.xlane.f32.xlu1 %v6020_v7  ;;  %v6042_v63 = vmul.f32 %v6025_v23, %v2929_v34 }
 0x3b4   :  { %v2862_v36 = vpop.f32.mrf.mxu1  ;;  %v2677_v59 = vpop.f32.mrf.mxu0  ;;  %v6057_v34 = vsel %vm737_vm4, 1.0, %v5815_v13 }
 0x3b5   :  { %v2931_v16 = vmax.f32 %v2907_v43, 0.0  ;;  %v2910_v8 = vadd.f32 %v5850_v30, %v2868_v37  ;;  %v2863_v51 = vadd.f32 %v2862_v36, %v2677_v59  ;;  %2989 = vadd.xlane.f32.xlu0 %v6031_v3  ;;  %v6052_v5 = vmul.f32 %v6036_v50, %v2932_v47 }
 0x3b6   :  { %v4527_v15 = vpop.f32.mrf.mxu1  ;;  %v4459_v17 = vpop.f32.mrf.mxu0  ;;  %v6072_v37 = vsel %vm738_vm6, 1.0, %v5815_v13  ;;  %v6075_v36 = vsel %vm736_vm7, 1.0, %v5815_v13 }
 0x3b7   :  { %v2934_v27 = vmax.f32 %v2910_v8, 0.0  ;;  %v2909_v62 = vadd.f32 %v5850_v30, %v2863_v51  ;;  %v2878_v21 = vadd.f32 %v4527_v15, %v4459_v17  ;;  %2993 = vadd.xlane.f32.xlu1 %v6042_v63  ;;  %v6061_v57 = vmul.f32 %v6047_v35, %v2931_v16  ;;  %6448 = vst [vmem:[#allocation17_spill] sm:$0xff] %v6075_v36 }
 0x3b8   :  { %v2872_v44 = vpop.f32.mrf.mxu1  ;;  %v2687_v42 = vpop.f32.mrf.mxu0  ;;  %v6086_v16 = vsel %vm739_vm8, 1.0, %v5815_v13  ;;  %v3058_v51 = vand.u32 127, %v6450_v22 }
 0x3b9   :  { %v2873_v14 = vadd.f32 %v2872_v44, %v2687_v42  ;;  %2999 = vadd.xlane.f32.xlu0 %v6052_v5  ;;  %v2933_v52 = vmax.f32 %v2909_v62, 0.0  ;;  %v2912_v47 = vadd.f32 %v5850_v30, %v2878_v21  ;;  %v6069_v31 = vmul.f32 %v6057_v34, %v2934_v27  ;;  %6449 = vst [vmem:[#allocation18_spill] sm:$0xff] %v6086_v16 }
 0x3ba   :  { %vm3059_vm9 = vcmp.lt.s32.totalorder %v3058_v51, 32 }
 0x3bb   :  { %v2911_v43 = vadd.f32 %v5850_v30, %v2873_v14  ;;  %2997 = vadd.xlane.f32.xlu1 %v6061_v57  ;;  %v2936_v19 = vmax.f32 %v2912_v47, 0.0  ;;  %v6083_v30 = vmul.f32 %v6075_v36, %v2933_v52  ;;  %v6096_v27 = vsel %vm3059_vm9, 1.0, %v5815_v13 }
 0x3bd   :  { %v2935_v59 = vmax.f32 %v2911_v43, 0.0  ;;  %3003 = vadd.xlane.f32.xlu0 %v6069_v31  ;;  %v6091_v8 = vmul.f32 %v6086_v16, %v2936_v19 }
 0x3bf   :  { %v6080_v45 = vmul.f32 %v6072_v37, %v2935_v59 }
 0x3c1   :  { %3005 = vadd.xlane.f32.xlu1 %v6080_v45  ;;  %3001 = vadd.xlane.f32.xlu0 %v6083_v30 }
 0x3c5   :  { %3007 = vadd.xlane.f32.xlu1 %v6091_v8 }
 0x41c   :  { %v2964_v15 = vpop.xlane.xlu0 %2963 }
 0x41d   :  { %v3010_v17 = vmul.f32 0.03125, %v2964_v15 }
 0x41f   :  { %v6099_v62 = vsub.f32 %v5866_v60, %v3010_v17 }
 0x420   :  { %v2968_v21 = vpop.xlane.xlu1 %2967  ;;  %v2962_v44 = vpop.xlane.xlu0 %2961 }
 0x421   :  { %v3012_v42 = vmul.f32 0.03125, %v2968_v21  ;;  %v3009_v14 = vmul.f32 0.03125, %v2962_v44  ;;  %v3063_v52 = vmul.f32 %v6096_v27, %v6099_v62 }
 0x423   :  { %v6104_v47 = vsub.f32 %v5884_v24, %v3012_v42  ;;  %v6107_v43 = vsub.f32 %v5875_v58, %v3009_v14  ;;  %v3087_v59 = vmul.f32 %v3063_v52, %v3063_v52 }
 0x424   :  { %v2972_v19 = vpop.xlane.xlu1 %2971  ;;  %v2966_v22 = vpop.xlane.xlu0 %2965 }
 0x425   :  { %v3014_v51 = vmul.f32 0.03125, %v2972_v19  ;;  %v3011_v15 = vmul.f32 0.03125, %v2966_v22  ;;  %3112 = vadd.xlane.f32.xlu1 %v3087_v59  ;;  %v3062_v60 = vmul.f32 %v6096_v27, %v6107_v43  ;;  %v3065_v58 = vmul.f32 %v6096_v27, %v6104_v47 }
 0x427   :  { %v6112_v17 = vsub.f32 %v5899_v54, %v3014_v51  ;;  %v6115_v21 = vsub.f32 %v5894_v32, %v3011_v15  ;;  %v3086_v24 = vmul.f32 %v3062_v60, %v3062_v60  ;;  %v3089_v22 = vmul.f32 %v3065_v58, %v3065_v58 }
 0x428   :  { %v2970_v44 = vpop.xlane.xlu1 %2969 }
 0x429   :  { %v3013_v42 = vmul.f32 0.03125, %v2970_v44  ;;  %3110 = vadd.xlane.f32.xlu0 %v3086_v24  ;;  %v3067_v14 = vmul.f32 %v6096_v27, %v6112_v17  ;;  %v3064_v59 = vmul.f32 %v6096_v27, %v6115_v21 }
 0x42a   :  { %v2974_v52 = vpop.xlane.xlu0 %2973 }
 0x42b   :  { %v6124_v54 = vsub.f32 %v5916_v39, %v3013_v42  ;;  %v3015_v19 = vmul.f32 0.03125, %v2974_v52  ;;  %v3091_v32 = vmul.f32 %v3067_v14, %v3067_v14  ;;  %v3088_v16 = vmul.f32 %v3064_v59, %v3064_v59 }
 0x42c   :  { %v2976_v51 = vpop.xlane.xlu1 %2975 }
 0x42d   :  { %v6127_v15 = vsub.f32 %v5925_v33, %v3015_v19  ;;  %v3016_v60 = vmul.f32 0.03125, %v2976_v51  ;;  %3120 = vadd.xlane.f32.xlu1 %v3091_v32  ;;  %3116 = vadd.xlane.f32.xlu0 %v3089_v22  ;;  %v3066_v24 = vmul.f32 %v6096_v27, %v6124_v54 }
 0x42e   :  { %v2980_v44 = vpop.xlane.xlu0 %2979 }
 0x42f   :  { %v6132_v36 = vsub.f32 %v5935_v4, %v3016_v60  ;;  %v3018_v39 = vmul.f32 0.03125, %v2980_v44  ;;  %v3090_v42 = vmul.f32 %v3066_v24, %v3066_v24  ;;  %v3068_v58 = vmul.f32 %v6096_v27, %v6127_v15 }
 0x430   :  { %v2984_v14 = vpop.xlane.xlu1 %2983 }
 0x431   :  { %v6137_v33 = vsub.f32 %v5947_v53, %v3018_v39  ;;  %v3020_v52 = vmul.f32 0.03125, %v2984_v14  ;;  %3118 = vadd.xlane.f32.xlu1 %v3090_v42  ;;  %3114 = vadd.xlane.f32.xlu0 %v3088_v16  ;;  %v3069_v19 = vmul.f32 %v6096_v27, %v6132_v36  ;;  %v3092_v59 = vmul.f32 %v3068_v58, %v3068_v58 }
 0x432   :  { %v2978_v32 = vpop.xlane.xlu0 %2977 }
 0x433   :  { %v6142_v4 = vsub.f32 %v5956_v25, %v3020_v52  ;;  %v3017_v22 = vmul.f32 0.03125, %v2978_v32  ;;  %v3093_v51 = vmul.f32 %v3069_v19, %v3069_v19  ;;  %v3071_v60 = vmul.f32 %v6096_v27, %v6137_v33 }
 0x434   :  { %v2982_v24 = vpop.xlane.xlu1 %2981 }
 0x435   :  { %v6147_v53 = vsub.f32 %v5967_v10, %v3017_v22  ;;  %v3019_v44 = vmul.f32 0.03125, %v2982_v24  ;;  %3124 = vadd.xlane.f32.xlu1 %v3093_v51  ;;  %3122 = vadd.xlane.f32.xlu0 %v3092_v59  ;;  %v3073_v16 = vmul.f32 %v6096_v27, %v6142_v4  ;;  %v3095_v42 = vmul.f32 %v3071_v60, %v3071_v60 }
 0x436   :  { %v2988_v39 = vpop.xlane.xlu0 %2987 }
 0x437   :  { %v6152_v25 = vsub.f32 %v5978_v6, %v3019_v44  ;;  %v3022_v58 = vmul.f32 0.03125, %v2988_v39  ;;  %v3097_v14 = vmul.f32 %v3073_v16, %v3073_v16  ;;  %v3070_v52 = vmul.f32 %v6096_v27, %v6147_v53 }
 0x438   :  { %v2986_v19 = vpop.xlane.xlu1 %2985 }
 0x439   :  { %v6157_v10 = vsub.f32 %v5989_v12, %v3022_v58  ;;  %v3021_v32 = vmul.f32 0.03125, %v2986_v19  ;;  %3132 = vadd.xlane.f32.xlu1 %v3097_v14  ;;  %3128 = vadd.xlane.f32.xlu0 %v3095_v42  ;;  %v3072_v59 = vmul.f32 %v6096_v27, %v6152_v25  ;;  %v3094_v51 = vmul.f32 %v3070_v52, %v3070_v52 }
 0x43a   :  { %v2992_v22 = vpop.xlane.xlu0 %2991 }
 0x43b   :  { %v6162_v6 = vsub.f32 %v5999_v55, %v3021_v32  ;;  %v3024_v60 = vmul.f32 0.03125, %v2992_v22  ;;  %v3096_v24 = vmul.f32 %v3072_v59, %v3072_v59  ;;  %v3075_v44 = vmul.f32 %v6096_v27, %v6157_v10 }
 0x43c   :  { %v2996_v16 = vpop.xlane.xlu1 %2995 }
 0x43d   :  { %v6167_v12 = vsub.f32 %v6011_v38, %v3024_v60  ;;  %v3026_v39 = vmul.f32 0.03125, %v2996_v16  ;;  %3130 = vadd.xlane.f32.xlu1 %v3096_v24  ;;  %3126 = vadd.xlane.f32.xlu0 %v3094_v51  ;;  %v3074_v42 = vmul.f32 %v6096_v27, %v6162_v6  ;;  %v3099_v14 = vmul.f32 %v3075_v44, %v3075_v44 }
 0x43e   :  { %v2990_v58 = vpop.xlane.xlu0 %2989 }
 0x43f   :  { %v6172_v55 = vsub.f32 %v6020_v7, %v3026_v39  ;;  %v3023_v52 = vmul.f32 0.03125, %v2990_v58  ;;  %v3098_v19 = vmul.f32 %v3074_v42, %v3074_v42  ;;  %v3077_v32 = vmul.f32 %v6096_v27, %v6167_v12 }
 0x440   :  { %v2994_v59 = vpop.xlane.xlu1 %2993 }
 0x441   :  { %v6177_v38 = vsub.f32 %v6031_v3, %v3023_v52  ;;  %v3025_v22 = vmul.f32 0.03125, %v2994_v59  ;;  %3134 = vadd.xlane.f32.xlu1 %v3098_v19  ;;  %3136 = vadd.xlane.f32.xlu0 %v3099_v14  ;;  %v3079_v51 = vmul.f32 %v6096_v27, %v6172_v55  ;;  %v3101_v24 = vmul.f32 %v3077_v32, %v3077_v32 }
 0x442   :  { %v3000_v60 = vpop.xlane.xlu0 %2999 }
 0x443   :  { %v6182_v7 = vsub.f32 %v6042_v63, %v3025_v22  ;;  %v3028_v44 = vmul.f32 0.03125, %v3000_v60  ;;  %v3103_v16 = vmul.f32 %v3079_v51, %v3079_v51  ;;  %v3076_v39 = vmul.f32 %v6096_v27, %v6177_v38 }
 0x444   :  { %v2998_v42 = vpop.xlane.xlu1 %2997 }
 0x445   :  { %v6187_v3 = vsub.f32 %v6052_v5, %v3028_v44  ;;  %v3027_v58 = vmul.f32 0.03125, %v2998_v42  ;;  %3144 = vadd.xlane.f32.xlu1 %v3103_v16  ;;  %3140 = vadd.xlane.f32.xlu0 %v3101_v24  ;;  %v3078_v14 = vmul.f32 %v6096_v27, %v6182_v7  ;;  %v3100_v19 = vmul.f32 %v3076_v39, %v3076_v39 }
 0x446   :  { %v3004_v52 = vpop.xlane.xlu0 %3003 }
 0x447   :  { %v6192_v63 = vsub.f32 %v6061_v57, %v3027_v58  ;;  %v3030_v32 = vmul.f32 0.03125, %v3004_v52  ;;  %v3102_v59 = vmul.f32 %v3078_v14, %v3078_v14  ;;  %v3081_v22 = vmul.f32 %v6096_v27, %v6187_v3 }
 0x449   :  { %v6197_v51 = vsub.f32 %v6069_v31, %v3030_v32  ;;  %3142 = vadd.xlane.f32.xlu1 %v3102_v59  ;;  %3138 = vadd.xlane.f32.xlu0 %v3100_v19  ;;  %v3080_v5 = vmul.f32 %v6096_v27, %v6192_v63  ;;  %v3105_v44 = vmul.f32 %v3081_v22, %v3081_v22 }
 0x44a   :  { %v3006_v60 = vpop.xlane.xlu1 %3005  ;;  %v3002_v24 = vpop.xlane.xlu0 %3001 }
 0x44b   :  { %v3031_v16 = vmul.f32 0.03125, %v3006_v60  ;;  %v3029_v39 = vmul.f32 0.03125, %v3002_v24  ;;  %v3104_v57 = vmul.f32 %v3080_v5, %v3080_v5  ;;  %v3083_v42 = vmul.f32 %v6096_v27, %v6197_v51  ;;  %v3444_v24 = vld [vmem:[#allocation10 + $0x78] sm:$0xff] }
 0x44c   :  { %4529 = vmatpush3.msra.mxu0 %v3444_v24 }
 0x44d   :  { %v6204_v58 = vsub.f32 %v6080_v45, %v3031_v16  ;;  %v6207_v31 = vsub.f32 %v6083_v30, %v3029_v39  ;;  %3146 = vadd.xlane.f32.xlu1 %v3104_v57  ;;  %3148 = vadd.xlane.f32.xlu0 %v3105_v44  ;;  %v3107_v19 = vmul.f32 %v3083_v42, %v3083_v42  ;;  %v3443_v44 = vld [vmem:[#allocation10 + $0x70] sm:$0xff]  ;;  %v3441_v16 = vld [vmem:[#allocation10 + $0x60] sm:$0xff]  ;;  %v3438_v57 = vld [vmem:[#allocation10 + $0x48] sm:$0xff] }
 0x44e   :  { %v3008_v14 = vpop.xlane.xlu1 %3007  ;;  %4530 = vmatprep.subr.mxu0 %v5815_v13  ;;  %v3439_v39 = vld [vmem:[#allocation10 + $0x50] sm:$0xff]  ;;  %v3437_v42 = vld [vmem:[#allocation10 + $0x40] sm:$0xff] }
 0x44f   :  { %6451 = vst [vmem:[#allocation19_spill] sm:$0xff] %v6207_v31  ;;  %v3032_v52 = vmul.f32 0.03125, %v3008_v14  ;;  %v3084_v32 = vmul.f32 %v6096_v27, %v6204_v58  ;;  %v3082_v59 = vmul.f32 %v6096_v27, %v6207_v31  ;;  %4531 = vmatpush3.msra.mxu0 %v3443_v44  ;;  %v3436_v14 = vld [vmem:[#allocation10 + $0x38] sm:$0xff] }
 0x450   :  { %4532 = vmatprep.subr.mxu0 %v5815_v13 }
 0x451   :  { %v6214_v22 = vsub.f32 %v6091_v8, %v3032_v52  ;;  %3152 = vadd.xlane.f32.xlu0 %v3107_v19  ;;  %v3108_v45 = vmul.f32 %v3084_v32, %v3084_v32  ;;  %v3106_v5 = vmul.f32 %v3082_v59, %v3082_v59  ;;  %v3442_v8 = vld [vmem:[#allocation10 + $0x68] sm:$0xff]  ;;  %v3435_v52 = vld [vmem:[#allocation10 + $0x30] sm:$0xff]  ;;  %v3433_v32 = vld [vmem:[#allocation10 + $0x20] sm:$0xff] }
 0x452   :  { %4533 = vmatpush3.msra.mxu0 %v3442_v8  ;;  %v3434_v19 = vld [vmem:[#allocation10 + $0x28] sm:$0xff]  ;;  %v3432_v59 = vld [vmem:[#allocation10 + $0x18] sm:$0xff] }
 0x453   :  { %6452 = vst [vmem:[#allocation20_spill] sm:$0xff] %v6214_v22  ;;  %3154 = vadd.xlane.f32.xlu1 %v3108_v45  ;;  %v3085_v30 = vmul.f32 %v6096_v27, %v6214_v22  ;;  %4534 = vmatprep.subr.mxu0 %v5815_v13  ;;  %v3440_v27 = vld [vmem:[#allocation10 + $0x58] sm:$0xff]  ;;  %v3431_v45 = vld [vmem:[#allocation10 + $0x10] sm:$0xff] }
 0x454   :  { %4535 = vmatpush3.msra.mxu0 %v3441_v16 }
 0x455   :  { %3150 = vadd.xlane.f32.xlu0 %v3106_v5  ;;  %v3109_v60 = vmul.f32 %v3085_v30, %v3085_v30  ;;  %4536 = vmatprep.subr.mxu0 %v5815_v13  ;;  %v3430_v5 = vld [vmem:[#allocation10 + $0x8] sm:$0xff]  ;;  %v3429_v30 = vld [vmem:[#allocation10] sm:$0xff] }
 0x456   :  { %4537 = vmatpush3.msra.mxu0 %v3440_v27 }
 0x457   :  { %3156 = vadd.xlane.f32.xlu1 %v3109_v60  ;;  %4538 = vmatprep.subr.mxu0 %v5815_v13 }
 0x458   :  { %4539 = vmatpush3.msra.mxu0 %v3439_v39 }
 0x459   :  { %4540 = vmatprep.subr.mxu0 %v5815_v13 }
 0x45a   :  { %4541 = vmatpush3.msra.mxu0 %v3438_v57 }
 0x45b   :  { %4542 = vmatprep.subr.mxu0 %v5815_v13 }
 0x45c   :  { %4543 = vmatpush3.msra.mxu0 %v3437_v42 }
 0x45d   :  { %4544 = vmatprep.subr.mxu0 %v5815_v13 }
 0x45e   :  { %4545 = vmatpush3.msra.mxu0 %v3436_v14 }
 0x45f   :  { %4546 = vmatprep.subr.mxu0 %v5815_v13 }
 0x460   :  { %4547 = vmatpush3.msra.mxu0 %v3435_v52 }
 0x461   :  { %4548 = vmatprep.subr.mxu0 %v5815_v13 }
 0x462   :  { %4549 = vmatpush3.msra.mxu0 %v3434_v19 }
 0x463   :  { %4550 = vmatprep.subr.mxu0 %v5815_v13 }
 0x464   :  { %4551 = vmatpush3.msra.mxu0 %v3433_v32 }
 0x465   :  { %4552 = vmatprep.subr.mxu0 %v5815_v13 }
 0x466   :  { %4553 = vmatpush3.msra.mxu0 %v3432_v59 }
 0x467   :  { %4554 = vmatprep.subr.mxu0 %v5815_v13 }
 0x468   :  { %4555 = vmatpush3.msra.mxu0 %v3431_v45 }
 0x469   :  { %4556 = vmatprep.subr.mxu0 %v5815_v13 }
 0x46a   :  { %4557 = vmatpush3.msra.mxu0 %v3430_v5 }
 0x46b   :  { %4558 = vmatprep.subr.mxu0 %v5815_v13 }
 0x46c   :  { %4559 = vmatpush3.msra.mxu0 %v3429_v30 }
 0x4ae   :  { %v3113_v60 = vpop.xlane.xlu1 %3112 }
 0x4af   :  { %v3159_v44 = vmul.f32 0.03125, %v3113_v60 }
 0x4b1   :  { %v3183_v57 = vadd.f32 1e-05, %v3159_v44 }
 0x4b2   :  { %v3111_v24 = vpop.xlane.xlu0 %3110 }
 0x4b3   :  { %v3158_v8 = vmul.f32 0.03125, %v3111_v24 }
 0x4b5   :  { %v3182_v16 = vadd.f32 1e-05, %v3158_v8 }
 0x4b6   :  { %v3121_v27 = vpop.xlane.xlu1 %3120  ;;  %v3117_v39 = vpop.xlane.xlu0 %3116 }
 0x4b7   :  { %v3163_v42 = vmul.f32 0.03125, %v3121_v27  ;;  %v3161_v14 = vmul.f32 0.03125, %v3117_v39  ;;  %4620 = vrsqrt.f32 %v3182_v16 }
 0x4b8   :  { %4622 = vrsqrt.f32 %v3183_v57 }
 0x4b9   :  { %v3187_v52 = vadd.f32 1e-05, %v3163_v42  ;;  %v3185_v19 = vadd.f32 1e-05, %v3161_v14 }
 0x4ba   :  { %v3119_v32 = vpop.xlane.xlu1 %3118  ;;  %v3115_v59 = vpop.xlane.xlu0 %3114 }
 0x4bb   :  { %v3162_v45 = vmul.f32 0.03125, %v3119_v32  ;;  %v3160_v5 = vmul.f32 0.03125, %v3115_v59  ;;  %4624 = vrsqrt.f32 %v3185_v19 }
 0x4bc   :  { %4626 = vrsqrt.f32 %v3187_v52  ;;  %v6235_v52 = vmul.f32 0.04347826, %v5856_v0 }
 0x4bd   :  { %v3186_v13 = vadd.f32 1e-05, %v3162_v45  ;;  %v3184_v30 = vadd.f32 1e-05, %v3160_v5  ;;  %v6238_v5 = vmul.f32 0.04347826, %v5869_v46 }
 0x4be   :  { %v3125_v60 = vpop.xlane.xlu1 %3124  ;;  %v3123_v24 = vpop.xlane.xlu0 %3122  ;;  %v6253_v46 = vmul.f32 0.04347826, %v5911_v56 }
 0x4bf   :  { %4628 = vrsqrt.f32 %v3186_v13  ;;  %v3165_v8 = vmul.f32 0.03125, %v3125_v60  ;;  %v3164_v22 = vmul.f32 0.03125, %v3123_v24  ;;  %v6244_v60 = vmul.f32 0.04347826, %v5887_v28 }
 0x4c0   :  { %4630 = vrsqrt.f32 %v3184_v30  ;;  %v6247_v24 = vmul.f32 0.04347826, %v5880_v26  ;;  %v6260_v28 = vmul.f32 0.04347826, %v5930_v11 }
 0x4c1   :  { %v3189_v44 = vadd.f32 1e-05, %v3165_v8  ;;  %v3188_v27 = vadd.f32 1e-05, %v3164_v22  ;;  %v6241_v22 = vmul.f32 0.04347826, %v5861_v41 }
 0x4c2   :  { %v3133_v16 = vpop.xlane.xlu1 %3132  ;;  %v3129_v39 = vpop.xlane.xlu0 %3128 }
 0x4c3   :  { %4632 = vrsqrt.f32 %v3189_v44  ;;  %v3169_v42 = vmul.f32 0.03125, %v3133_v16  ;;  %v3167_v14 = vmul.f32 0.03125, %v3129_v39  ;;  %v6250_v44 = vmul.f32 0.04347826, %v5902_v29 }
 0x4c4   :  { %4634 = vrsqrt.f32 %v3188_v27  ;;  %v4621_v19 = vpop.eup %4620  ;;  %v6257_v39 = vmul.f32 0.04347826, %v5919_v40  ;;  %v6272_v40 = vld [vmem:[%s6398_s4] ss:$0 sm:$0xff] }
 0x4c5   :  { %v3193_v57 = vadd.f32 1e-05, %v3169_v42  ;;  %v3191_v32 = vadd.f32 1e-05, %v3167_v14  ;;  %v4623_v30 = vpop.eup %4622  ;;  %v3230_v41 = vmul.f32 %v4621_v19, %v6107_v43  ;;  %v6267_v43 = vmul.f32 0.04347826, %v5950_v20 }
 0x4c6   :  { %v3131_v59 = vpop.xlane.xlu1 %3130  ;;  %v3127_v45 = vpop.xlane.xlu0 %3126  ;;  %v3231_v29 = vmul.f32 %v4623_v30, %v6099_v62  ;;  %v6282_v20 = vmul.f32 0.04347826, %v5972_v1 }
 0x4c7   :  { %4636 = vrsqrt.f32 %v3193_v57  ;;  %v3168_v13 = vmul.f32 0.03125, %v3131_v59  ;;  %v3166_v0 = vmul.f32 0.03125, %v3127_v45  ;;  %v6263_v57 = vmul.f32 0.04347826, %v5941_v61 }
 0x4c8   :  { %4638 = vrsqrt.f32 %v3191_v32  ;;  %v4625_v8 = vpop.eup %4624  ;;  %v3261_v61 = vmul.f32 %v6272_v40, %v3230_v41 }
 0x4c9   :  { %v3192_v27 = vadd.f32 1e-05, %v3168_v13  ;;  %v4627_v16 = vpop.eup %4626  ;;  %v3190_v26 = vadd.f32 1e-05, %v3166_v0  ;;  %v3233_v11 = vmul.f32 %v4625_v8, %v6104_v47  ;;  %v6279_v13 = vmul.f32 0.04347826, %v5961_v18 }
 0x4ca   :  { %v3135_v42 = vpop.xlane.xlu1 %3134  ;;  %v3137_v14 = vpop.xlane.xlu0 %3136  ;;  %v3235_v59 = vmul.f32 %v4627_v16, %v6112_v17  ;;  %v3262_v47 = vmul.f32 %v6272_v40, %v3231_v29  ;;  %v6292_v18 = vld [vmem:[%s6399_s5] ss:$0 sm:$0xff] }
 0x4cb   :  { %4640 = vrsqrt.f32 %v3192_v27  ;;  %v3170_v56 = vmul.f32 0.03125, %v3135_v42  ;;  %v3171_v19 = vmul.f32 0.03125, %v3137_v14  ;;  %v3264_v1 = vmul.f32 %v6272_v40, %v3233_v11 }
 0x4cc   :  { %v4629_v32 = vpop.eup %4628  ;;  %4642 = vrsqrt.f32 %v3190_v26  ;;  %v3292_v14 = vadd.f32 %v6292_v18, %v3261_v61  ;;  %v3266_v29 = vmul.f32 %v6272_v40, %v3235_v59  ;;  %v3293_v11 = vadd.f32 %v6292_v18, %v3262_v47 }
 0x4cd   :  { %v3234_v62 = vmul.f32 %v4629_v32, %v6124_v54  ;;  %v3194_v45 = vadd.f32 1e-05, %v3170_v56  ;;  %v3195_v30 = vadd.f32 1e-05, %v3171_v19  ;;  %v4631_v42 = vpop.eup %4630  ;;  %v6287_v54 = vmul.f32 0.04347826, %v5983_v49 }
 0x4ce   :  { %v3145_v0 = vpop.xlane.xlu1 %3144  ;;  %v3141_v27 = vpop.xlane.xlu0 %3140  ;;  %v3232_v19 = vmul.f32 %v4631_v42, %v6115_v21  ;;  %v3295_v59 = vadd.f32 %v6292_v18, %v3264_v1  ;;  %v6306_v21 = vmul.f32 0.04347826, %v5994_v48  ;;  %v3297_v42 = vadd.f32 %v6292_v18, %v3266_v29 }
 0x4cf   :  { %v3265_v8 = vmul.f32 %v6272_v40, %v3234_v62  ;;  %4644 = vrsqrt.f32 %v3194_v45  ;;  %v3175_v41 = vmul.f32 0.03125, %v3145_v0  ;;  %v3173_v16 = vmul.f32 0.03125, %v3141_v27 }
 0x4d0   :  { %v4633_v17 = vpop.eup %4632  ;;  %4646 = vrsqrt.f32 %v3195_v30 }
 0x4d1   :  { %v4635_v26 = vpop.eup %4634  ;;  %v3237_v56 = vmul.f32 %v4633_v17, %v6132_v36  ;;  %v3199_v32 = vadd.f32 1e-05, %v3175_v41  ;;  %v3296_v49 = vadd.f32 %v6292_v18, %v3265_v8  ;;  %v3197_v45 = vadd.f32 1e-05, %v3173_v16 }
 0x4d2   :  { %v3236_v62 = vmul.f32 %v4635_v26, %v6127_v15  ;;  %v3143_v0 = vpop.xlane.xlu1 %3142  ;;  %v3139_v31 = vpop.xlane.xlu0 %3138  ;;  %v3316_v15 = vmul.f32 %v3292_v14, %v6241_v22  ;;  %v3263_v16 = vmul.f32 %v6272_v40, %v3232_v19  ;;  %v3319_v14 = vmul.f32 %v3295_v59, %v6238_v5 }
 0x4d3   :  { %v3268_v30 = vmul.f32 %v6272_v40, %v3237_v56  ;;  %4648 = vrsqrt.f32 %v3199_v32  ;;  %v3174_v61 = vmul.f32 0.03125, %v3143_v0  ;;  %v3172_v8 = vmul.f32 0.03125, %v3139_v31 }
 0x4d4   :  { %v4637_v27 = vpop.eup %4636  ;;  %v3267_v36 = vmul.f32 %v6272_v40, %v3236_v62  ;;  %4650 = vrsqrt.f32 %v3197_v45  ;;  %v3320_v17 = vmul.f32 %v3296_v49, %v6250_v44  ;;  %v3317_v31 = vmul.f32 %v3293_v11, %v6235_v52 }
 0x4d5   :  { %v4639_v41 = vpop.eup %4638  ;;  %v3198_v47 = vadd.f32 1e-05, %v3174_v61  ;;  %v3196_v1 = vadd.f32 1e-05, %v3172_v8  ;;  %v3299_v62 = vadd.f32 %v6292_v18, %v3268_v30  ;;  %v3241_v48 = vmul.f32 %v4637_v27, %v6142_v4 }
 0x4d6   :  { %v3239_v26 = vmul.f32 %v4639_v41, %v6137_v33  ;;  %v3147_v56 = vpop.xlane.xlu1 %3146  ;;  %v3149_v32 = vpop.xlane.xlu0 %3148  ;;  %v3298_v29 = vadd.f32 %v6292_v18, %v3267_v36  ;;  %v6320_v33 = vmul.f32 0.04347826, %v6025_v23  ;;  %v3340_v19 = vadd.f32 %v3317_v31, %v3316_v15 }
 0x4d7   :  { %4652 = vrsqrt.f32 %v3198_v47  ;;  %v3176_v45 = vmul.f32 0.03125, %v3147_v56  ;;  %v3321_v0 = vmul.f32 %v3297_v42, %v6244_v60  ;;  %v3348_v4 = vadd.f32 %v3320_v17, %v3319_v14 }
 0x4d8   :  { %v4641_v22 = vpop.eup %4640  ;;  %v3270_v44 = vmul.f32 %v6272_v40, %v3239_v26  ;;  %4654 = vrsqrt.f32 %v3196_v1  ;;  %v3294_v11 = vadd.f32 %v6292_v18, %v3263_v16  ;;  %v3323_v61 = vmul.f32 %v3299_v62, %v6257_v39 }
 0x4d9   :  { %v4643_v49 = vpop.eup %4642  ;;  %v3240_v52 = vmul.f32 %v4641_v22, %v6152_v25  ;;  %v3272_v27 = vmul.f32 %v6272_v40, %v3241_v48  ;;  %v3200_v23 = vadd.f32 1e-05, %v3176_v45  ;;  %v3322_v8 = vmul.f32 %v3298_v29, %v6253_v46 }
 0x4da   :  { %v3238_v5 = vmul.f32 %v4643_v49, %v6147_v53  ;;  %v3153_v30 = vpop.xlane.xlu0 %3152  ;;  %v3301_v25 = vadd.f32 %v6292_v18, %v3270_v44  ;;  %v3177_v41 = vmul.f32 0.03125, %v3149_v32 }
 0x4db   :  { %v3271_v59 = vmul.f32 %v6272_v40, %v3240_v52  ;;  %4656 = vrsqrt.f32 %v3200_v23  ;;  %v3179_v39 = vmul.f32 0.03125, %v3153_v30  ;;  %v3356_v49 = vadd.f32 %v3323_v61, %v3322_v8 }
 0x4dc   :  { %v4645_v36 = vpop.eup %4644  ;;  %v3269_v60 = vmul.f32 %v6272_v40, %v3238_v5  ;;  %v3155_v15 = vpop.xlane.xlu1 %3154  ;;  %v3201_v26 = vadd.f32 1e-05, %v3177_v41  ;;  %v3325_v45 = vmul.f32 %v3301_v25, %v6260_v28 }
 0x4dd   :  { %v4647_v42 = vpop.eup %4646  ;;  %v3302_v53 = vadd.f32 %v6292_v18, %v3271_v59  ;;  %v3242_v47 = vmul.f32 %v4645_v36, %v6162_v6  ;;  %v3180_v1 = vmul.f32 0.03125, %v3155_v15  ;;  %v3203_v32 = vadd.f32 1e-05, %v3179_v39 }
 0x4de   :  { %v3300_v17 = vadd.f32 %v6292_v18, %v3269_v60  ;;  %v3243_v16 = vmul.f32 %v4647_v42, %v6157_v10  ;;  %v3151_v46 = vpop.xlane.xlu0 %3150  ;;  %4658 = vrsqrt.f32 %v3201_v26  ;;  %v3318_v10 = vmul.f32 %v3294_v11, %v6247_v24 }
 0x4df   :  { %v3326_v56 = vmul.f32 %v3302_v53, %v6279_v13  ;;  %v3273_v31 = vmul.f32 %v6272_v40, %v3242_v47  ;;  %v3178_v62 = vmul.f32 0.03125, %v3151_v46  ;;  %v3204_v14 = vadd.f32 1e-05, %v3180_v1 }
 0x4e0   :  { %v4649_v48 = vpop.eup %4648  ;;  %v3324_v22 = vmul.f32 %v3300_v17, %v6267_v43  ;;  %v3274_v6 = vmul.f32 %v6272_v40, %v3243_v16  ;;  %v3157_v29 = vpop.xlane.xlu1 %3156  ;;  %4660 = vrsqrt.f32 %v3203_v32  ;;  %v3349_v13 = vadd.f32 %v3348_v4, %v3321_v0 }
 0x4e1   :  { %v4651_v44 = vpop.eup %4650  ;;  %v3247_v52 = vmul.f32 %v4649_v48, %v6172_v55  ;;  %4662 = vrsqrt.f32 %v3204_v14  ;;  %v3303_v43 = vadd.f32 %v6292_v18, %v3272_v27  ;;  %v3202_v59 = vadd.f32 1e-05, %v3178_v62 }
 0x4e2   :  { %v3245_v5 = vmul.f32 %v4651_v44, %v6167_v12  ;;  %v3357_v30 = vadd.f32 %v3356_v49, %v3324_v22  ;;  %v3181_v23 = vmul.f32 0.03125, %v3157_v29  ;;  %v3364_v60 = vadd.f32 %v3326_v56, %v3325_v45 }
 0x4e3   :  { %v3304_v41 = vadd.f32 %v6292_v18, %v3273_v31  ;;  %v3305_v24 = vadd.f32 %v6292_v18, %v3274_v6  ;;  %v3278_v0 = vmul.f32 %v6272_v40, %v3247_v52  ;;  %4664 = vrsqrt.f32 %v3202_v59 }
 0x4e4   :  { %v4653_v36 = vpop.eup %4652  ;;  %v3276_v55 = vmul.f32 %v6272_v40, %v3245_v5  ;;  %v3205_v12 = vadd.f32 1e-05, %v3181_v23  ;;  %v3350_v4 = vrot.slane %v3349_v13, 4  ;;  %v3341_v61 = vadd.f32 %v3340_v19, %v3318_v10  ;;  %v6453_v23 = vld [vmem:[#allocation17_spill] sm:$0xff] }
 0x4e5   :  { %v4655_v11 = vpop.eup %4654  ;;  %v3246_v28 = vmul.f32 %v4653_v36, %v6182_v7  ;;  %v3327_v25 = vmul.f32 %v3303_v43, %v6263_v57  ;;  %v3358_v15 = vrot.slane %v3357_v30, 4  ;;  %v802_v53 = vmul.f32 0.04347826, %v6014_v9 }
 0x4e6   :  { %v3307_v27 = vadd.f32 %v6292_v18, %v3276_v55  ;;  %v3244_v8 = vmul.f32 %v4655_v11, %v6177_v38  ;;  %4666 = vrsqrt.f32 %v3205_v12  ;;  %v3328_v47 = vmul.f32 %v3304_v41, %v6287_v54 }
 0x4e7   :  { %v3277_v42 = vmul.f32 %v6272_v40, %v3246_v28  ;;  %v3329_v7 = vmul.f32 %v3305_v24, %v6282_v20  ;;  %v805_v19 = vmul.f32 0.04347826, %v6005_v2  ;;  %v3309_v17 = vadd.f32 %v6292_v18, %v3278_v0  ;;  %v6454_v0 = vld [vmem:[#allocation19_spill] sm:$0xff] }
 0x4e8   :  { %v3275_v39 = vmul.f32 %v6272_v40, %v3244_v8  ;;  %v3365_v16 = vadd.f32 %v3364_v60, %v3327_v25  ;;  %v4657_v57 = vpop.eup %4656  ;;  %v3351_v26 = vadd.f32 %v3350_v4, %v3349_v13  ;;  %v3342_v1 = vrot.slane %v3341_v61, 4 }
 0x4e9   :  { %v3308_v38 = vadd.f32 %v6292_v18, %v3277_v42  ;;  %v3331_v46 = vmul.f32 %v3307_v27, %v6306_v21  ;;  %v3248_v20 = vmul.f32 %v4657_v57, %v6192_v63  ;;  %v3359_v56 = vadd.f32 %v3358_v15, %v3357_v30 }
 0x4ea   :  { %v3306_v9 = vadd.f32 %v6292_v18, %v3275_v39  ;;  %v3366_v31 = vrot.slane %v3365_v16, 4  ;;  %v807_v2 = vmul.f32 0.04347826, %v6036_v50  ;;  %v806_v32 = vmul.f32 0.04347826, %v6047_v35  ;;  %v6456_v39 = vld [vmem:[#allocation18_spill] sm:$0xff] }
 0x4eb   :  { %v3332_v54 = vmul.f32 %v3308_v38, %v6320_v33  ;;  %v3372_v62 = vadd.f32 %v3329_v7, %v3328_v47  ;;  %v4659_v22 = vpop.eup %4658  ;;  %v809_v6 = vmul.f32 0.04347826, %v6057_v34  ;;  %v3333_v14 = vmul.f32 %v3309_v17, %v805_v19 }
 0x4ec   :  { %v3330_v48 = vmul.f32 %v3306_v9, %v802_v53  ;;  %v3279_v21 = vmul.f32 %v6272_v40, %v3248_v20  ;;  %v3343_v10 = vadd.f32 %v3342_v1, %v3341_v61  ;;  %v3249_v33 = vmul.f32 %v4659_v22, %v6187_v3  ;;  %v6455_v53 = vld [vmem:[#allocation20_spill] sm:$0xff] }
 0x4ed   :  { %v3380_v29 = vadd.f32 %v3332_v54, %v3331_v46  ;;  %v4661_v44 = vpop.eup %4660  ;;  %v3352_v63 = vrot.slane %v3351_v26, 2  ;;  %v3360_v13 = vrot.slane %v3359_v56, 2  ;;  %v3367_v35 = vadd.f32 %v3366_v31, %v3365_v16 }
 0x4ee   :  { %v3373_v49 = vadd.f32 %v3372_v62, %v3330_v48  ;;  %v4663_v52 = vpop.eup %4662  ;;  %v3251_v50 = vmul.f32 %v4661_v44, %v6197_v51  ;;  %v3310_v5 = vadd.f32 %v6292_v18, %v3279_v21  ;;  %v3280_v34 = vmul.f32 %v6272_v40, %v3249_v33 }
 0x4ef   :  { %v3381_v45 = vadd.f32 %v3380_v29, %v3333_v14  ;;  %v3252_v43 = vmul.f32 %v4663_v52, %v6204_v58  ;;  %v810_v59 = vmul.f32 0.04347826, %v6072_v37  ;;  %v808_v36 = vmul.f32 0.04347826, %v6453_v23 }
 0x4f0   :  { %v3374_v30 = vrot.slane %v3373_v49, 4  ;;  %v3282_v3 = vmul.f32 %v6272_v40, %v3251_v50  ;;  %v4665_v41 = vpop.eup %4664  ;;  %v3344_v24 = vrot.slane %v3343_v10, 2  ;;  %v3311_v51 = vadd.f32 %v6292_v18, %v3280_v34 }
 0x4f1   :  { %v3382_v60 = vrot.slane %v3381_v45, 4  ;;  %v3283_v55 = vmul.f32 %v6272_v40, %v3252_v43  ;;  %v3250_v28 = vmul.f32 %v4665_v41, %v6454_v0  ;;  %v3353_v12 = vadd.f32 %v3352_v63, %v3351_v26  ;;  %v3646_v0 = vld [vmem:[%s6401_s7] ss:$0 sm:$0xff] }
 0x4f2   :  { %v3375_v11 = vadd.f32 %v3374_v30, %v3373_v49  ;;  %v3361_v4 = vadd.f32 %v3360_v13, %v3359_v56  ;;  %v3368_v58 = vrot.slane %v3367_v35, 2  ;;  %v3334_v27 = vmul.f32 %v3310_v5, %v806_v32 }
 0x4f3   :  { %v4667_v61 = vpop.eup %4666  ;;  %v3313_v37 = vadd.f32 %v6292_v18, %v3282_v3  ;;  %v3314_v8 = vadd.f32 %v6292_v18, %v3283_v55  ;;  %v3383_v25 = vadd.f32 %v3382_v60, %v3381_v45  ;;  %v3335_v15 = vmul.f32 %v3311_v51, %v807_v2 }
 0x4f4   :  { %v3281_v42 = vmul.f32 %v6272_v40, %v3250_v28  ;;  %v3253_v47 = vmul.f32 %v4667_v61, %v6455_v53  ;;  %v3376_v7 = vrot.slane %v3375_v11, 2  ;;  %v811_v19 = vmul.f32 0.04347826, %v6456_v39 }
 0x4f5   :  { %v3345_v17 = vadd.f32 %v3344_v24, %v3343_v10  ;;  %v3338_v57 = vmul.f32 %v3314_v8, %v810_v59  ;;  %v3354_v26 = vrot.slane %v3353_v12, 1  ;;  %v3337_v1 = vmul.f32 %v3313_v37, %v809_v6 }
 0x4f6   :  { %v3312_v38 = vadd.f32 %v6292_v18, %v3281_v42  ;;  %v3284_v16 = vmul.f32 %v6272_v40, %v3253_v47  ;;  %v3362_v46 = vrot.slane %v3361_v4, 1  ;;  %v3369_v9 = vadd.f32 %v3368_v58, %v3367_v35 }
 0x4f7   :  { %v3384_v54 = vrot.slane %v3383_v25, 2  ;;  %v3377_v31 = vadd.f32 %v3376_v7, %v3375_v11  ;;  %v3388_v2 = vadd.f32 %v3335_v15, %v3334_v27  ;;  %v3346_v32 = vrot.slane %v3345_v17, 1 }
 0x4f8   :  { %v3315_v20 = vadd.f32 %v6292_v18, %v3284_v16  ;;  %v3336_v56 = vmul.f32 %v3312_v38, %v808_v36  ;;  %v3396_v22 = vadd.f32 %v3338_v57, %v3337_v1  ;;  %v3355_v14 = vadd.f32 %v3354_v26, %v3353_v12 }
 0x4f9   :  { %v3370_v21 = vrot.slane %v3369_v9, 1  ;;  %v3385_v29 = vadd.f32 %v3384_v54, %v3383_v25  ;;  %v3363_v40 = vadd.f32 %v3362_v46, %v3361_v4  ;;  %v3378_v44 = vrot.slane %v3377_v31, 1 }
 0x4fa   :  { %v3339_v62 = vmul.f32 %v3315_v20, %v811_v19  ;;  %v3389_v48 = vadd.f32 %v3388_v2, %v3336_v56  ;;  %v3347_v33 = vadd.f32 %v3346_v32, %v3345_v17 }
 0x4fb   :  { %v3371_v18 = vadd.f32 %v3370_v21, %v3369_v9  ;;  %v3386_v52 = vrot.slane %v3385_v29, 1  ;;  %v3379_v13 = vadd.f32 %v3378_v44, %v3377_v31 }
 0x4fc   :  { %v3390_v10 = vrot.slane %v3389_v48, 4  ;;  %v3397_v6 = vadd.f32 %v3396_v22, %v3339_v62  ;;  %v3413_v50 = vsel %vm3412_vm11, %v3355_v14, %v3347_v33 }
 0x4fd   :  { %v3415_v5 = vsel %vm3414_vm12, %v3363_v40, %v3413_v50  ;;  %v3387_v30 = vadd.f32 %v3386_v52, %v3385_v29 }
 0x4fe   :  { %v3391_v63 = vadd.f32 %v3390_v10, %v3389_v48  ;;  %v3398_v49 = vrot.slane %v3397_v6, 4  ;;  %v3417_v59 = vsel %vm3416_vm13, %v3371_v18, %v3415_v5 }
 0x4ff   :  { %v3419_v3 = vsel %vm3418_vm14, %v3379_v13, %v3417_v59 }
 0x500   :  { %v3392_v35 = vrot.slane %v3391_v63, 2  ;;  %v3399_v45 = vadd.f32 %v3398_v49, %v3397_v6  ;;  %v3421_v24 = vsel %vm3420_vm15, %v3387_v30, %v3419_v3 }
 0x502   :  { %v3393_v34 = vadd.f32 %v3392_v35, %v3391_v63  ;;  %v3400_v43 = vrot.slane %v3399_v45, 2 }
 0x504   :  { %v3394_v23 = vrot.slane %v3393_v34, 1  ;;  %v3401_v36 = vadd.f32 %v3400_v43, %v3399_v45 }
 0x506   :  { %v3395_v60 = vadd.f32 %v3394_v23, %v3393_v34  ;;  %v3402_v41 = vrot.slane %v3401_v36, 1 }
 0x508   :  { %v3403_v51 = vadd.f32 %v3402_v41, %v3401_v36  ;;  %v3423_v55 = vsel %vm3422_vm0, %v3395_v60, %v3421_v24 }
 0x50a   :  { %v3425_v11 = vsel %vm3424_vm5, %v3403_v51, %v3423_v55 }
 0x50b   :  { %4561 = vmatmul.mubr.f32.vlgmr.msra.gmra.mxu0 %v3425_v11 }
 0x5cb   :  { %v3518_v28 = vpop.f32.mrf.mxu0 }
 0x5cc   :  { %v3519_v12 = vadd.f32 %v3646_v0, %v3518_v28 }
 0x5cd   :  { %v4562_v4 = vpop.f32.mrf.mxu0 }
 0x5ce   :  { %3522 = vst [vmem:[#allocation12] sm:$0xff] %v3519_v12 }
 0x5cf   :  { %4762 = shalt.err (!%p4759_p10)
}
 0x5d0   :  { %3532 = dma.vmem_to_hbm [thread:$0]  %s3530_s13, 128, %s6402_s8, [#allocation6]  }
 0x5d1   :  { %4777 = dma.done.wait [#allocation6], 128  }
 0x5d2   :  { %4778 = vsyncadd [#allocation6], 4294967168 }
 0x5d3   :  { %3536 = vsyncpa [#allocation5], 1 }
 0x5d4   :  { %3537 = vsyncpa [#allocation8], 1 }
 0x5d5   :  { %3538 = vsyncpa [#allocation11], 1 }
 0x5d6   :  { %3539 = vsyncpa [#allocation6], 1 }

</bundles_post_ra>
